<compile_context>
chip_gen: v7x
topology: tpu7x:2x2x1
jax: 0.10.0
libtpu: 0.0.40
codegen_flags: <defaults>
</compile_context>

<pallas_src>
import functools
import math

import jax
import jax.numpy as jnp
from jax.experimental import pallas as pl
from jax.experimental.pallas import tpu as pltpu

BN_EPS = 1e-5
_LANE = 128
_SUB = 8


def _round_up(v, m):
    return (v + m - 1) // m * m


def _largest_divisor_leq(n, cap):
    cap = max(1, min(cap, n))
    for d in range(cap, 0, -1):
        if n % d == 0:
            return d
    return 1


def _tap_stack(xv, offsets, hw):
    """Stack the unique dilated tap windows along the contraction dim.

    xv: (Cin_pad, PW) one padded flat sample.  Each unique static offset is
    sliced exactly once (shared taps across branches are deduped by
    construction) and the windows are concatenated along the sublane-aligned
    contraction dim.  Returns (U * Cin_pad, hw)."""
    wins = [xv[:, off:off + hw] for off in offsets]
    return wins[0] if len(wins) == 1 else jnp.concatenate(wins, axis=0)


def _stats_kernel(x_ref, w_ref, part_ref, *, offsets, hw, bs):
    """Pass 1: stacked conv matmul + per-step partial (sum, sumsq) stats."""
    wmat = w_ref[...]
    c_tot = wmat.shape[0]
    s1 = jnp.zeros((c_tot, 1), jnp.float32)
    s2 = jnp.zeros((c_tot, 1), jnp.float32)
    for j in range(bs):                       # static unroll over block samples
        rhs = _tap_stack(x_ref[j], offsets, hw)
        y = jnp.dot(wmat, rhs, preferred_element_type=jnp.float32)
        s1 = s1 + jnp.sum(y, axis=1, keepdims=True)
        s2 = s2 + jnp.sum(y * y, axis=1, keepdims=True)
    part_ref[...] = jnp.concatenate([s1, s2], axis=1)   # one tiny store/step


def _apply_kernel(x_ref, w_ref, scale_ref, shift_ref, o_ref, *,
                  offsets, hw, bs, out_layout):
    """Pass 2: stacked conv matmul, fused BN affine + ReLU, one wide store.

    out_layout None            -> write plain (C_tot, hw) blocks (final stage)
    out_layout (lead, rows, cols) -> write the NEXT stage's padded flat
        layout: data at lane columns [lead, lead+hw), channels padded to
        `rows`, zeros elsewhere (no XLA re-pad between stages)."""
    wmat = w_ref[...]
    sc = scale_ref[...]
    sh = shift_ref[...]
    for j in range(bs):
        rhs = _tap_stack(x_ref[j], offsets, hw)
        y = jnp.dot(wmat, rhs, preferred_element_type=jnp.float32)
        y = jnp.maximum(y * sc + sh, 0.0)
        if out_layout is not None:
            lead, rows, cols = out_layout
            c_tot = y.shape[0]
            pieces = []
            if lead:
                pieces.append(jnp.zeros((c_tot, lead), y.dtype))
            pieces.append(y)
            if cols - lead - hw:
                pieces.append(jnp.zeros((c_tot, cols - lead - hw), y.dtype))
            y = pieces[0] if len(pieces) == 1 else jnp.concatenate(pieces, axis=1)
            if rows > c_tot:
                y = jnp.concatenate(
                    [y, jnp.zeros((rows - c_tot, cols), y.dtype)], axis=0)
        o_ref[j] = y.astype(o_ref.dtype)


def _fused_stage(x_flat, weights, gamma, beta, *, dilations, k, h, w, lo,
                 out_pad):
    """One fused multi-branch ConvBN(train-stats)+ReLU stage.

    x_flat:  (N, Cin_pad, PW) float32 in padded-flat layout: valid data of
             each sample sits at channels [0, Cin) and lane columns
             [lo*w, lo*w + h*w); everything else is zero.
    weights: (B, K, Cout, Cin) per-branch, per-tap conv matrices.
    gamma, beta: (B, Cout) BatchNorm affine parameters.
    out_pad: None -> returns (N, B*Cout, h*w);
             (lead, rows, cols) -> returns the next stage's padded-flat input
             of shape (N, rows, cols) directly.
    """
    n, cin_pad, pw = x_flat.shape
    nb, kk, cout, cin = weights.shape
    assert kk == k and nb == len(dilations) and cin <= cin_pad
    hw = h * w
    c_tot = nb * cout

    # Unique tap offsets (flat columns of the padded row), shared across
    # branches; the center tap of all four dilations collapses to one window.
    pad_lo = [d * (k - 1) // 2 for d in dilations]
    offs = sorted({(lo - pad_lo[b] + t * dilations[b]) * w
                   for b in range(nb) for t in range(k)})
    oidx = {o: u for u, o in enumerate(offs)}
    u_cnt = len(offs)

    # Host-side packed weight matrix: one (B*Cout, U*Cin_pad) LHS so the
    # whole stage is a single MXU matmul per sample.  The contraction dim is
    # a sublane multiple by construction (Cin padded to 8 for f32).
    w_packed = jnp.zeros((c_tot, u_cnt * cin_pad), jnp.float32)
    for b in range(nb):
        for t in range(k):
            u = oidx[(lo - pad_lo[b] + t * dilations[b]) * w]
            w_packed = w_packed.at[b * cout:(b + 1) * cout,
                                   u * cin_pad:u * cin_pad + cin].add(
                                       weights[b, t])

    if out_pad is None:
        out_rows, out_cols = c_tot, hw
        out_layout = None
    else:
        lead, out_rows, out_cols = out_pad
        out_layout = (lead, out_rows, out_cols)

    # Batch samples per grid block: amortize per-step overhead while keeping
    # the double-buffered footprint small (v7x has only 64 MiB physical VMEM).
    per_sample = (cin_pad * pw + out_rows * out_cols) * 4
    bs = _largest_divisor_leq(n, max(1, (2 << 20) // max(per_sample, 1)))
    steps = n // bs

    x_spec = pl.BlockSpec((bs, cin_pad, pw), lambda i: (i, 0, 0))
    w_spec = pl.BlockSpec((c_tot, u_cnt * cin_pad), lambda i: (0, 0))
    vec_spec = pl.BlockSpec((c_tot, 1), lambda i: (0, 0))

    mm_flops = 2 * c_tot * u_cnt * cin_pad * hw * n
    x_bytes = n * cin_pad * pw * 4
    w_bytes = c_tot * u_cnt * cin_pad * 4

    # ---- pass 1: per-step PARTIAL per-channel sum / sum-of-squares --------
    # No resident accumulator -> grid axis is "parallel" (megacore on v7x).
    parts = pl.pallas_call(
        functools.partial(_stats_kernel, offsets=tuple(offs), hw=hw, bs=bs),
        grid=(steps,),
        in_specs=[x_spec, w_spec],
        out_specs=pl.BlockSpec((None, c_tot, 2), lambda i: (i, 0, 0)),
        out_shape=jax.ShapeDtypeStruct((steps, c_tot, 2), jnp.float32),
        compiler_params=pltpu.CompilerParams(
            dimension_semantics=("parallel",),
            vmem_limit_bytes=32 * 1024 * 1024),
        cost_estimate=pl.CostEstimate(
            flops=int(2 * mm_flops), transcendentals=0,
            bytes_accessed=int(x_bytes + w_bytes + steps * c_tot * 2 * 4)),
    )(x_flat, w_packed)

    # Fold train-mode BatchNorm (biased batch stats) into one scale/shift per
    # channel.  The Conv2d bias is intentionally dropped everywhere: it is
    # exactly cancelled by the BN mean subtraction.
    # TODO(synk): E[x^2]-E[x]^2 can lose precision for huge activations;
    #             switch to a centered second pass if BN parity at large H*W
    #             ever matters.
    tot = jnp.sum(parts, axis=0)                       # (C_tot, 2)
    count = float(n * hw)
    mean = tot[:, 0] / count
    var = jnp.maximum(tot[:, 1] / count - mean * mean, 0.0)
    scale = gamma.reshape(c_tot) * jax.lax.rsqrt(var + BN_EPS)
    shift = beta.reshape(c_tot) - mean * scale
    scale = scale.reshape(c_tot, 1).astype(jnp.float32)
    shift = shift.reshape(c_tot, 1).astype(jnp.float32)

    # ---- pass 2: recompute conv, fused affine + ReLU, lane-dense store ----
    out = pl.pallas_call(
        functools.partial(_apply_kernel, offsets=tuple(offs), hw=hw, bs=bs,
                          out_layout=out_layout),
        grid=(steps,),
        in_specs=[x_spec, w_spec, vec_spec, vec_spec],
        out_specs=pl.BlockSpec((bs, out_rows, out_cols), lambda i: (i, 0, 0)),
        out_shape=jax.ShapeDtypeStruct((n, out_rows, out_cols), jnp.float32),
        compiler_params=pltpu.CompilerParams(
            dimension_semantics=("parallel",),
            vmem_limit_bytes=32 * 1024 * 1024),
        cost_estimate=pl.CostEstimate(
            flops=int(mm_flops + 3 * c_tot * hw * n), transcendentals=0,
            bytes_accessed=int(x_bytes + w_bytes + 2 * c_tot * 4
                               + n * out_rows * out_cols * 4)),
    )(x_flat, w_packed, scale, shift)
    return out


# ----------------------------- parameters ----------------------------------

def _init_convbn(key, cin, cout, k):
    """PyTorch-style Conv2d + BatchNorm2d parameter init (fan-in bounds)."""
    kw, kb = jax.random.split(key)
    bound = 1.0 / math.sqrt(cin * k)
    weight = jax.random.uniform(kw, (cout, cin, k, 1), jnp.float32, -bound, bound)
    bias = jax.random.uniform(kb, (cout,), jnp.float32, -bound, bound)
    gamma = jnp.ones((cout,), jnp.float32)   # BatchNorm2d default weight
    beta = jnp.zeros((cout,), jnp.float32)   # BatchNorm2d default bias
    return weight, bias, gamma, beta


def _pack(branch_params):
    """Stack per-branch ConvBN params into the kernel layout.

    Returns weights (B, K, Cout, Cin), gamma (B, Cout), beta (B, Cout).
    The conv bias exists for parameter parity but is not packed: it is
    mathematically cancelled by the train-mode BatchNorm that follows."""
    ws = [jnp.transpose(wt[:, :, :, 0], (2, 0, 1)) for (wt, _, _, _) in branch_params]
    gs = [g for (_, _, g, _) in branch_params]
    bs = [bt for (_, _, _, bt) in branch_params]
    return jnp.stack(ws), jnp.stack(gs), jnp.stack(bs)


def init_mse_params(key, in_channels, out_channels, kernel_size, dilation_rates):
    nb = len(dilation_rates)
    keys = jax.random.split(key, nb + 2)
    dil = [_init_convbn(keys[i], in_channels, out_channels, kernel_size)
           for i in range(nb)]
    down1 = [_init_convbn(keys[nb], out_channels * 4, out_channels * 2, kernel_size)]
    down2 = [_init_convbn(keys[nb + 1], out_channels * 2, out_channels, kernel_size)]
    return {"dil": _pack(dil), "down1": _pack(down1), "down2": _pack(down2)}


# ------------------------------ forward ------------------------------------

def mse_forward(x_nchw, params, dilation_rates, kernel_size):
    """Forward pass matching MSE.forward.  x_nchw: (N, Cin, H, W)."""
    n, cin, h, w = x_nchw.shape
    k = kernel_size
    stages = (("dil", tuple(dilation_rates)), ("down1", (1,)), ("down2", (1,)))

    # Padded-flat geometry (lo, pw) of every stage's input.
    geoms = []
    for _, ds in stages:
        p_lo = [d * (k - 1) // 2 for d in ds]
        p_hi = [d * (k - 1) - p for d, p in zip(ds, p_lo)]
        lo, hi = max(p_lo), max(p_hi)
        geoms.append((lo, _round_up((h + lo + hi) * w, _LANE)))

    # Stage-1 input: one XLA pad/reshape into the padded-flat layout.  Later
    # stages consume the previous kernel's output directly (no re-pad).
    lo0, pw0 = geoms[0]
    cin_pad0 = _round_up(cin, _SUB)
    xf = jnp.pad(x_nchw, ((0, 0), (0, cin_pad0 - cin), (lo0, 0), (0, 0)))
    xf = xf.reshape(n, cin_pad0, (h + lo0) * w)
    xf = jnp.pad(xf, ((0, 0), (0, 0), (0, pw0 - (h + lo0) * w)))

    x_cur = xf.astype(jnp.float32)
    for si, (name, ds) in enumerate(stages):
        wgt, gam, bet = params[name]
        lo, _ = geoms[si]
        if si + 1 < len(stages):
            lo_next, pw_next = geoms[si + 1]
            c_tot = wgt.shape[0] * wgt.shape[2]
            out_pad = (lo_next * w, _round_up(c_tot, _SUB), pw_next)
        else:
            out_pad = None
        x_cur = _fused_stage(x_cur, wgt, gam, bet, dilations=ds, k=k,
                             h=h, w=w, lo=lo, out_pad=out_pad)
    return x_cur.reshape(n, -1, h, w)


if __name__ == "__main__":
    # Small shapes consistent with the module: 4 dilation branches are
    # required because down1 expects out_channels * 4 input channels.
    in_channels, out_channels = 4, 8
    kernel_size = 3
    dilation_rates = [1, 2, 4, 8]
    n, h, w = 2, 16, 16

    root = jax.random.PRNGKey(0)
    k_x, k_p = jax.random.split(root)
    x = jax.random.normal(k_x, (n, in_channels, h, w), jnp.float32)
    params = init_mse_params(k_p, in_channels, out_channels, kernel_size,
                             dilation_rates)

    fwd = jax.jit(lambda xx: mse_forward(xx, params, dilation_rates, kernel_size))
    out = jax.block_until_ready(fwd(x))

    assert out.shape == (n, out_channels, h, w), out.shape
    assert bool(jnp.all(jnp.isfinite(out)))
    assert bool(jnp.all(out >= 0.0))  # final ReLU

    print("KERNEL_OK")
</pallas_src>

<mosaic_0001>
module attributes {stable_mosaic.version = 11 : i64} {
  func.func @_stats_kernel(%arg0: i32, %arg1: memref<2x8x512xf32, #tpu.memory_space<vmem>>, %arg2: memref<32x72xf32, #tpu.memory_space<vmem>>, %arg3: memref<1x32x2xf32, #tpu.memory_space<vmem>>) attributes {dimension_semantics = [#tpu.dimension_semantics<parallel>], iteration_bounds = array<i64: 1>, scalar_prefetch = 0 : i64, scratch_operands = 0 : i64, tpu.core_type = #tpu.core_type<tc>, window_params = [{transform_indices = @transform_0, window_bounds = array<i64: 2, 8, 512>}, {pipeline_mode = #tpu.pipeline_mode<synchronous>, transform_indices = @transform_1, window_bounds = array<i64: 32, 72>}, {transform_indices = @transform_2, window_bounds = array<i64: 1, 32, 2>}]} {
    %c0 = arith.constant 0 : index
    %c0_0 = arith.constant 0 : index
    %0 = vector.load %arg2[%c0, %c0_0] : memref<32x72xf32, #tpu.memory_space<vmem>>, vector<32x72xf32>
    %cst = arith.constant 0.000000e+00 : f32
    %1 = vector.broadcast %cst : f32 to vector<32x1xf32>
    %cst_1 = arith.constant 0.000000e+00 : f32
    %2 = vector.broadcast %cst_1 : f32 to vector<32x1xf32>
    %c0_2 = arith.constant 0 : index
    %c0_3 = arith.constant 0 : index
    %c0_4 = arith.constant 0 : index
    %3 = vector.load %arg1[%c0_2, %c0_3, %c0_4] : memref<2x8x512xf32, #tpu.memory_space<vmem>>, vector<1x8x512xf32>
    %4 = vector.shape_cast %3 : vector<1x8x512xf32> to vector<8x512xf32>
    %5 = vector.extract_strided_slice %4 {offsets = [0, 0], sizes = [8, 256], strides = [1, 1]} : vector<8x512xf32> to vector<8x256xf32>
    %6 = vector.extract_strided_slice %4 {offsets = [0, 64], sizes = [8, 256], strides = [1, 1]} : vector<8x512xf32> to vector<8x256xf32>
    %7 = vector.extract_strided_slice %4 {offsets = [0, 96], sizes = [8, 256], strides = [1, 1]} : vector<8x512xf32> to vector<8x256xf32>
    %8 = vector.extract_strided_slice %4 {offsets = [0, 112], sizes = [8, 256], strides = [1, 1]} : vector<8x512xf32> to vector<8x256xf32>
    %9 = vector.extract_strided_slice %4 {offsets = [0, 128], sizes = [8, 256], strides = [1, 1]} : vector<8x512xf32> to vector<8x256xf32>
    %10 = vector.extract_strided_slice %4 {offsets = [0, 144], sizes = [8, 256], strides = [1, 1]} : vector<8x512xf32> to vector<8x256xf32>
    %11 = vector.extract_strided_slice %4 {offsets = [0, 160], sizes = [8, 256], strides = [1, 1]} : vector<8x512xf32> to vector<8x256xf32>
    %12 = vector.extract_strided_slice %4 {offsets = [0, 192], sizes = [8, 256], strides = [1, 1]} : vector<8x512xf32> to vector<8x256xf32>
    %13 = vector.extract_strided_slice %4 {offsets = [0, 256], sizes = [8, 256], strides = [1, 1]} : vector<8x512xf32> to vector<8x256xf32>
    %14 = tpu.concatenate %5, %6, %7, %8, %9, %10, %11, %12, %13 in 0 : vector<8x256xf32>, vector<8x256xf32>, vector<8x256xf32>, vector<8x256xf32>, vector<8x256xf32>, vector<8x256xf32>, vector<8x256xf32>, vector<8x256xf32>, vector<8x256xf32> -> vector<72x256xf32>
    %cst_5 = arith.constant dense<0.000000e+00> : vector<32x256xf32>
    %15 = tpu.matmul %0, %14, %cst_5 {dimension_numbers = #tpu.dot_dimension_numbers<[1], [0], [0], [1], [0, 0, 1, 1], [], []>} : vector<32x72xf32>, vector<72x256xf32>, vector<32x256xf32> -> vector<32x256xf32>
    %cst_6 = arith.constant dense<0.000000e+00> : vector<32xf32>
    %16 = vector.multi_reduction <add>, %15, %cst_6 [1] : vector<32x256xf32> to vector<32xf32>
    %17 = vector.shape_cast %16 : vector<32xf32> to vector<32x1xf32>
    %18 = arith.addf %1, %17 : vector<32x1xf32>
    %19 = arith.mulf %15, %15 : vector<32x256xf32>
    %cst_7 = arith.constant dense<0.000000e+00> : vector<32xf32>
    %20 = vector.multi_reduction <add>, %19, %cst_7 [1] : vector<32x256xf32> to vector<32xf32>
    %21 = vector.shape_cast %20 : vector<32xf32> to vector<32x1xf32>
    %22 = arith.addf %2, %21 : vector<32x1xf32>
    %c1 = arith.constant 1 : index
    %c0_8 = arith.constant 0 : index
    %c0_9 = arith.constant 0 : index
    %23 = vector.load %arg1[%c1, %c0_8, %c0_9] : memref<2x8x512xf32, #tpu.memory_space<vmem>>, vector<1x8x512xf32>
    %24 = vector.shape_cast %23 : vector<1x8x512xf32> to vector<8x512xf32>
    %25 = vector.extract_strided_slice %24 {offsets = [0, 0], sizes = [8, 256], strides = [1, 1]} : vector<8x512xf32> to vector<8x256xf32>
    %26 = vector.extract_strided_slice %24 {offsets = [0, 64], sizes = [8, 256], strides = [1, 1]} : vector<8x512xf32> to vector<8x256xf32>
    %27 = vector.extract_strided_slice %24 {offsets = [0, 96], sizes = [8, 256], strides = [1, 1]} : vector<8x512xf32> to vector<8x256xf32>
    %28 = vector.extract_strided_slice %24 {offsets = [0, 112], sizes = [8, 256], strides = [1, 1]} : vector<8x512xf32> to vector<8x256xf32>
    %29 = vector.extract_strided_slice %24 {offsets = [0, 128], sizes = [8, 256], strides = [1, 1]} : vector<8x512xf32> to vector<8x256xf32>
    %30 = vector.extract_strided_slice %24 {offsets = [0, 144], sizes = [8, 256], strides = [1, 1]} : vector<8x512xf32> to vector<8x256xf32>
    %31 = vector.extract_strided_slice %24 {offsets = [0, 160], sizes = [8, 256], strides = [1, 1]} : vector<8x512xf32> to vector<8x256xf32>
    %32 = vector.extract_strided_slice %24 {offsets = [0, 192], sizes = [8, 256], strides = [1, 1]} : vector<8x512xf32> to vector<8x256xf32>
    %33 = vector.extract_strided_slice %24 {offsets = [0, 256], sizes = [8, 256], strides = [1, 1]} : vector<8x512xf32> to vector<8x256xf32>
    %34 = tpu.concatenate %25, %26, %27, %28, %29, %30, %31, %32, %33 in 0 : vector<8x256xf32>, vector<8x256xf32>, vector<8x256xf32>, vector<8x256xf32>, vector<8x256xf32>, vector<8x256xf32>, vector<8x256xf32>, vector<8x256xf32>, vector<8x256xf32> -> vector<72x256xf32>
    %cst_10 = arith.constant dense<0.000000e+00> : vector<32x256xf32>
    %35 = tpu.matmul %0, %34, %cst_10 {dimension_numbers = #tpu.dot_dimension_numbers<[1], [0], [0], [1], [0, 0, 1, 1], [], []>} : vector<32x72xf32>, vector<72x256xf32>, vector<32x256xf32> -> vector<32x256xf32>
    %cst_11 = arith.constant dense<0.000000e+00> : vector<32xf32>
    %36 = vector.multi_reduction <add>, %35, %cst_11 [1] : vector<32x256xf32> to vector<32xf32>
    %37 = vector.shape_cast %36 : vector<32xf32> to vector<32x1xf32>
    %38 = arith.addf %18, %37 : vector<32x1xf32>
    %39 = arith.mulf %35, %35 : vector<32x256xf32>
    %cst_12 = arith.constant dense<0.000000e+00> : vector<32xf32>
    %40 = vector.multi_reduction <add>, %39, %cst_12 [1] : vector<32x256xf32> to vector<32xf32>
    %41 = vector.shape_cast %40 : vector<32xf32> to vector<32x1xf32>
    %42 = arith.addf %22, %41 : vector<32x1xf32>
    %43 = tpu.concatenate %38, %42 in 1 : vector<32x1xf32>, vector<32x1xf32> -> vector<32x2xf32>
    %c0_13 = arith.constant 0 : index
    %c0_14 = arith.constant 0 : index
    %c0_15 = arith.constant 0 : index
    %44 = vector.load %arg3[%c0_13, %c0_14, %c0_15] : memref<1x32x2xf32, #tpu.memory_space<vmem>>, vector<1x32x2xf32>
    %45 = vector.shape_cast %44 : vector<1x32x2xf32> to vector<32x2xf32>
    %46 = vector.shape_cast %43 : vector<32x2xf32> to vector<1x32x2xf32>
    tpu.vector_store %arg3[%c0_13, %c0_14, %c0_15], %46 {strides = array<i32>} : memref<1x32x2xf32, #tpu.memory_space<vmem>>, vector<1x32x2xf32>,
    return
  }
  func.func @transform_0(%arg0: i32) -> (i32, i32, i32) {
    %c0_i32 = arith.constant 0 : i32
    %c0_i32_0 = arith.constant 0 : i32
    %c0_i32_1 = arith.constant 0 : i32
    return %arg0, %c0_i32, %c0_i32_0 : i32, i32, i32
  }
  func.func @transform_1(%arg0: i32) -> (i32, i32) {
    %c0_i32 = arith.constant 0 : i32
    %c0_i32_0 = arith.constant 0 : i32
    %c0_i32_1 = arith.constant 0 : i32
    return %c0_i32, %c0_i32_0 : i32, i32
  }
  func.func @transform_2(%arg0: i32) -> (i32, i32, i32) {
    %c0_i32 = arith.constant 0 : i32
    %c0_i32_0 = arith.constant 0 : i32
    %c0_i32_1 = arith.constant 0 : i32
    return %arg0, %c0_i32, %c0_i32_0 : i32, i32, i32
  }
}

module attributes {stable_mosaic.version = 11 : i64} {
  func.func @_apply_kernel(%arg0: i32, %arg1: memref<2x8x512xf32, #tpu.memory_space<vmem>>, %arg2: memref<32x72xf32, #tpu.memory_space<vmem>>, %arg3: memref<32x1xf32, #tpu.memory_space<vmem>>, %arg4: memref<32x1xf32, #tpu.memory_space<vmem>>, %arg5: memref<2x32x384xf32, #tpu.memory_space<vmem>>) attributes {dimension_semantics = [#tpu.dimension_semantics<parallel>], iteration_bounds = array<i64: 1>, scalar_prefetch = 0 : i64, scratch_operands = 0 : i64, tpu.core_type = #tpu.core_type<tc>, window_params = [{transform_indices = @transform_0, window_bounds = array<i64: 2, 8, 512>}, {pipeline_mode = #tpu.pipeline_mode<synchronous>, transform_indices = @transform_1, window_bounds = array<i64: 32, 72>}, {pipeline_mode = #tpu.pipeline_mode<synchronous>, transform_indices = @transform_2, window_bounds = array<i64: 32, 1>}, {pipeline_mode = #tpu.pipeline_mode<synchronous>, transform_indices = @transform_3, window_bounds = array<i64: 32, 1>}, {transform_indices = @transform_4, window_bounds = array<i64: 2, 32, 384>}]} {
    %c0 = arith.constant 0 : index
    %c0_0 = arith.constant 0 : index
    %0 = vector.load %arg2[%c0, %c0_0] : memref<32x72xf32, #tpu.memory_space<vmem>>, vector<32x72xf32>
    %c0_1 = arith.constant 0 : index
    %c0_2 = arith.constant 0 : index
    %1 = vector.load %arg3[%c0_1, %c0_2] : memref<32x1xf32, #tpu.memory_space<vmem>>, vector<32x1xf32>
    %c0_3 = arith.constant 0 : index
    %c0_4 = arith.constant 0 : index
    %2 = vector.load %arg4[%c0_3, %c0_4] : memref<32x1xf32, #tpu.memory_space<vmem>>, vector<32x1xf32>
    %c0_5 = arith.constant 0 : index
    %c0_6 = arith.constant 0 : index
    %c0_7 = arith.constant 0 : index
    %3 = vector.load %arg1[%c0_5, %c0_6, %c0_7] : memref<2x8x512xf32, #tpu.memory_space<vmem>>, vector<1x8x512xf32>
    %4 = vector.shape_cast %3 : vector<1x8x512xf32> to vector<8x512xf32>
    %5 = vector.extract_strided_slice %4 {offsets = [0, 0], sizes = [8, 256], strides = [1, 1]} : vector<8x512xf32> to vector<8x256xf32>
    %6 = vector.extract_strided_slice %4 {offsets = [0, 64], sizes = [8, 256], strides = [1, 1]} : vector<8x512xf32> to vector<8x256xf32>
    %7 = vector.extract_strided_slice %4 {offsets = [0, 96], sizes = [8, 256], strides = [1, 1]} : vector<8x512xf32> to vector<8x256xf32>
    %8 = vector.extract_strided_slice %4 {offsets = [0, 112], sizes = [8, 256], strides = [1, 1]} : vector<8x512xf32> to vector<8x256xf32>
    %9 = vector.extract_strided_slice %4 {offsets = [0, 128], sizes = [8, 256], strides = [1, 1]} : vector<8x512xf32> to vector<8x256xf32>
    %10 = vector.extract_strided_slice %4 {offsets = [0, 144], sizes = [8, 256], strides = [1, 1]} : vector<8x512xf32> to vector<8x256xf32>
    %11 = vector.extract_strided_slice %4 {offsets = [0, 160], sizes = [8, 256], strides = [1, 1]} : vector<8x512xf32> to vector<8x256xf32>
    %12 = vector.extract_strided_slice %4 {offsets = [0, 192], sizes = [8, 256], strides = [1, 1]} : vector<8x512xf32> to vector<8x256xf32>
    %13 = vector.extract_strided_slice %4 {offsets = [0, 256], sizes = [8, 256], strides = [1, 1]} : vector<8x512xf32> to vector<8x256xf32>
    %14 = tpu.concatenate %5, %6, %7, %8, %9, %10, %11, %12, %13 in 0 : vector<8x256xf32>, vector<8x256xf32>, vector<8x256xf32>, vector<8x256xf32>, vector<8x256xf32>, vector<8x256xf32>, vector<8x256xf32>, vector<8x256xf32>, vector<8x256xf32> -> vector<72x256xf32>
    %cst = arith.constant dense<0.000000e+00> : vector<32x256xf32>
    %15 = tpu.matmul %0, %14, %cst {dimension_numbers = #tpu.dot_dimension_numbers<[1], [0], [0], [1], [0, 0, 1, 1], [], []>} : vector<32x72xf32>, vector<72x256xf32>, vector<32x256xf32> -> vector<32x256xf32>
    %16 = vector.broadcast %1 : vector<32x1xf32> to vector<32x256xf32>
    %17 = arith.mulf %15, %16 : vector<32x256xf32>
    %18 = vector.broadcast %2 : vector<32x1xf32> to vector<32x256xf32>
    %19 = arith.addf %17, %18 : vector<32x256xf32>
    %cst_8 = arith.constant 0.000000e+00 : f32
    %20 = vector.broadcast %cst_8 : f32 to vector<32x256xf32>
    %21 = arith.maximumf %19, %20 : vector<32x256xf32>
    %cst_9 = arith.constant 0.000000e+00 : f32
    %22 = vector.broadcast %cst_9 : f32 to vector<32x16xf32>
    %cst_10 = arith.constant 0.000000e+00 : f32
    %23 = vector.broadcast %cst_10 : f32 to vector<32x112xf32>
    %24 = tpu.concatenate %22, %21, %23 in 1 : vector<32x16xf32>, vector<32x256xf32>, vector<32x112xf32> -> vector<32x384xf32>
    %c0_11 = arith.constant 0 : index
    %c0_12 = arith.constant 0 : index
    %c0_13 = arith.constant 0 : index
    %25 = vector.load %arg5[%c0_11, %c0_12, %c0_13] : memref<2x32x384xf32, #tpu.memory_space<vmem>>, vector<1x32x384xf32>
    %26 = vector.shape_cast %25 : vector<1x32x384xf32> to vector<32x384xf32>
    %27 = vector.shape_cast %24 : vector<32x384xf32> to vector<1x32x384xf32>
    tpu.vector_store %arg5[%c0_11, %c0_12, %c0_13], %27 {strides = array<i32>} : memref<2x32x384xf32, #tpu.memory_space<vmem>>, vector<1x32x384xf32>,
    %c1 = arith.constant 1 : index
    %c0_14 = arith.constant 0 : index
    %c0_15 = arith.constant 0 : index
    %28 = vector.load %arg1[%c1, %c0_14, %c0_15] : memref<2x8x512xf32, #tpu.memory_space<vmem>>, vector<1x8x512xf32>
    %29 = vector.shape_cast %28 : vector<1x8x512xf32> to vector<8x512xf32>
    %30 = vector.extract_strided_slice %29 {offsets = [0, 0], sizes = [8, 256], strides = [1, 1]} : vector<8x512xf32> to vector<8x256xf32>
    %31 = vector.extract_strided_slice %29 {offsets = [0, 64], sizes = [8, 256], strides = [1, 1]} : vector<8x512xf32> to vector<8x256xf32>
    %32 = vector.extract_strided_slice %29 {offsets = [0, 96], sizes = [8, 256], strides = [1, 1]} : vector<8x512xf32> to vector<8x256xf32>
    %33 = vector.extract_strided_slice %29 {offsets = [0, 112], sizes = [8, 256], strides = [1, 1]} : vector<8x512xf32> to vector<8x256xf32>
    %34 = vector.extract_strided_slice %29 {offsets = [0, 128], sizes = [8, 256], strides = [1, 1]} : vector<8x512xf32> to vector<8x256xf32>
    %35 = vector.extract_strided_slice %29 {offsets = [0, 144], sizes = [8, 256], strides = [1, 1]} : vector<8x512xf32> to vector<8x256xf32>
    %36 = vector.extract_strided_slice %29 {offsets = [0, 160], sizes = [8, 256], strides = [1, 1]} : vector<8x512xf32> to vector<8x256xf32>
    %37 = vector.extract_strided_slice %29 {offsets = [0, 192], sizes = [8, 256], strides = [1, 1]} : vector<8x512xf32> to vector<8x256xf32>
    %38 = vector.extract_strided_slice %29 {offsets = [0, 256], sizes = [8, 256], strides = [1, 1]} : vector<8x512xf32> to vector<8x256xf32>
    %39 = tpu.concatenate %30, %31, %32, %33, %34, %35, %36, %37, %38 in 0 : vector<8x256xf32>, vector<8x256xf32>, vector<8x256xf32>, vector<8x256xf32>, vector<8x256xf32>, vector<8x256xf32>, vector<8x256xf32>, vector<8x256xf32>, vector<8x256xf32> -> vector<72x256xf32>
    %cst_16 = arith.constant dense<0.000000e+00> : vector<32x256xf32>
    %40 = tpu.matmul %0, %39, %cst_16 {dimension_numbers = #tpu.dot_dimension_numbers<[1], [0], [0], [1], [0, 0, 1, 1], [], []>} : vector<32x72xf32>, vector<72x256xf32>, vector<32x256xf32> -> vector<32x256xf32>
    %41 = vector.broadcast %1 : vector<32x1xf32> to vector<32x256xf32>
    %42 = arith.mulf %40, %41 : vector<32x256xf32>
    %43 = vector.broadcast %2 : vector<32x1xf32> to vector<32x256xf32>
    %44 = arith.addf %42, %43 : vector<32x256xf32>
    %cst_17 = arith.constant 0.000000e+00 : f32
    %45 = vector.broadcast %cst_17 : f32 to vector<32x256xf32>
    %46 = arith.maximumf %44, %45 : vector<32x256xf32>
    %cst_18 = arith.constant 0.000000e+00 : f32
    %47 = vector.broadcast %cst_18 : f32 to vector<32x16xf32>
    %cst_19 = arith.constant 0.000000e+00 : f32
    %48 = vector.broadcast %cst_19 : f32 to vector<32x112xf32>
    %49 = tpu.concatenate %47, %46, %48 in 1 : vector<32x16xf32>, vector<32x256xf32>, vector<32x112xf32> -> vector<32x384xf32>
    %c1_20 = arith.constant 1 : index
    %c0_21 = arith.constant 0 : index
    %c0_22 = arith.constant 0 : index
    %50 = vector.load %arg5[%c1_20, %c0_21, %c0_22] : memref<2x32x384xf32, #tpu.memory_space<vmem>>, vector<1x32x384xf32>
    %51 = vector.shape_cast %50 : vector<1x32x384xf32> to vector<32x384xf32>
    %52 = vector.shape_cast %49 : vector<32x384xf32> to vector<1x32x384xf32>
    tpu.vector_store %arg5[%c1_20, %c0_21, %c0_22], %52 {strides = array<i32>} : memref<2x32x384xf32, #tpu.memory_space<vmem>>, vector<1x32x384xf32>,
    return
  }
  func.func @transform_0(%arg0: i32) -> (i32, i32, i32) {
    %c0_i32 = arith.constant 0 : i32
    %c0_i32_0 = arith.constant 0 : i32
    %c0_i32_1 = arith.constant 0 : i32
    return %arg0, %c0_i32, %c0_i32_0 : i32, i32, i32
  }
  func.func @transform_1(%arg0: i32) -> (i32, i32) {
    %c0_i32 = arith.constant 0 : i32
    %c0_i32_0 = arith.constant 0 : i32
    %c0_i32_1 = arith.constant 0 : i32
    return %c0_i32, %c0_i32_0 : i32, i32
  }
  func.func @transform_2(%arg0: i32) -> (i32, i32) {
    %c0_i32 = arith.constant 0 : i32
    %c0_i32_0 = arith.constant 0 : i32
    %c0_i32_1 = arith.constant 0 : i32
    return %c0_i32, %c0_i32_0 : i32, i32
  }
  func.func @transform_3(%arg0: i32) -> (i32, i32) {
    %c0_i32 = arith.constant 0 : i32
    %c0_i32_0 = arith.constant 0 : i32
    %c0_i32_1 = arith.constant 0 : i32
    return %c0_i32, %c0_i32_0 : i32, i32
  }
  func.func @transform_4(%arg0: i32) -> (i32, i32, i32) {
    %c0_i32 = arith.constant 0 : i32
    %c0_i32_0 = arith.constant 0 : i32
    %c0_i32_1 = arith.constant 0 : i32
    return %arg0, %c0_i32, %c0_i32_0 : i32, i32, i32
  }
}

module attributes {stable_mosaic.version = 11 : i64} {
  func.func @_stats_kernel(%arg0: i32, %arg1: memref<2x32x384xf32, #tpu.memory_space<vmem>>, %arg2: memref<16x96xf32, #tpu.memory_space<vmem>>, %arg3: memref<1x16x2xf32, #tpu.memory_space<vmem>>) attributes {dimension_semantics = [#tpu.dimension_semantics<parallel>], iteration_bounds = array<i64: 1>, scalar_prefetch = 0 : i64, scratch_operands = 0 : i64, tpu.core_type = #tpu.core_type<tc>, window_params = [{transform_indices = @transform_0, window_bounds = array<i64: 2, 32, 384>}, {pipeline_mode = #tpu.pipeline_mode<synchronous>, transform_indices = @transform_1, window_bounds = array<i64: 16, 96>}, {transform_indices = @transform_2, window_bounds = array<i64: 1, 16, 2>}]} {
    %c0 = arith.constant 0 : index
    %c0_0 = arith.constant 0 : index
    %0 = vector.load %arg2[%c0, %c0_0] : memref<16x96xf32, #tpu.memory_space<vmem>>, vector<16x96xf32>
    %cst = arith.constant 0.000000e+00 : f32
    %1 = vector.broadcast %cst : f32 to vector<16x1xf32>
    %cst_1 = arith.constant 0.000000e+00 : f32
    %2 = vector.broadcast %cst_1 : f32 to vector<16x1xf32>
    %c0_2 = arith.constant 0 : index
    %c0_3 = arith.constant 0 : index
    %c0_4 = arith.constant 0 : index
    %3 = vector.load %arg1[%c0_2, %c0_3, %c0_4] : memref<2x32x384xf32, #tpu.memory_space<vmem>>, vector<1x32x384xf32>
    %4 = vector.shape_cast %3 : vector<1x32x384xf32> to vector<32x384xf32>
    %5 = vector.extract_strided_slice %4 {offsets = [0, 0], sizes = [32, 256], strides = [1, 1]} : vector<32x384xf32> to vector<32x256xf32>
    %6 = vector.extract_strided_slice %4 {offsets = [0, 16], sizes = [32, 256], strides = [1, 1]} : vector<32x384xf32> to vector<32x256xf32>
    %7 = vector.extract_strided_slice %4 {offsets = [0, 32], sizes = [32, 256], strides = [1, 1]} : vector<32x384xf32> to vector<32x256xf32>
    %8 = tpu.concatenate %5, %6, %7 in 0 : vector<32x256xf32>, vector<32x256xf32>, vector<32x256xf32> -> vector<96x256xf32>
    %cst_5 = arith.constant dense<0.000000e+00> : vector<16x256xf32>
    %9 = tpu.matmul %0, %8, %cst_5 {dimension_numbers = #tpu.dot_dimension_numbers<[1], [0], [0], [1], [0, 0, 1, 1], [], []>} : vector<16x96xf32>, vector<96x256xf32>, vector<16x256xf32> -> vector<16x256xf32>
    %cst_6 = arith.constant dense<0.000000e+00> : vector<16xf32>
    %10 = vector.multi_reduction <add>, %9, %cst_6 [1] : vector<16x256xf32> to vector<16xf32>
    %11 = vector.shape_cast %10 : vector<16xf32> to vector<16x1xf32>
    %12 = arith.addf %1, %11 : vector<16x1xf32>
    %13 = arith.mulf %9, %9 : vector<16x256xf32>
    %cst_7 = arith.constant dense<0.000000e+00> : vector<16xf32>
    %14 = vector.multi_reduction <add>, %13, %cst_7 [1] : vector<16x256xf32> to vector<16xf32>
    %15 = vector.shape_cast %14 : vector<16xf32> to vector<16x1xf32>
    %16 = arith.addf %2, %15 : vector<16x1xf32>
    %c1 = arith.constant 1 : index
    %c0_8 = arith.constant 0 : index
    %c0_9 = arith.constant 0 : index
    %17 = vector.load %arg1[%c1, %c0_8, %c0_9] : memref<2x32x384xf32, #tpu.memory_space<vmem>>, vector<1x32x384xf32>
    %18 = vector.shape_cast %17 : vector<1x32x384xf32> to vector<32x384xf32>
    %19 = vector.extract_strided_slice %18 {offsets = [0, 0], sizes = [32, 256], strides = [1, 1]} : vector<32x384xf32> to vector<32x256xf32>
    %20 = vector.extract_strided_slice %18 {offsets = [0, 16], sizes = [32, 256], strides = [1, 1]} : vector<32x384xf32> to vector<32x256xf32>
    %21 = vector.extract_strided_slice %18 {offsets = [0, 32], sizes = [32, 256], strides = [1, 1]} : vector<32x384xf32> to vector<32x256xf32>
    %22 = tpu.concatenate %19, %20, %21 in 0 : vector<32x256xf32>, vector<32x256xf32>, vector<32x256xf32> -> vector<96x256xf32>
    %cst_10 = arith.constant dense<0.000000e+00> : vector<16x256xf32>
    %23 = tpu.matmul %0, %22, %cst_10 {dimension_numbers = #tpu.dot_dimension_numbers<[1], [0], [0], [1], [0, 0, 1, 1], [], []>} : vector<16x96xf32>, vector<96x256xf32>, vector<16x256xf32> -> vector<16x256xf32>
    %cst_11 = arith.constant dense<0.000000e+00> : vector<16xf32>
    %24 = vector.multi_reduction <add>, %23, %cst_11 [1] : vector<16x256xf32> to vector<16xf32>
    %25 = vector.shape_cast %24 : vector<16xf32> to vector<16x1xf32>
    %26 = arith.addf %12, %25 : vector<16x1xf32>
    %27 = arith.mulf %23, %23 : vector<16x256xf32>
    %cst_12 = arith.constant dense<0.000000e+00> : vector<16xf32>
    %28 = vector.multi_reduction <add>, %27, %cst_12 [1] : vector<16x256xf32> to vector<16xf32>
    %29 = vector.shape_cast %28 : vector<16xf32> to vector<16x1xf32>
    %30 = arith.addf %16, %29 : vector<16x1xf32>
    %31 = tpu.concatenate %26, %30 in 1 : vector<16x1xf32>, vector<16x1xf32> -> vector<16x2xf32>
    %c0_13 = arith.constant 0 : index
    %c0_14 = arith.constant 0 : index
    %c0_15 = arith.constant 0 : index
    %32 = vector.load %arg3[%c0_13, %c0_14, %c0_15] : memref<1x16x2xf32, #tpu.memory_space<vmem>>, vector<1x16x2xf32>
    %33 = vector.shape_cast %32 : vector<1x16x2xf32> to vector<16x2xf32>
    %34 = vector.shape_cast %31 : vector<16x2xf32> to vector<1x16x2xf32>
    tpu.vector_store %arg3[%c0_13, %c0_14, %c0_15], %34 {strides = array<i32>} : memref<1x16x2xf32, #tpu.memory_space<vmem>>, vector<1x16x2xf32>,
    return
  }
  func.func @transform_0(%arg0: i32) -> (i32, i32, i32) {
    %c0_i32 = arith.constant 0 : i32
    %c0_i32_0 = arith.constant 0 : i32
    %c0_i32_1 = arith.constant 0 : i32
    return %arg0, %c0_i32, %c0_i32_0 : i32, i32, i32
  }
  func.func @transform_1(%arg0: i32) -> (i32, i32) {
    %c0_i32 = arith.constant 0 : i32
    %c0_i32_0 = arith.constant 0 : i32
    %c0_i32_1 = arith.constant 0 : i32
    return %c0_i32, %c0_i32_0 : i32, i32
  }
  func.func @transform_2(%arg0: i32) -> (i32, i32, i32) {
    %c0_i32 = arith.constant 0 : i32
    %c0_i32_0 = arith.constant 0 : i32
    %c0_i32_1 = arith.constant 0 : i32
    return %arg0, %c0_i32, %c0_i32_0 : i32, i32, i32
  }
}

module attributes {stable_mosaic.version = 11 : i64} {
  func.func @_apply_kernel(%arg0: i32, %arg1: memref<2x32x384xf32, #tpu.memory_space<vmem>>, %arg2: memref<16x96xf32, #tpu.memory_space<vmem>>, %arg3: memref<16x1xf32, #tpu.memory_space<vmem>>, %arg4: memref<16x1xf32, #tpu.memory_space<vmem>>, %arg5: memref<2x16x384xf32, #tpu.memory_space<vmem>>) attributes {dimension_semantics = [#tpu.dimension_semantics<parallel>], iteration_bounds = array<i64: 1>, scalar_prefetch = 0 : i64, scratch_operands = 0 : i64, tpu.core_type = #tpu.core_type<tc>, window_params = [{transform_indices = @transform_0, window_bounds = array<i64: 2, 32, 384>}, {pipeline_mode = #tpu.pipeline_mode<synchronous>, transform_indices = @transform_1, window_bounds = array<i64: 16, 96>}, {pipeline_mode = #tpu.pipeline_mode<synchronous>, transform_indices = @transform_2, window_bounds = array<i64: 16, 1>}, {pipeline_mode = #tpu.pipeline_mode<synchronous>, transform_indices = @transform_3, window_bounds = array<i64: 16, 1>}, {transform_indices = @transform_4, window_bounds = array<i64: 2, 16, 384>}]} {
    %c0 = arith.constant 0 : index
    %c0_0 = arith.constant 0 : index
    %0 = vector.load %arg2[%c0, %c0_0] : memref<16x96xf32, #tpu.memory_space<vmem>>, vector<16x96xf32>
    %c0_1 = arith.constant 0 : index
    %c0_2 = arith.constant 0 : index
    %1 = vector.load %arg3[%c0_1, %c0_2] : memref<16x1xf32, #tpu.memory_space<vmem>>, vector<16x1xf32>
    %c0_3 = arith.constant 0 : index
    %c0_4 = arith.constant 0 : index
    %2 = vector.load %arg4[%c0_3, %c0_4] : memref<16x1xf32, #tpu.memory_space<vmem>>, vector<16x1xf32>
    %c0_5 = arith.constant 0 : index
    %c0_6 = arith.constant 0 : index
    %c0_7 = arith.constant 0 : index
    %3 = vector.load %arg1[%c0_5, %c0_6, %c0_7] : memref<2x32x384xf32, #tpu.memory_space<vmem>>, vector<1x32x384xf32>
    %4 = vector.shape_cast %3 : vector<1x32x384xf32> to vector<32x384xf32>
    %5 = vector.extract_strided_slice %4 {offsets = [0, 0], sizes = [32, 256], strides = [1, 1]} : vector<32x384xf32> to vector<32x256xf32>
    %6 = vector.extract_strided_slice %4 {offsets = [0, 16], sizes = [32, 256], strides = [1, 1]} : vector<32x384xf32> to vector<32x256xf32>
    %7 = vector.extract_strided_slice %4 {offsets = [0, 32], sizes = [32, 256], strides = [1, 1]} : vector<32x384xf32> to vector<32x256xf32>
    %8 = tpu.concatenate %5, %6, %7 in 0 : vector<32x256xf32>, vector<32x256xf32>, vector<32x256xf32> -> vector<96x256xf32>
    %cst = arith.constant dense<0.000000e+00> : vector<16x256xf32>
    %9 = tpu.matmul %0, %8, %cst {dimension_numbers = #tpu.dot_dimension_numbers<[1], [0], [0], [1], [0, 0, 1, 1], [], []>} : vector<16x96xf32>, vector<96x256xf32>, vector<16x256xf32> -> vector<16x256xf32>
    %10 = vector.broadcast %1 : vector<16x1xf32> to vector<16x256xf32>
    %11 = arith.mulf %9, %10 : vector<16x256xf32>
    %12 = vector.broadcast %2 : vector<16x1xf32> to vector<16x256xf32>
    %13 = arith.addf %11, %12 : vector<16x256xf32>
    %cst_8 = arith.constant 0.000000e+00 : f32
    %14 = vector.broadcast %cst_8 : f32 to vector<16x256xf32>
    %15 = arith.maximumf %13, %14 : vector<16x256xf32>
    %cst_9 = arith.constant 0.000000e+00 : f32
    %16 = vector.broadcast %cst_9 : f32 to vector<16x16xf32>
    %cst_10 = arith.constant 0.000000e+00 : f32
    %17 = vector.broadcast %cst_10 : f32 to vector<16x112xf32>
    %18 = tpu.concatenate %16, %15, %17 in 1 : vector<16x16xf32>, vector<16x256xf32>, vector<16x112xf32> -> vector<16x384xf32>
    %c0_11 = arith.constant 0 : index
    %c0_12 = arith.constant 0 : index
    %c0_13 = arith.constant 0 : index
    %19 = vector.load %arg5[%c0_11, %c0_12, %c0_13] : memref<2x16x384xf32, #tpu.memory_space<vmem>>, vector<1x16x384xf32>
    %20 = vector.shape_cast %19 : vector<1x16x384xf32> to vector<16x384xf32>
    %21 = vector.shape_cast %18 : vector<16x384xf32> to vector<1x16x384xf32>
    tpu.vector_store %arg5[%c0_11, %c0_12, %c0_13], %21 {strides = array<i32>} : memref<2x16x384xf32, #tpu.memory_space<vmem>>, vector<1x16x384xf32>,
    %c1 = arith.constant 1 : index
    %c0_14 = arith.constant 0 : index
    %c0_15 = arith.constant 0 : index
    %22 = vector.load %arg1[%c1, %c0_14, %c0_15] : memref<2x32x384xf32, #tpu.memory_space<vmem>>, vector<1x32x384xf32>
    %23 = vector.shape_cast %22 : vector<1x32x384xf32> to vector<32x384xf32>
    %24 = vector.extract_strided_slice %23 {offsets = [0, 0], sizes = [32, 256], strides = [1, 1]} : vector<32x384xf32> to vector<32x256xf32>
    %25 = vector.extract_strided_slice %23 {offsets = [0, 16], sizes = [32, 256], strides = [1, 1]} : vector<32x384xf32> to vector<32x256xf32>
    %26 = vector.extract_strided_slice %23 {offsets = [0, 32], sizes = [32, 256], strides = [1, 1]} : vector<32x384xf32> to vector<32x256xf32>
    %27 = tpu.concatenate %24, %25, %26 in 0 : vector<32x256xf32>, vector<32x256xf32>, vector<32x256xf32> -> vector<96x256xf32>
    %cst_16 = arith.constant dense<0.000000e+00> : vector<16x256xf32>
    %28 = tpu.matmul %0, %27, %cst_16 {dimension_numbers = #tpu.dot_dimension_numbers<[1], [0], [0], [1], [0, 0, 1, 1], [], []>} : vector<16x96xf32>, vector<96x256xf32>, vector<16x256xf32> -> vector<16x256xf32>
    %29 = vector.broadcast %1 : vector<16x1xf32> to vector<16x256xf32>
    %30 = arith.mulf %28, %29 : vector<16x256xf32>
    %31 = vector.broadcast %2 : vector<16x1xf32> to vector<16x256xf32>
    %32 = arith.addf %30, %31 : vector<16x256xf32>
    %cst_17 = arith.constant 0.000000e+00 : f32
    %33 = vector.broadcast %cst_17 : f32 to vector<16x256xf32>
    %34 = arith.maximumf %32, %33 : vector<16x256xf32>
    %cst_18 = arith.constant 0.000000e+00 : f32
    %35 = vector.broadcast %cst_18 : f32 to vector<16x16xf32>
    %cst_19 = arith.constant 0.000000e+00 : f32
    %36 = vector.broadcast %cst_19 : f32 to vector<16x112xf32>
    %37 = tpu.concatenate %35, %34, %36 in 1 : vector<16x16xf32>, vector<16x256xf32>, vector<16x112xf32> -> vector<16x384xf32>
    %c1_20 = arith.constant 1 : index
    %c0_21 = arith.constant 0 : index
    %c0_22 = arith.constant 0 : index
    %38 = vector.load %arg5[%c1_20, %c0_21, %c0_22] : memref<2x16x384xf32, #tpu.memory_space<vmem>>, vector<1x16x384xf32>
    %39 = vector.shape_cast %38 : vector<1x16x384xf32> to vector<16x384xf32>
    %40 = vector.shape_cast %37 : vector<16x384xf32> to vector<1x16x384xf32>
    tpu.vector_store %arg5[%c1_20, %c0_21, %c0_22], %40 {strides = array<i32>} : memref<2x16x384xf32, #tpu.memory_space<vmem>>, vector<1x16x384xf32>,
    return
  }
  func.func @transform_0(%arg0: i32) -> (i32, i32, i32) {
    %c0_i32 = arith.constant 0 : i32
    %c0_i32_0 = arith.constant 0 : i32
    %c0_i32_1 = arith.constant 0 : i32
    return %arg0, %c0_i32, %c0_i32_0 : i32, i32, i32
  }
  func.func @transform_1(%arg0: i32) -> (i32, i32) {
    %c0_i32 = arith.constant 0 : i32
    %c0_i32_0 = arith.constant 0 : i32
    %c0_i32_1 = arith.constant 0 : i32
    return %c0_i32, %c0_i32_0 : i32, i32
  }
  func.func @transform_2(%arg0: i32) -> (i32, i32) {
    %c0_i32 = arith.constant 0 : i32
    %c0_i32_0 = arith.constant 0 : i32
    %c0_i32_1 = arith.constant 0 : i32
    return %c0_i32, %c0_i32_0 : i32, i32
  }
  func.func @transform_3(%arg0: i32) -> (i32, i32) {
    %c0_i32 = arith.constant 0 : i32
    %c0_i32_0 = arith.constant 0 : i32
    %c0_i32_1 = arith.constant 0 : i32
    return %c0_i32, %c0_i32_0 : i32, i32
  }
  func.func @transform_4(%arg0: i32) -> (i32, i32, i32) {
    %c0_i32 = arith.constant 0 : i32
    %c0_i32_0 = arith.constant 0 : i32
    %c0_i32_1 = arith.constant 0 : i32
    return %arg0, %c0_i32, %c0_i32_0 : i32, i32, i32
  }
}

module attributes {stable_mosaic.version = 11 : i64} {
  func.func @_stats_kernel(%arg0: i32, %arg1: memref<2x16x384xf32, #tpu.memory_space<vmem>>, %arg2: memref<8x48xf32, #tpu.memory_space<vmem>>, %arg3: memref<1x8x2xf32, #tpu.memory_space<vmem>>) attributes {dimension_semantics = [#tpu.dimension_semantics<parallel>], iteration_bounds = array<i64: 1>, scalar_prefetch = 0 : i64, scratch_operands = 0 : i64, tpu.core_type = #tpu.core_type<tc>, window_params = [{transform_indices = @transform_0, window_bounds = array<i64: 2, 16, 384>}, {pipeline_mode = #tpu.pipeline_mode<synchronous>, transform_indices = @transform_1, window_bounds = array<i64: 8, 48>}, {transform_indices = @transform_2, window_bounds = array<i64: 1, 8, 2>}]} {
    %c0 = arith.constant 0 : index
    %c0_0 = arith.constant 0 : index
    %0 = vector.load %arg2[%c0, %c0_0] : memref<8x48xf32, #tpu.memory_space<vmem>>, vector<8x48xf32>
    %cst = arith.constant 0.000000e+00 : f32
    %1 = vector.broadcast %cst : f32 to vector<8x1xf32>
    %cst_1 = arith.constant 0.000000e+00 : f32
    %2 = vector.broadcast %cst_1 : f32 to vector<8x1xf32>
    %c0_2 = arith.constant 0 : index
    %c0_3 = arith.constant 0 : index
    %c0_4 = arith.constant 0 : index
    %3 = vector.load %arg1[%c0_2, %c0_3, %c0_4] : memref<2x16x384xf32, #tpu.memory_space<vmem>>, vector<1x16x384xf32>
    %4 = vector.shape_cast %3 : vector<1x16x384xf32> to vector<16x384xf32>
    %5 = vector.extract_strided_slice %4 {offsets = [0, 0], sizes = [16, 256], strides = [1, 1]} : vector<16x384xf32> to vector<16x256xf32>
    %6 = vector.extract_strided_slice %4 {offsets = [0, 16], sizes = [16, 256], strides = [1, 1]} : vector<16x384xf32> to vector<16x256xf32>
    %7 = vector.extract_strided_slice %4 {offsets = [0, 32], sizes = [16, 256], strides = [1, 1]} : vector<16x384xf32> to vector<16x256xf32>
    %8 = tpu.concatenate %5, %6, %7 in 0 : vector<16x256xf32>, vector<16x256xf32>, vector<16x256xf32> -> vector<48x256xf32>
    %cst_5 = arith.constant dense<0.000000e+00> : vector<8x256xf32>
    %9 = tpu.matmul %0, %8, %cst_5 {dimension_numbers = #tpu.dot_dimension_numbers<[1], [0], [0], [1], [0, 0, 1, 1], [], []>} : vector<8x48xf32>, vector<48x256xf32>, vector<8x256xf32> -> vector<8x256xf32>
    %cst_6 = arith.constant dense<0.000000e+00> : vector<8xf32>
    %10 = vector.multi_reduction <add>, %9, %cst_6 [1] : vector<8x256xf32> to vector<8xf32>
    %11 = vector.shape_cast %10 : vector<8xf32> to vector<8x1xf32>
    %12 = arith.addf %1, %11 : vector<8x1xf32>
    %13 = arith.mulf %9, %9 : vector<8x256xf32>
    %cst_7 = arith.constant dense<0.000000e+00> : vector<8xf32>
    %14 = vector.multi_reduction <add>, %13, %cst_7 [1] : vector<8x256xf32> to vector<8xf32>
    %15 = vector.shape_cast %14 : vector<8xf32> to vector<8x1xf32>
    %16 = arith.addf %2, %15 : vector<8x1xf32>
    %c1 = arith.constant 1 : index
    %c0_8 = arith.constant 0 : index
    %c0_9 = arith.constant 0 : index
    %17 = vector.load %arg1[%c1, %c0_8, %c0_9] : memref<2x16x384xf32, #tpu.memory_space<vmem>>, vector<1x16x384xf32>
    %18 = vector.shape_cast %17 : vector<1x16x384xf32> to vector<16x384xf32>
    %19 = vector.extract_strided_slice %18 {offsets = [0, 0], sizes = [16, 256], strides = [1, 1]} : vector<16x384xf32> to vector<16x256xf32>
    %20 = vector.extract_strided_slice %18 {offsets = [0, 16], sizes = [16, 256], strides = [1, 1]} : vector<16x384xf32> to vector<16x256xf32>
    %21 = vector.extract_strided_slice %18 {offsets = [0, 32], sizes = [16, 256], strides = [1, 1]} : vector<16x384xf32> to vector<16x256xf32>
    %22 = tpu.concatenate %19, %20, %21 in 0 : vector<16x256xf32>, vector<16x256xf32>, vector<16x256xf32> -> vector<48x256xf32>
    %cst_10 = arith.constant dense<0.000000e+00> : vector<8x256xf32>
    %23 = tpu.matmul %0, %22, %cst_10 {dimension_numbers = #tpu.dot_dimension_numbers<[1], [0], [0], [1], [0, 0, 1, 1], [], []>} : vector<8x48xf32>, vector<48x256xf32>, vector<8x256xf32> -> vector<8x256xf32>
    %cst_11 = arith.constant dense<0.000000e+00> : vector<8xf32>
    %24 = vector.multi_reduction <add>, %23, %cst_11 [1] : vector<8x256xf32> to vector<8xf32>
    %25 = vector.shape_cast %24 : vector<8xf32> to vector<8x1xf32>
    %26 = arith.addf %12, %25 : vector<8x1xf32>
    %27 = arith.mulf %23, %23 : vector<8x256xf32>
    %cst_12 = arith.constant dense<0.000000e+00> : vector<8xf32>
    %28 = vector.multi_reduction <add>, %27, %cst_12 [1] : vector<8x256xf32> to vector<8xf32>
    %29 = vector.shape_cast %28 : vector<8xf32> to vector<8x1xf32>
    %30 = arith.addf %16, %29 : vector<8x1xf32>
    %31 = tpu.concatenate %26, %30 in 1 : vector<8x1xf32>, vector<8x1xf32> -> vector<8x2xf32>
    %c0_13 = arith.constant 0 : index
    %c0_14 = arith.constant 0 : index
    %c0_15 = arith.constant 0 : index
    %32 = vector.load %arg3[%c0_13, %c0_14, %c0_15] : memref<1x8x2xf32, #tpu.memory_space<vmem>>, vector<1x8x2xf32>
    %33 = vector.shape_cast %32 : vector<1x8x2xf32> to vector<8x2xf32>
    %34 = vector.shape_cast %31 : vector<8x2xf32> to vector<1x8x2xf32>
    tpu.vector_store %arg3[%c0_13, %c0_14, %c0_15], %34 {strides = array<i32>} : memref<1x8x2xf32, #tpu.memory_space<vmem>>, vector<1x8x2xf32>,
    return
  }
  func.func @transform_0(%arg0: i32) -> (i32, i32, i32) {
    %c0_i32 = arith.constant 0 : i32
    %c0_i32_0 = arith.constant 0 : i32
    %c0_i32_1 = arith.constant 0 : i32
    return %arg0, %c0_i32, %c0_i32_0 : i32, i32, i32
  }
  func.func @transform_1(%arg0: i32) -> (i32, i32) {
    %c0_i32 = arith.constant 0 : i32
    %c0_i32_0 = arith.constant 0 : i32
    %c0_i32_1 = arith.constant 0 : i32
    return %c0_i32, %c0_i32_0 : i32, i32
  }
  func.func @transform_2(%arg0: i32) -> (i32, i32, i32) {
    %c0_i32 = arith.constant 0 : i32
    %c0_i32_0 = arith.constant 0 : i32
    %c0_i32_1 = arith.constant 0 : i32
    return %arg0, %c0_i32, %c0_i32_0 : i32, i32, i32
  }
}

module attributes {stable_mosaic.version = 11 : i64} {
  func.func @_apply_kernel(%arg0: i32, %arg1: memref<2x16x384xf32, #tpu.memory_space<vmem>>, %arg2: memref<8x48xf32, #tpu.memory_space<vmem>>, %arg3: memref<8x1xf32, #tpu.memory_space<vmem>>, %arg4: memref<8x1xf32, #tpu.memory_space<vmem>>, %arg5: memref<2x8x256xf32, #tpu.memory_space<vmem>>) attributes {dimension_semantics = [#tpu.dimension_semantics<parallel>], iteration_bounds = array<i64: 1>, scalar_prefetch = 0 : i64, scratch_operands = 0 : i64, tpu.core_type = #tpu.core_type<tc>, window_params = [{transform_indices = @transform_0, window_bounds = array<i64: 2, 16, 384>}, {pipeline_mode = #tpu.pipeline_mode<synchronous>, transform_indices = @transform_1, window_bounds = array<i64: 8, 48>}, {pipeline_mode = #tpu.pipeline_mode<synchronous>, transform_indices = @transform_2, window_bounds = array<i64: 8, 1>}, {pipeline_mode = #tpu.pipeline_mode<synchronous>, transform_indices = @transform_3, window_bounds = array<i64: 8, 1>}, {transform_indices = @transform_4, window_bounds = array<i64: 2, 8, 256>}]} {
    %c0 = arith.constant 0 : index
    %c0_0 = arith.constant 0 : index
    %0 = vector.load %arg2[%c0, %c0_0] : memref<8x48xf32, #tpu.memory_space<vmem>>, vector<8x48xf32>
    %c0_1 = arith.constant 0 : index
    %c0_2 = arith.constant 0 : index
    %1 = vector.load %arg3[%c0_1, %c0_2] : memref<8x1xf32, #tpu.memory_space<vmem>>, vector<8x1xf32>
    %c0_3 = arith.constant 0 : index
    %c0_4 = arith.constant 0 : index
    %2 = vector.load %arg4[%c0_3, %c0_4] : memref<8x1xf32, #tpu.memory_space<vmem>>, vector<8x1xf32>
    %c0_5 = arith.constant 0 : index
    %c0_6 = arith.constant 0 : index
    %c0_7 = arith.constant 0 : index
    %3 = vector.load %arg1[%c0_5, %c0_6, %c0_7] : memref<2x16x384xf32, #tpu.memory_space<vmem>>, vector<1x16x384xf32>
    %4 = vector.shape_cast %3 : vector<1x16x384xf32> to vector<16x384xf32>
    %5 = vector.extract_strided_slice %4 {offsets = [0, 0], sizes = [16, 256], strides = [1, 1]} : vector<16x384xf32> to vector<16x256xf32>
    %6 = vector.extract_strided_slice %4 {offsets = [0, 16], sizes = [16, 256], strides = [1, 1]} : vector<16x384xf32> to vector<16x256xf32>
    %7 = vector.extract_strided_slice %4 {offsets = [0, 32], sizes = [16, 256], strides = [1, 1]} : vector<16x384xf32> to vector<16x256xf32>
    %8 = tpu.concatenate %5, %6, %7 in 0 : vector<16x256xf32>, vector<16x256xf32>, vector<16x256xf32> -> vector<48x256xf32>
    %cst = arith.constant dense<0.000000e+00> : vector<8x256xf32>
    %9 = tpu.matmul %0, %8, %cst {dimension_numbers = #tpu.dot_dimension_numbers<[1], [0], [0], [1], [0, 0, 1, 1], [], []>} : vector<8x48xf32>, vector<48x256xf32>, vector<8x256xf32> -> vector<8x256xf32>
    %10 = vector.broadcast %1 : vector<8x1xf32> to vector<8x256xf32>
    %11 = arith.mulf %9, %10 : vector<8x256xf32>
    %12 = vector.broadcast %2 : vector<8x1xf32> to vector<8x256xf32>
    %13 = arith.addf %11, %12 : vector<8x256xf32>
    %cst_8 = arith.constant 0.000000e+00 : f32
    %14 = vector.broadcast %cst_8 : f32 to vector<8x256xf32>
    %15 = arith.maximumf %13, %14 : vector<8x256xf32>
    %c0_9 = arith.constant 0 : index
    %c0_10 = arith.constant 0 : index
    %c0_11 = arith.constant 0 : index
    %16 = vector.load %arg5[%c0_9, %c0_10, %c0_11] : memref<2x8x256xf32, #tpu.memory_space<vmem>>, vector<1x8x256xf32>
    %17 = vector.shape_cast %16 : vector<1x8x256xf32> to vector<8x256xf32>
    %18 = vector.shape_cast %15 : vector<8x256xf32> to vector<1x8x256xf32>
    tpu.vector_store %arg5[%c0_9, %c0_10, %c0_11], %18 {strides = array<i32>} : memref<2x8x256xf32, #tpu.memory_space<vmem>>, vector<1x8x256xf32>,
    %c1 = arith.constant 1 : index
    %c0_12 = arith.constant 0 : index
    %c0_13 = arith.constant 0 : index
    %19 = vector.load %arg1[%c1, %c0_12, %c0_13] : memref<2x16x384xf32, #tpu.memory_space<vmem>>, vector<1x16x384xf32>
    %20 = vector.shape_cast %19 : vector<1x16x384xf32> to vector<16x384xf32>
    %21 = vector.extract_strided_slice %20 {offsets = [0, 0], sizes = [16, 256], strides = [1, 1]} : vector<16x384xf32> to vector<16x256xf32>
    %22 = vector.extract_strided_slice %20 {offsets = [0, 16], sizes = [16, 256], strides = [1, 1]} : vector<16x384xf32> to vector<16x256xf32>
    %23 = vector.extract_strided_slice %20 {offsets = [0, 32], sizes = [16, 256], strides = [1, 1]} : vector<16x384xf32> to vector<16x256xf32>
    %24 = tpu.concatenate %21, %22, %23 in 0 : vector<16x256xf32>, vector<16x256xf32>, vector<16x256xf32> -> vector<48x256xf32>
    %cst_14 = arith.constant dense<0.000000e+00> : vector<8x256xf32>
    %25 = tpu.matmul %0, %24, %cst_14 {dimension_numbers = #tpu.dot_dimension_numbers<[1], [0], [0], [1], [0, 0, 1, 1], [], []>} : vector<8x48xf32>, vector<48x256xf32>, vector<8x256xf32> -> vector<8x256xf32>
    %26 = vector.broadcast %1 : vector<8x1xf32> to vector<8x256xf32>
    %27 = arith.mulf %25, %26 : vector<8x256xf32>
    %28 = vector.broadcast %2 : vector<8x1xf32> to vector<8x256xf32>
    %29 = arith.addf %27, %28 : vector<8x256xf32>
    %cst_15 = arith.constant 0.000000e+00 : f32
    %30 = vector.broadcast %cst_15 : f32 to vector<8x256xf32>
    %31 = arith.maximumf %29, %30 : vector<8x256xf32>
    %c1_16 = arith.constant 1 : index
    %c0_17 = arith.constant 0 : index
    %c0_18 = arith.constant 0 : index
    %32 = vector.load %arg5[%c1_16, %c0_17, %c0_18] : memref<2x8x256xf32, #tpu.memory_space<vmem>>, vector<1x8x256xf32>
    %33 = vector.shape_cast %32 : vector<1x8x256xf32> to vector<8x256xf32>
    %34 = vector.shape_cast %31 : vector<8x256xf32> to vector<1x8x256xf32>
    tpu.vector_store %arg5[%c1_16, %c0_17, %c0_18], %34 {strides = array<i32>} : memref<2x8x256xf32, #tpu.memory_space<vmem>>, vector<1x8x256xf32>,
    return
  }
  func.func @transform_0(%arg0: i32) -> (i32, i32, i32) {
    %c0_i32 = arith.constant 0 : i32
    %c0_i32_0 = arith.constant 0 : i32
    %c0_i32_1 = arith.constant 0 : i32
    return %arg0, %c0_i32, %c0_i32_0 : i32, i32, i32
  }
  func.func @transform_1(%arg0: i32) -> (i32, i32) {
    %c0_i32 = arith.constant 0 : i32
    %c0_i32_0 = arith.constant 0 : i32
    %c0_i32_1 = arith.constant 0 : i32
    return %c0_i32, %c0_i32_0 : i32, i32
  }
  func.func @transform_2(%arg0: i32) -> (i32, i32) {
    %c0_i32 = arith.constant 0 : i32
    %c0_i32_0 = arith.constant 0 : i32
    %c0_i32_1 = arith.constant 0 : i32
    return %c0_i32, %c0_i32_0 : i32, i32
  }
  func.func @transform_3(%arg0: i32) -> (i32, i32) {
    %c0_i32 = arith.constant 0 : i32
    %c0_i32_0 = arith.constant 0 : i32
    %c0_i32_1 = arith.constant 0 : i32
    return %c0_i32, %c0_i32_0 : i32, i32
  }
  func.func @transform_4(%arg0: i32) -> (i32, i32, i32) {
    %c0_i32 = arith.constant 0 : i32
    %c0_i32_0 = arith.constant 0 : i32
    %c0_i32_1 = arith.constant 0 : i32
    return %arg0, %c0_i32, %c0_i32_0 : i32, i32, i32
  }
}

</mosaic_0001>

<bundles_post_ra>
// kernel: _lambda_.7
= control target key start
LH: loop header
LB: loop body
LE: loop exit
PB: predicated region body
PF: predicated region fallthrough
CT: control target
= control target key end

     0   :  { %s708_s27 = smov 64   ;;  %s709_s28 = smov 32   ;;  %v713_v15 = vmov 0.0   ;;  %v714_v16 = vmov 0   ;;  %vm42_vm0 = vcmask 523264   ;;  %vm53_vm1 = vcmask 261120   ;;  %s1025_s0 = inlined_call_operand.vmem [shape: f32[2,8,512], index: 0, kind: input, shape index: {}]   ;;  %s1026_s2 = inlined_call_operand.vmem [shape: f32[32,1], index: 2, kind: input, shape index: {}]   ;;  %s1027_s3 = inlined_call_operand.vmem [shape: f32[32,1], index: 3, kind: input, shape index: {}]   ;;  %s1028_s1 = inlined_call_operand.vmem [shape: f32[32,72], index: 1, kind: input, shape index: {}]   ;;  %s1029_s4 = inlined_call_operand.vmem [shape: f32[2,32,384], index: 4, kind: output, shape index: {}]  }
   0x1   :  { %v743_v0 = vld [vmem:[%s1025_s0 + $0x8] sm:$0xff]  ;;  %v748_v1 = vld [vmem:[%s1025_s0 + $0x10] sm:$0xff]  ;;  %v753_v2 = vld [vmem:[%s1025_s0] sm:$0xff]  ;;  %s710_s29 = smov 16   ;;  %s711_s8 = smov 112   ;;  %173 = vmatprep.mubr.f32.mxu0 %v713_v15  ;;  %449 = vmatprep.mubr.f32.mxu1 %v713_v15  ;;  %vm64_vm2 = vcmask 130048  }
   0x2   :  { %v626_v3 = vpack.i.bf16 %v748_v1, %v743_v0  ;;  %v760_v4 = vld [vmem:[%s1025_s0 + $0x20] sm:$0xff]  ;;  %v765_v5 = vld [vmem:[%s1025_s0 + $0x28] sm:$0xff]  ;;  %v770_v6 = vld [vmem:[%s1025_s0 + $0x30] sm:$0xff]  ;;  %s712_s9 = smov 96   ;;  %707 = vset.pattern.permute.xlu1 %v714_v16  ;;  %706 = vset.pattern.permute.xlu0 %v714_v16  ;;  %vm76_vm3 = vcmask 916480   ;;  %vm87_vm4 = vcmask 785408  }
   0x3   :  { %v636_v7 = vpack.i.bf16 %v760_v4, %v753_v2  ;;  %v631_v8 = vpack.i.bf16 %v770_v6, %v765_v5  ;;  %v780_v9 = vld [vmem:[%s1025_s0 + $0x18] sm:$0xff]  ;;  %v681_v13 = vpack.i.bf16 %v765_v5, %v743_v0  ;;  %v22_v17 = vld [vmem:[%s1026_s2 + $0x8] sm:$0xff]  ;;  %v21_v18 = vld [vmem:[%s1026_s2] sm:$0xff]  ;;  %vm96_vm5 = vcmask 588800  }
   0x4   :  { %627 = vrot.lane.b32.xlu0 %v626_v3, %s708_s27  ;;  %v671_v10 = vpack.i.bf16 %v780_v9, %v748_v1  ;;  %v788_v11 = vld [vmem:[%s1025_s0 + $0x38] sm:$0xff]  ;;  %v23_v19 = vld [vmem:[%s1026_s2 + $0x10] sm:$0xff]  ;;  %v25_v21 = vld [vmem:[%s1027_s3] sm:$0xff] }
   0x5   :  { %637 = vrot.lane.b32.xlu1 %v636_v7, %s708_s27  ;;  %v676_v12 = vpack.i.bf16 %v788_v11, %v770_v6  ;;  %v691_v14 = vpack.i.bf16 %v788_v11, %v780_v9  ;;  %v24_v20 = vld [vmem:[%s1026_s2 + $0x18] sm:$0xff]  ;;  %v26_v22 = vld [vmem:[%s1027_s3 + $0x8] sm:$0xff]  ;;  %v27_v23 = vld [vmem:[%s1027_s3 + $0x10] sm:$0xff] }
   0x6   :  { %v28_v24 = vld [vmem:[%s1027_s3 + $0x18] sm:$0xff] }
   0x8   :  { %632 = vrot.lane.b32.xlu0 %v631_v8, %s708_s27 }
   0x9   :  { %642 = vrot.lane.b32.xlu1 %v626_v3, %s709_s28 }
   0xc   :  { %647 = vrot.lane.b32.xlu0 %v626_v3, %s710_s29 }
   0xd   :  { %652 = vrot.lane.b32.xlu1 %v631_v8, %s709_s28 }
  0x10   :  { %657 = vrot.lane.b32.xlu0 %v631_v8, %s710_s29 }
  0x11   :  { %662 = vrot.lane.b32.xlu1 %v636_v7, %s709_s28 }
  0x14   :  { %667 = vrot.lane.b32.xlu0 %v636_v7, %s710_s29 }
  0x15   :  { %672 = vrot.lane.b32.xlu1 %v671_v10, %s711_s8 }
  0x18   :  { %677 = vrot.lane.b32.xlu0 %v676_v12, %s711_s8 }
  0x19   :  { %682 = vrot.lane.b32.xlu1 %v681_v13, %s711_s8 }
  0x1c   :  { %687 = vrot.lane.b32.xlu0 %v671_v10, %s712_s9 }
  0x1d   :  { %692 = vrot.lane.b32.xlu1 %v691_v14, %s708_s27 }
  0x20   :  { %697 = vrot.lane.b32.xlu0 %v676_v12, %s712_s9 }
  0x21   :  { %702 = vrot.lane.b32.xlu1 %v681_v13, %s712_s9 }
  0x24   :  { %200 = vperm.xlu0 %706, %v21_v18  }
  0x25   :  { %205 = vperm.xlu1 %707, %v22_v17  }
  0x28   :  { %215 = vperm.xlu0 %706, %v24_v20  }
  0x29   :  { %210 = vperm.xlu1 %707, %v23_v19  }
  0x2c   :  { %233 = vperm.xlu0 %706, %v26_v22  }
  0x2d   :  { %228 = vperm.xlu1 %707, %v25_v21  }
  0x30   :  { %243 = vperm.xlu0 %706, %v28_v24  }
  0x31   :  { %238 = vperm.xlu1 %707, %v27_v23  }
  0x76   :  { %v823_v25 = vpop.permute.xlu0 %627 }
  0x77   :  { %v630_v26 = vunpack.i.h.bf16 %v823_v25  ;;  %v629_v27 = vunpack.i.l.bf16 %v823_v25  ;;  %v638_v28 = vpop.permute.xlu1 %637 }
  0x78   :  { %v639_v29 = vunpack.i.l.bf16 %v638_v28  ;;  %v640_v34 = vunpack.i.h.bf16 %v638_v28 }
  0x79   :  { %v830_v30 = vsel %vm42_vm0, %v629_v27, %v630_v26 }
  0x7a   :  { %v832_v31 = vpop.permute.xlu0 %632  ;;  %v587_v32 = vpack.c.bf16 %v830_v30, %v743_v0  ;;  %v43_v33 = vsel %vm42_vm0, %v639_v29, %v629_v27 }
  0x7b   :  { %v635_v35 = vunpack.i.h.bf16 %v832_v31  ;;  %v634_v36 = vunpack.i.l.bf16 %v832_v31  ;;  %v643_v37 = vpop.permute.xlu1 %642  ;;  %v589_v38 = vpack.c.bf16 %v43_v33, %v753_v2  ;;  %v17_v31 = vld [vmem:[%s1028_s1] sm:$0xff] }
  0x7c   :  { %588 = vmatprep.subr.bf16.mxu0 %v587_v32  ;;  %v645_v39 = vunpack.i.h.bf16 %v643_v37  ;;  %v644_v40 = vunpack.i.l.bf16 %v643_v37 }
  0x7d   :  { %590 = vmatpush1.bf16.msra.mxu0 %v589_v38  ;;  %v843_v41 = vsel %vm42_vm0, %v634_v36, %v635_v35  ;;  %v336_v42 = vsel %vm42_vm0, %v640_v34, %v634_v36 }
  0x7e   :  { %v648_v43 = vpop.permute.xlu0 %647  ;;  %v603_v44 = vpack.c.bf16 %v843_v41, %v765_v5  ;;  %v605_v45 = vpack.c.bf16 %v336_v42, %v760_v4  ;;  %v55_v51 = vsel %vm53_vm1, %v644_v40, %v645_v39 }
  0x7f   :  { %v650_v46 = vunpack.i.h.bf16 %v648_v43  ;;  %v649_v47 = vunpack.i.l.bf16 %v648_v43  ;;  %v653_v48 = vpop.permute.xlu1 %652 }
  0x80   :  { %604 = vmatprep.subr.bf16.mxu1 %v603_v44  ;;  %v655_v49 = vunpack.i.h.bf16 %v653_v48  ;;  %v654_v50 = vunpack.i.l.bf16 %v653_v48 }
  0x81   :  { %606 = vmatpush1.bf16.msra.mxu1 %v605_v45  ;;  %v66_v52 = vsel %vm64_vm2, %v649_v47, %v650_v46 }
  0x82   :  { %v658_v53 = vpop.permute.xlu0 %657  ;;  %v591_v54 = vpack.c.bf16 %v66_v52, %v55_v51  ;;  %v347_v60 = vsel %vm53_vm1, %v654_v50, %v655_v49 }
  0x83   :  { %v660_v55 = vunpack.i.h.bf16 %v658_v53  ;;  %v659_v56 = vunpack.i.l.bf16 %v658_v53  ;;  %v663_v57 = vpop.permute.xlu1 %662 }
  0x84   :  { %592 = vmatprep.subr.bf16.mxu0 %v591_v54  ;;  %v665_v58 = vunpack.i.h.bf16 %v663_v57  ;;  %v664_v59 = vunpack.i.l.bf16 %v663_v57 }
  0x85   :  { %v357_v61 = vsel %vm64_vm2, %v659_v56, %v660_v55 }
  0x86   :  { %v668_v62 = vpop.permute.xlu0 %667  ;;  %v607_v63 = vpack.c.bf16 %v357_v61, %v347_v60  ;;  %v54_v10 = vsel %vm53_vm1, %v664_v59, %v644_v40  ;;  %v346_v13 = vsel %vm53_vm1, %v665_v58, %v654_v50 }
  0x87   :  { %v670_v2 = vunpack.i.h.bf16 %v668_v62  ;;  %v669_v3 = vunpack.i.l.bf16 %v668_v62  ;;  %v673_v4 = vpop.permute.xlu1 %672 }
  0x88   :  { %v675_v7 = vunpack.i.h.bf16 %v673_v4  ;;  %v674_v8 = vunpack.i.l.bf16 %v673_v4  ;;  %608 = vmatprep.subr.bf16.mxu1 %v607_v63 }
  0x89   :  { %v65_v12 = vsel %vm64_vm2, %v669_v3, %v649_v47  ;;  %v356_v14 = vsel %vm64_vm2, %v670_v2, %v659_v56 }
  0x8a   :  { %v678_v16 = vpop.permute.xlu0 %677  ;;  %v593_v17 = vpack.c.bf16 %v65_v12, %v54_v10  ;;  %v609_v18 = vpack.c.bf16 %v356_v14, %v346_v13  ;;  %v78_v19 = vsel %vm76_vm3, %v674_v8, %v675_v7 }
  0x8b   :  { %v680_v20 = vunpack.i.h.bf16 %v678_v16  ;;  %v679_v21 = vunpack.i.l.bf16 %v678_v16  ;;  %v683_v22 = vpop.permute.xlu1 %682  ;;  %v595_v23 = vpack.c.bf16 %v78_v19, %v748_v1 }
  0x8c   :  { %v685_v24 = vunpack.i.h.bf16 %v683_v22  ;;  %v684_v27 = vunpack.i.l.bf16 %v683_v22  ;;  %594 = vmatpush1.bf16.msra.mxu0 %v593_v17  ;;  %610 = vmatpush1.bf16.msra.mxu1 %v609_v18 }
  0x8d   :  { %596 = vmatprep.subr.bf16.mxu0 %v595_v23  ;;  %v368_v28 = vsel %vm76_vm3, %v679_v21, %v680_v20 }
  0x8e   :  { %v688_v29 = vpop.permute.xlu0 %687  ;;  %v77_v32 = vsel %vm76_vm3, %v684_v27, %v674_v8  ;;  %v611_v33 = vpack.c.bf16 %v368_v28, %v770_v6  ;;  %v367_v34 = vsel %vm76_vm3, %v685_v24, %v679_v21 }
  0x8f   :  { %v690_v36 = vunpack.i.h.bf16 %v688_v29  ;;  %v689_v37 = vunpack.i.l.bf16 %v688_v29  ;;  %v693_v38 = vpop.permute.xlu1 %692  ;;  %v597_v39 = vpack.c.bf16 %v77_v32, %v743_v0  ;;  %v613_v40 = vpack.c.bf16 %v367_v34, %v765_v5 }
  0x90   :  { %v694_v42 = vunpack.i.l.bf16 %v693_v38  ;;  %612 = vmatprep.subr.bf16.mxu1 %v611_v33  ;;  %v695_v43 = vunpack.i.h.bf16 %v693_v38 }
  0x91   :  { %598 = vmatpush1.bf16.msra.mxu0 %v597_v39  ;;  %614 = vmatpush1.bf16.msra.mxu1 %v613_v40  ;;  %v89_v44 = vsel %vm87_vm4, %v689_v37, %v690_v36 }
  0x92   :  { %v698_v45 = vpop.permute.xlu0 %697  ;;  %v94_v46 = vsel %vm42_vm0, %v630_v26, %v694_v42  ;;  %v383_v52 = vsel %vm42_vm0, %v635_v35, %v695_v43 }
  0x93   :  { %v700_v47 = vunpack.i.h.bf16 %v698_v45  ;;  %v699_v48 = vunpack.i.l.bf16 %v698_v45  ;;  %v703_v49 = vpop.permute.xlu1 %702  ;;  %v599_v50 = vpack.c.bf16 %v94_v46, %v89_v44 }
  0x94   :  { %v705_v51 = vunpack.i.h.bf16 %v703_v49  ;;  %v704_v0 = vunpack.i.l.bf16 %v703_v49 }
  0x95   :  { %600 = vmatprep.subr.bf16.mxu0 %v599_v50  ;;  %v378_v5 = vsel %vm87_vm4, %v699_v48, %v700_v47 }
  0x96   :  { %v88_v53 = vsel %vm87_vm4, %v704_v0, %v689_v37  ;;  %v615_v54 = vpack.c.bf16 %v383_v52, %v378_v5  ;;  %v377_v25 = vsel %vm87_vm4, %v705_v51, %v699_v48 }
  0x97   :  { %v601_v26 = vpack.c.bf16 %v830_v30, %v88_v53  ;;  %v617_v55 = vpack.c.bf16 %v843_v41, %v377_v25 }
  0x98   :  { %616 = vmatprep.subr.bf16.mxu1 %v615_v54 }
  0x99   :  { %602 = vmatpush1.bf16.msra.mxu0 %v601_v26  ;;  %618 = vmatpush1.bf16.msra.mxu1 %v617_v55 }
  0x9a   :  { %125 = vmatprep.subr.mxu0 %v780_v9  ;;  %401 = vmatprep.subr.mxu1 %v788_v11  ;;  %v18_v9 = vld [vmem:[%s1028_s1 + $0x8] sm:$0xff] }
  0x9d   :  { %126 = vmatpush1.msra.mxu0 %v748_v1  ;;  %402 = vmatpush1.msra.mxu1 %v770_v6  ;;  %v19_v1 = vld [vmem:[%s1028_s1 + $0x10] sm:$0xff]  ;;  %v20_v6 = vld [vmem:[%s1028_s1 + $0x18] sm:$0xff] }
  0x9e   :  { %563 = vmatmul.mubr.msk.f32.vlgmr.msra.gmra.mrb[0].mxu0 %vm96_vm5, %v17_v31  ;;  %571 = vmatmul.mubr.msk.f32.vlgmr.msra.gmra.mrb[0].mxu1 %vm96_vm5, %v17_v31 }
  0x9f   :  { %179 = vmatprep.mubr.f32.mxu0 %v713_v15  ;;  %455 = vmatprep.mubr.f32.mxu1 %v713_v15 }
  0xa2   :  { %564 = vmatmul.mubr.msk.f32.gmra.mrb[2].mxu0 %vm96_vm5, %v18_v9  ;;  %572 = vmatmul.mubr.msk.f32.gmra.mrb[2].mxu1 %vm96_vm5, %v18_v9 }
  0xa3   :  { %185 = vmatprep.mubr.f32.mxu0 %v713_v15  ;;  %461 = vmatprep.mubr.f32.mxu1 %v713_v15  ;;  %v201_v30 = vpop.permute.xlu0 %200 }
  0xa4   :  { %v206_v11 = vpop.permute.xlu1 %205 }
  0xa6   :  { %565 = vmatmul.mubr.msk.f32.gmra.mrb[4].mxu0 %vm96_vm5, %v19_v1  ;;  %573 = vmatmul.mubr.msk.f32.gmra.mrb[4].mxu1 %vm96_vm5, %v19_v1 }
  0xa7   :  { %191 = vmatprep.mubr.f32.mxu0 %v713_v15  ;;  %467 = vmatprep.mubr.f32.mxu1 %v713_v15  ;;  %v907_v41 = vpop.permute.xlu0 %215 }
  0xa8   :  { %v211_v35 = vpop.permute.xlu1 %210 }
  0xaa   :  { %566 = vmatmul.mubr.msk.f32.gmra.mrb[6].mxu0 %vm96_vm5, %v20_v6  ;;  %574 = vmatmul.mubr.msk.f32.gmra.mrb[6].mxu1 %vm96_vm5, %v20_v6 }
  0xab   :  { %v234_v19 = vpop.permute.xlu0 %233 }
  0xac   :  { %v229_v62 = vpop.permute.xlu1 %228 }
  0xaf   :  { %v244_v55 = vpop.permute.xlu0 %243 }
  0xb0   :  { %v239_v46 = vpop.permute.xlu1 %238 }
 0x171   :  { %v175_v56 = vpop.f32.mrb[0].mxu0  ;;  %v451_v57 = vpop.f32.mrb[0].mxu1 }
 0x172   :  { %v218_v58 = vmul.f32 %v201_v30, %v175_v56  ;;  %v177_v59 = vpop.f32.mrb[1].mxu0  ;;  %v474_v60 = vmul.f32 %v451_v57, %v201_v30  ;;  %v453_v61 = vpop.f32.mrb[1].mxu1 }
 0x173   :  { %v219_v63 = vmul.f32 %v201_v30, %v177_v59  ;;  %v475_v2 = vmul.f32 %v453_v61, %v201_v30 }
 0x174   :  { %v246_v3 = vadd.f32 %v229_v62, %v218_v58  ;;  %v482_v10 = vadd.f32 %v474_v60, %v229_v62 }
 0x175   :  { %v247_v15 = vadd.f32 %v229_v62, %v219_v63  ;;  %v181_v4 = vpop.f32.mrb[2].mxu0  ;;  %v457_v7 = vpop.f32.mrb[2].mxu1  ;;  %v483_v17 = vadd.f32 %v475_v2, %v229_v62 }
 0x176   :  { %v254_v8 = vmax.f32 %v246_v3, 0.0  ;;  %v220_v12 = vmul.f32 %v206_v11, %v181_v4  ;;  %v183_v13 = vpop.f32.mrb[3].mxu0  ;;  %v459_v14 = vpop.f32.mrb[3].mxu1  ;;  %v490_v22 = vmax.f32 %v482_v10, 0.0  ;;  %v476_v24 = vmul.f32 %v457_v7, %v206_v11 }
 0x177   :  { %v255_v16 = vmax.f32 %v247_v15, 0.0  ;;  %v221_v18 = vmul.f32 %v206_v11, %v183_v13  ;;  %v491_v29 = vmax.f32 %v483_v17, 0.0  ;;  %v477_v33 = vmul.f32 %v459_v14, %v206_v11 }
 0x178   :  { %270 = vrot.lane.b32.xlu1 %v254_v8, %s710_s29  ;;  %v248_v23 = vadd.f32 %v234_v19, %v220_v12  ;;  %v484_v38 = vadd.f32 %v476_v24, %v234_v19 }
 0x179   :  { %272 = vrot.lane.b32.xlu0 %v255_v16, %s710_s29  ;;  %v187_v20 = vpop.f32.mrb[4].mxu0  ;;  %v463_v21 = vpop.f32.mrb[4].mxu1  ;;  %v249_v32 = vadd.f32 %v234_v19, %v221_v18  ;;  %v485_v44 = vadd.f32 %v477_v33, %v234_v19 }
 0x17a   :  { %v189_v27 = vpop.f32.mrb[5].mxu0  ;;  %v465_v28 = vpop.f32.mrb[5].mxu1  ;;  %v256_v37 = vmax.f32 %v248_v23, 0.0  ;;  %v222_v39 = vmul.f32 %v211_v35, %v187_v20  ;;  %v492_v47 = vmax.f32 %v484_v38, 0.0  ;;  %v478_v49 = vmul.f32 %v463_v21, %v211_v35 }
 0x17b   :  { %v257_v43 = vmax.f32 %v249_v32, 0.0  ;;  %v223_v45 = vmul.f32 %v211_v35, %v189_v27  ;;  %v493_v50 = vmax.f32 %v485_v44, 0.0  ;;  %v479_v0 = vmul.f32 %v465_v28, %v211_v35 }
 0x17c   :  { %506 = vrot.lane.b32.xlu1 %v490_v22, %s710_s29  ;;  %v250_v48 = vadd.f32 %v239_v46, %v222_v39  ;;  %v486_v52 = vadd.f32 %v478_v49, %v239_v46 }
 0x17d   :  { %508 = vrot.lane.b32.xlu0 %v491_v29, %s710_s29  ;;  %v193_v34 = vpop.f32.mrb[6].mxu0  ;;  %v469_v36 = vpop.f32.mrb[6].mxu1  ;;  %v251_v51 = vadd.f32 %v239_v46, %v223_v45  ;;  %v487_v25 = vadd.f32 %v479_v0, %v239_v46 }
 0x17e   :  { %v195_v40 = vpop.f32.mrb[7].mxu0  ;;  %v471_v42 = vpop.f32.mrb[7].mxu1  ;;  %v258_v5 = vmax.f32 %v250_v48, 0.0  ;;  %v224_v53 = vmul.f32 %v907_v41, %v193_v34  ;;  %v494_v31 = vmax.f32 %v486_v52, 0.0  ;;  %v480_v1 = vmul.f32 %v469_v36, %v907_v41 }
 0x17f   :  { %v259_v54 = vmax.f32 %v251_v51, 0.0  ;;  %v225_v26 = vmul.f32 %v907_v41, %v195_v40  ;;  %v495_v6 = vmax.f32 %v487_v25, 0.0  ;;  %v481_v30 = vmul.f32 %v471_v42, %v907_v41 }
 0x180   :  { %274 = vrot.lane.b32.xlu1 %v256_v37, %s710_s29  ;;  %v252_v9 = vadd.f32 %v244_v55, %v224_v53  ;;  %v488_v56 = vadd.f32 %v480_v1, %v244_v55 }
 0x181   :  { %276 = vrot.lane.b32.xlu0 %v257_v43, %s710_s29  ;;  %v253_v11 = vadd.f32 %v244_v55, %v225_v26  ;;  %v489_v58 = vadd.f32 %v481_v30, %v244_v55 }
 0x182   :  { %v260_v35 = vmax.f32 %v252_v9, 0.0  ;;  %v496_v59 = vmax.f32 %v488_v56, 0.0 }
 0x183   :  { %v261_v57 = vmax.f32 %v253_v11, 0.0  ;;  %v497_v60 = vmax.f32 %v489_v58, 0.0 }
 0x184   :  { %510 = vrot.lane.b32.xlu1 %v492_v47, %s710_s29 }
 0x185   :  { %512 = vrot.lane.b32.xlu0 %v493_v50, %s710_s29 }
 0x188   :  { %278 = vrot.lane.b32.xlu1 %v258_v5, %s710_s29 }
 0x189   :  { %280 = vrot.lane.b32.xlu0 %v259_v54, %s710_s29 }
 0x18c   :  { %514 = vrot.lane.b32.xlu1 %v494_v31, %s710_s29 }
 0x18d   :  { %516 = vrot.lane.b32.xlu0 %v495_v6, %s710_s29 }
 0x190   :  { %282 = vrot.lane.b32.xlu1 %v260_v35, %s710_s29 }
 0x191   :  { %284 = vrot.lane.b32.xlu0 %v261_v57, %s710_s29 }
 0x194   :  { %518 = vrot.lane.b32.xlu1 %v496_v59, %s710_s29 }
 0x195   :  { %520 = vrot.lane.b32.xlu0 %v497_v60, %s710_s29 }
 0x1ea   :  { %v271_v61 = vpop.permute.xlu1 %270 }
 0x1eb   :  { %v302_v41 = vsel %vm64_vm2, 0.0, %v271_v61  ;;  %v273_v62 = vpop.permute.xlu0 %272 }
 0x1ec   :  { %310 = vst [vmem:[%s1029_s4] sm:$0xff] %v302_v41  ;;  %v286_v63 = vsel %vm64_vm2, %v271_v61, %v273_v62  ;;  %v306_v2 = vsel %vm64_vm2, %v273_v62, 0.0 }
 0x1ed   :  { %311 = vst [vmem:[%s1029_s4 + $0x8] sm:$0xff] %v286_v63  ;;  %312 = vst [vmem:[%s1029_s4 + $0x10] sm:$0xff] %v306_v2 }
 0x1ee   :  { %v507_v3 = vpop.permute.xlu1 %506 }
 0x1ef   :  { %v538_v15 = vsel %vm64_vm2, 0.0, %v507_v3  ;;  %v509_v4 = vpop.permute.xlu0 %508 }
 0x1f0   :  { %575 = vst [vmem:[%s1029_s4 + $0x60] sm:$0xff] %v538_v15  ;;  %v522_v7 = vsel %vm64_vm2, %v507_v3, %v509_v4  ;;  %v542_v8 = vsel %vm64_vm2, %v509_v4, 0.0 }
 0x1f1   :  { %576 = vst [vmem:[%s1029_s4 + $0x68] sm:$0xff] %v522_v7  ;;  %577 = vst [vmem:[%s1029_s4 + $0x70] sm:$0xff] %v542_v8 }
 0x1f2   :  { %v275_v10 = vpop.permute.xlu1 %274 }
 0x1f3   :  { %v303_v12 = vsel %vm64_vm2, 0.0, %v275_v10  ;;  %v277_v13 = vpop.permute.xlu0 %276 }
 0x1f4   :  { %313 = vst [vmem:[%s1029_s4 + $0x18] sm:$0xff] %v303_v12  ;;  %v287_v14 = vsel %vm64_vm2, %v275_v10, %v277_v13  ;;  %v307_v16 = vsel %vm64_vm2, %v277_v13, 0.0 }
 0x1f5   :  { %314 = vst [vmem:[%s1029_s4 + $0x20] sm:$0xff] %v287_v14  ;;  %315 = vst [vmem:[%s1029_s4 + $0x28] sm:$0xff] %v307_v16 }
 0x1f6   :  { %v511_v17 = vpop.permute.xlu1 %510 }
 0x1f7   :  { %v539_v18 = vsel %vm64_vm2, 0.0, %v511_v17  ;;  %v513_v19 = vpop.permute.xlu0 %512 }
 0x1f8   :  { %578 = vst [vmem:[%s1029_s4 + $0x78] sm:$0xff] %v539_v18  ;;  %v523_v20 = vsel %vm64_vm2, %v511_v17, %v513_v19  ;;  %v543_v21 = vsel %vm64_vm2, %v513_v19, 0.0 }
 0x1f9   :  { %579 = vst [vmem:[%s1029_s4 + $0x80] sm:$0xff] %v523_v20  ;;  %580 = vst [vmem:[%s1029_s4 + $0x88] sm:$0xff] %v543_v21 }
 0x1fa   :  { %v279_v22 = vpop.permute.xlu1 %278 }
 0x1fb   :  { %v304_v23 = vsel %vm64_vm2, 0.0, %v279_v22  ;;  %v281_v24 = vpop.permute.xlu0 %280 }
 0x1fc   :  { %316 = vst [vmem:[%s1029_s4 + $0x30] sm:$0xff] %v304_v23  ;;  %v288_v27 = vsel %vm64_vm2, %v279_v22, %v281_v24  ;;  %v308_v28 = vsel %vm64_vm2, %v281_v24, 0.0 }
 0x1fd   :  { %317 = vst [vmem:[%s1029_s4 + $0x38] sm:$0xff] %v288_v27  ;;  %318 = vst [vmem:[%s1029_s4 + $0x40] sm:$0xff] %v308_v28 }
 0x1fe   :  { %v515_v29 = vpop.permute.xlu1 %514 }
 0x1ff   :  { %v540_v32 = vsel %vm64_vm2, 0.0, %v515_v29  ;;  %v517_v33 = vpop.permute.xlu0 %516 }
 0x200   :  { %581 = vst [vmem:[%s1029_s4 + $0x90] sm:$0xff] %v540_v32  ;;  %v524_v34 = vsel %vm64_vm2, %v515_v29, %v517_v33  ;;  %v544_v36 = vsel %vm64_vm2, %v517_v33, 0.0 }
 0x201   :  { %582 = vst [vmem:[%s1029_s4 + $0x98] sm:$0xff] %v524_v34  ;;  %583 = vst [vmem:[%s1029_s4 + $0xa0] sm:$0xff] %v544_v36 }
 0x202   :  { %v283_v37 = vpop.permute.xlu1 %282 }
 0x203   :  { %v305_v38 = vsel %vm64_vm2, 0.0, %v283_v37  ;;  %v285_v39 = vpop.permute.xlu0 %284 }
 0x204   :  { %319 = vst [vmem:[%s1029_s4 + $0x48] sm:$0xff] %v305_v38  ;;  %v289_v40 = vsel %vm64_vm2, %v283_v37, %v285_v39  ;;  %v309_v42 = vsel %vm64_vm2, %v285_v39, 0.0 }
 0x205   :  { %320 = vst [vmem:[%s1029_s4 + $0x50] sm:$0xff] %v289_v40  ;;  %321 = vst [vmem:[%s1029_s4 + $0x58] sm:$0xff] %v309_v42 }
 0x206   :  { %v519_v43 = vpop.permute.xlu1 %518 }
 0x207   :  { %v541_v44 = vsel %vm64_vm2, 0.0, %v519_v43  ;;  %v521_v45 = vpop.permute.xlu0 %520 }
 0x208   :  { %584 = vst [vmem:[%s1029_s4 + $0xa8] sm:$0xff] %v541_v44  ;;  %v525_v46 = vsel %vm64_vm2, %v519_v43, %v521_v45  ;;  %v545_v47 = vsel %vm64_vm2, %v521_v45, 0.0 }
 0x209   :  { %585 = vst [vmem:[%s1029_s4 + $0xb0] sm:$0xff] %v525_v46  ;;  %586 = vst [vmem:[%s1029_s4 + $0xb8] sm:$0xff] %v545_v47 }

// kernel: _lambda_.6
= control target key start
LH: loop header
LB: loop body
LE: loop exit
PB: predicated region body
PF: predicated region fallthrough
CT: control target
= control target key end

     0   :  { %s560_s21 = smov 64   ;;  %s561_s22 = smov 32   ;;  %v565_v15 = vmov 0.0   ;;  %vm28_vm0 = vcmask 523264   ;;  %vm39_vm1 = vcmask 261120   ;;  %vm50_vm2 = vcmask 130048   ;;  %s737_s0 = inlined_call_operand.vmem [shape: f32[2,8,512], index: 0, kind: input, shape index: {}]   ;;  %s738_s1 = inlined_call_operand.vmem [shape: f32[32,72], index: 1, kind: input, shape index: {}]   ;;  %s739_s2 = inlined_call_operand.vmem [shape: f32[1,32,2], index: 2, kind: output, shape index: {}]  }
   0x1   :  { %v584_v0 = vld [vmem:[%s737_s0 + $0x8] sm:$0xff]  ;;  %v589_v1 = vld [vmem:[%s737_s0 + $0x10] sm:$0xff]  ;;  %v15_v2 = vld [vmem:[%s737_s0] sm:$0xff]  ;;  %s562_s23 = smov 16   ;;  %s563_s28 = smov 112   ;;  %159 = vmatprep.mubr.f32.mxu0 %v565_v15  ;;  %351 = vmatprep.mubr.f32.mxu1 %v565_v15  ;;  %vm62_vm3 = vcmask 916480  }
   0x2   :  { %v480_v3 = vpack.i.bf16 %v589_v1, %v584_v0  ;;  %v599_v4 = vld [vmem:[%s737_s0 + $0x20] sm:$0xff]  ;;  %v604_v5 = vld [vmem:[%s737_s0 + $0x28] sm:$0xff]  ;;  %v609_v6 = vld [vmem:[%s737_s0 + $0x30] sm:$0xff]  ;;  %s564_s29 = smov 96   ;;  %vm73_vm4 = vcmask 785408   ;;  %vm82_vm5 = vcmask 588800  }
   0x3   :  { %v490_v7 = vpack.i.bf16 %v599_v4, %v15_v2  ;;  %v485_v8 = vpack.i.bf16 %v609_v6, %v604_v5  ;;  %v617_v9 = vld [vmem:[%s737_s0 + $0x18] sm:$0xff]  ;;  %v535_v13 = vpack.i.bf16 %v604_v5, %v584_v0  ;;  %vm416_vm6 = vcmask 7168  }
   0x4   :  { %481 = vrot.lane.b32.xlu0 %v480_v3, %s560_s21  ;;  %v525_v10 = vpack.i.bf16 %v617_v9, %v589_v1  ;;  %v624_v11 = vld [vmem:[%s737_s0 + $0x38] sm:$0xff]  ;;  %vm421_vm7 = vcmask 15360  }
   0x5   :  { %491 = vrot.lane.b32.xlu1 %v490_v7, %s560_s21  ;;  %v530_v12 = vpack.i.bf16 %v624_v11, %v609_v6  ;;  %v545_v14 = vpack.i.bf16 %v624_v11, %v617_v9 }
   0x8   :  { %486 = vrot.lane.b32.xlu0 %v485_v8, %s560_s21 }
   0x9   :  { %496 = vrot.lane.b32.xlu1 %v480_v3, %s561_s22 }
   0xc   :  { %501 = vrot.lane.b32.xlu0 %v480_v3, %s562_s23 }
   0xd   :  { %506 = vrot.lane.b32.xlu1 %v485_v8, %s561_s22 }
  0x10   :  { %511 = vrot.lane.b32.xlu0 %v485_v8, %s562_s23 }
  0x11   :  { %516 = vrot.lane.b32.xlu1 %v490_v7, %s561_s22 }
  0x14   :  { %521 = vrot.lane.b32.xlu0 %v490_v7, %s562_s23 }
  0x15   :  { %526 = vrot.lane.b32.xlu1 %v525_v10, %s563_s28 }
  0x18   :  { %531 = vrot.lane.b32.xlu0 %v530_v12, %s563_s28 }
  0x19   :  { %536 = vrot.lane.b32.xlu1 %v535_v13, %s563_s28 }
  0x1c   :  { %541 = vrot.lane.b32.xlu0 %v525_v10, %s564_s29 }
  0x1d   :  { %546 = vrot.lane.b32.xlu1 %v545_v14, %s560_s21 }
  0x20   :  { %551 = vrot.lane.b32.xlu0 %v530_v12, %s564_s29 }
  0x21   :  { %556 = vrot.lane.b32.xlu1 %v535_v13, %s564_s29 }
  0x76   :  { %v634_v16 = vpop.permute.xlu0 %481 }
  0x77   :  { %v484_v17 = vunpack.i.h.bf16 %v634_v16  ;;  %v483_v18 = vunpack.i.l.bf16 %v634_v16  ;;  %v492_v19 = vpop.permute.xlu1 %491 }
  0x78   :  { %v493_v20 = vunpack.i.l.bf16 %v492_v19  ;;  %v494_v25 = vunpack.i.h.bf16 %v492_v19 }
  0x79   :  { %v641_v21 = vsel %vm28_vm0, %v483_v18, %v484_v17 }
  0x7a   :  { %v643_v22 = vpop.permute.xlu0 %486  ;;  %v442_v23 = vpack.c.bf16 %v641_v21, %v584_v0  ;;  %v29_v24 = vsel %vm28_vm0, %v493_v20, %v483_v18 }
  0x7b   :  { %v489_v26 = vunpack.i.h.bf16 %v643_v22  ;;  %v488_v27 = vunpack.i.l.bf16 %v643_v22  ;;  %v497_v28 = vpop.permute.xlu1 %496  ;;  %v444_v29 = vpack.c.bf16 %v29_v24, %v15_v2  ;;  %v11_v22 = vld [vmem:[%s738_s1] sm:$0xff] }
  0x7c   :  { %443 = vmatprep.subr.bf16.mxu0 %v442_v23  ;;  %v499_v30 = vunpack.i.h.bf16 %v497_v28  ;;  %v498_v31 = vunpack.i.l.bf16 %v497_v28 }
  0x7d   :  { %445 = vmatpush1.bf16.msra.mxu0 %v444_v29  ;;  %v653_v32 = vsel %vm28_vm0, %v488_v27, %v489_v26  ;;  %v238_v33 = vsel %vm28_vm0, %v494_v25, %v488_v27 }
  0x7e   :  { %v502_v34 = vpop.permute.xlu0 %501  ;;  %v458_v35 = vpack.c.bf16 %v653_v32, %v604_v5  ;;  %v460_v36 = vpack.c.bf16 %v238_v33, %v599_v4  ;;  %v41_v42 = vsel %vm39_vm1, %v498_v31, %v499_v30 }
  0x7f   :  { %v504_v37 = vunpack.i.h.bf16 %v502_v34  ;;  %v503_v38 = vunpack.i.l.bf16 %v502_v34  ;;  %v507_v39 = vpop.permute.xlu1 %506 }
  0x80   :  { %459 = vmatprep.subr.bf16.mxu1 %v458_v35  ;;  %v509_v40 = vunpack.i.h.bf16 %v507_v39  ;;  %v508_v41 = vunpack.i.l.bf16 %v507_v39 }
  0x81   :  { %461 = vmatpush1.bf16.msra.mxu1 %v460_v36  ;;  %v52_v43 = vsel %vm50_vm2, %v503_v38, %v504_v37 }
  0x82   :  { %v512_v44 = vpop.permute.xlu0 %511  ;;  %v446_v45 = vpack.c.bf16 %v52_v43, %v41_v42  ;;  %v249_v51 = vsel %vm39_vm1, %v508_v41, %v509_v40 }
  0x83   :  { %v514_v46 = vunpack.i.h.bf16 %v512_v44  ;;  %v513_v47 = vunpack.i.l.bf16 %v512_v44  ;;  %v517_v48 = vpop.permute.xlu1 %516 }
  0x84   :  { %447 = vmatprep.subr.bf16.mxu0 %v446_v45  ;;  %v519_v49 = vunpack.i.h.bf16 %v517_v48  ;;  %v518_v50 = vunpack.i.l.bf16 %v517_v48 }
  0x85   :  { %v259_v52 = vsel %vm50_vm2, %v513_v47, %v514_v46 }
  0x86   :  { %v522_v53 = vpop.permute.xlu0 %521  ;;  %v462_v54 = vpack.c.bf16 %v259_v52, %v249_v51  ;;  %v40_v60 = vsel %vm39_vm1, %v518_v50, %v498_v31  ;;  %v248_v62 = vsel %vm39_vm1, %v519_v49, %v508_v41 }
  0x87   :  { %v524_v55 = vunpack.i.h.bf16 %v522_v53  ;;  %v523_v56 = vunpack.i.l.bf16 %v522_v53  ;;  %v527_v57 = vpop.permute.xlu1 %526 }
  0x88   :  { %v529_v58 = vunpack.i.h.bf16 %v527_v57  ;;  %v528_v59 = vunpack.i.l.bf16 %v527_v57  ;;  %463 = vmatprep.subr.bf16.mxu1 %v462_v54 }
  0x89   :  { %v51_v61 = vsel %vm50_vm2, %v523_v56, %v503_v38  ;;  %v258_v63 = vsel %vm50_vm2, %v524_v55, %v513_v47 }
  0x8a   :  { %v532_v2 = vpop.permute.xlu0 %531  ;;  %v448_v3 = vpack.c.bf16 %v51_v61, %v40_v60  ;;  %v464_v4 = vpack.c.bf16 %v258_v63, %v248_v62  ;;  %v64_v7 = vsel %vm62_vm3, %v528_v59, %v529_v58 }
  0x8b   :  { %v534_v8 = vunpack.i.h.bf16 %v532_v2  ;;  %v533_v10 = vunpack.i.l.bf16 %v532_v2  ;;  %v537_v12 = vpop.permute.xlu1 %536  ;;  %v450_v13 = vpack.c.bf16 %v64_v7, %v589_v1 }
  0x8c   :  { %v539_v14 = vunpack.i.h.bf16 %v537_v12  ;;  %v538_v18 = vunpack.i.l.bf16 %v537_v12  ;;  %449 = vmatpush1.bf16.msra.mxu0 %v448_v3  ;;  %465 = vmatpush1.bf16.msra.mxu1 %v464_v4 }
  0x8d   :  { %451 = vmatprep.subr.bf16.mxu0 %v450_v13  ;;  %v270_v19 = vsel %vm62_vm3, %v533_v10, %v534_v8 }
  0x8e   :  { %v542_v20 = vpop.permute.xlu0 %541  ;;  %v63_v23 = vsel %vm62_vm3, %v538_v18, %v528_v59  ;;  %v466_v24 = vpack.c.bf16 %v270_v19, %v609_v6  ;;  %v269_v25 = vsel %vm62_vm3, %v539_v14, %v533_v10 }
  0x8f   :  { %v544_v27 = vunpack.i.h.bf16 %v542_v20  ;;  %v543_v28 = vunpack.i.l.bf16 %v542_v20  ;;  %v547_v29 = vpop.permute.xlu1 %546  ;;  %v452_v30 = vpack.c.bf16 %v63_v23, %v584_v0  ;;  %v468_v31 = vpack.c.bf16 %v269_v25, %v604_v5 }
  0x90   :  { %v548_v33 = vunpack.i.l.bf16 %v547_v29  ;;  %467 = vmatprep.subr.bf16.mxu1 %v466_v24  ;;  %v549_v34 = vunpack.i.h.bf16 %v547_v29 }
  0x91   :  { %453 = vmatpush1.bf16.msra.mxu0 %v452_v30  ;;  %469 = vmatpush1.bf16.msra.mxu1 %v468_v31  ;;  %v75_v35 = vsel %vm73_vm4, %v543_v28, %v544_v27 }
  0x92   :  { %v552_v36 = vpop.permute.xlu0 %551  ;;  %v80_v37 = vsel %vm28_vm0, %v484_v17, %v548_v33  ;;  %v285_v43 = vsel %vm28_vm0, %v489_v26, %v549_v34 }
  0x93   :  { %v554_v38 = vunpack.i.h.bf16 %v552_v36  ;;  %v553_v39 = vunpack.i.l.bf16 %v552_v36  ;;  %v557_v40 = vpop.permute.xlu1 %556  ;;  %v454_v41 = vpack.c.bf16 %v80_v37, %v75_v35 }
  0x94   :  { %v559_v42 = vunpack.i.h.bf16 %v557_v40  ;;  %v558_v0 = vunpack.i.l.bf16 %v557_v40 }
  0x95   :  { %455 = vmatprep.subr.bf16.mxu0 %v454_v41  ;;  %v280_v5 = vsel %vm73_vm4, %v553_v39, %v554_v38 }
  0x96   :  { %v74_v44 = vsel %vm73_vm4, %v558_v0, %v543_v28  ;;  %v470_v45 = vpack.c.bf16 %v285_v43, %v280_v5  ;;  %v279_v16 = vsel %vm73_vm4, %v559_v42, %v553_v39 }
  0x97   :  { %v456_v17 = vpack.c.bf16 %v641_v21, %v74_v44  ;;  %v472_v46 = vpack.c.bf16 %v653_v32, %v279_v16 }
  0x98   :  { %471 = vmatprep.subr.bf16.mxu1 %v470_v45 }
  0x99   :  { %457 = vmatpush1.bf16.msra.mxu0 %v456_v17  ;;  %473 = vmatpush1.bf16.msra.mxu1 %v472_v46 }
  0x9a   :  { %111 = vmatprep.subr.mxu0 %v617_v9  ;;  %303 = vmatprep.subr.mxu1 %v624_v11  ;;  %v12_v9 = vld [vmem:[%s738_s1 + $0x8] sm:$0xff] }
  0x9d   :  { %112 = vmatpush1.msra.mxu0 %v589_v1  ;;  %304 = vmatpush1.msra.mxu1 %v609_v6  ;;  %v13_v1 = vld [vmem:[%s738_s1 + $0x10] sm:$0xff]  ;;  %v14_v6 = vld [vmem:[%s738_s1 + $0x18] sm:$0xff] }
  0x9e   :  { %430 = vmatmul.mubr.msk.f32.vlgmr.msra.gmra.mrb[0].mxu0 %vm82_vm5, %v11_v22  ;;  %438 = vmatmul.mubr.msk.f32.vlgmr.msra.gmra.mrb[0].mxu1 %vm82_vm5, %v11_v22 }
  0x9f   :  { %357 = vmatprep.mubr.f32.mxu1 %v565_v15  ;;  %165 = vmatprep.mubr.f32.mxu0 %v565_v15 }
  0xa2   :  { %439 = vmatmul.mubr.msk.f32.gmra.mrb[2].mxu1 %vm82_vm5, %v12_v9  ;;  %431 = vmatmul.mubr.msk.f32.gmra.mrb[2].mxu0 %vm82_vm5, %v12_v9 }
  0xa3   :  { %171 = vmatprep.mubr.f32.mxu0 %v565_v15  ;;  %363 = vmatprep.mubr.f32.mxu1 %v565_v15 }
  0xa6   :  { %432 = vmatmul.mubr.msk.f32.gmra.mrb[4].mxu0 %vm82_vm5, %v13_v1  ;;  %440 = vmatmul.mubr.msk.f32.gmra.mrb[4].mxu1 %vm82_vm5, %v13_v1 }
  0xa7   :  { %177 = vmatprep.mubr.f32.mxu0 %v565_v15  ;;  %369 = vmatprep.mubr.f32.mxu1 %v565_v15 }
  0xaa   :  { %433 = vmatmul.mubr.msk.f32.gmra.mrb[6].mxu0 %vm82_vm5, %v14_v6  ;;  %441 = vmatmul.mubr.msk.f32.gmra.mrb[6].mxu1 %vm82_vm5, %v14_v6 }
 0x171   :  { %v161_v11 = vpop.f32.mrb[0].mxu0  ;;  %v353_v21 = vpop.f32.mrb[0].mxu1 }
 0x172   :  { %v200_v26 = vmul.f32 %v161_v11, %v161_v11  ;;  %v163_v32 = vpop.f32.mrb[1].mxu0  ;;  %v392_v47 = vmul.f32 %v353_v21, %v353_v21  ;;  %v355_v48 = vpop.f32.mrb[1].mxu1 }
 0x173   :  { %v201_v49 = vmul.f32 %v163_v32, %v163_v32  ;;  %v393_v50 = vmul.f32 %v355_v48, %v355_v48  ;;  %v184_v51 = vadd.f32 %v163_v32, %v161_v11  ;;  %v376_v52 = vadd.f32 %v355_v48, %v353_v21 }
 0x175   :  { %185 = vadd.xlane.f32.xlu0 %v184_v51  ;;  %377 = vadd.xlane.f32.xlu1 %v376_v52  ;;  %v359_v53 = vpop.f32.mrb[2].mxu1  ;;  %v167_v54 = vpop.f32.mrb[2].mxu0  ;;  %v208_v55 = vadd.f32 %v201_v49, %v200_v26  ;;  %v400_v15 = vadd.f32 %v393_v50, %v392_v47 }
 0x176   :  { %v394_v56 = vmul.f32 %v359_v53, %v359_v53  ;;  %v202_v57 = vmul.f32 %v167_v54, %v167_v54  ;;  %v361_v58 = vpop.f32.mrb[3].mxu1  ;;  %v169_v59 = vpop.f32.mrb[3].mxu0 }
 0x177   :  { %v395_v60 = vmul.f32 %v361_v58, %v361_v58  ;;  %v203_v61 = vmul.f32 %v169_v59, %v169_v59  ;;  %v379_v62 = vadd.f32 %v361_v58, %v359_v53  ;;  %v187_v63 = vadd.f32 %v169_v59, %v167_v54 }
 0x179   :  { %209 = vadd.xlane.f32.xlu1 %v208_v55  ;;  %380 = vadd.xlane.f32.xlu0 %v379_v62  ;;  %v211_v2 = vadd.f32 %v203_v61, %v202_v57  ;;  %v173_v3 = vpop.f32.mrb[4].mxu0  ;;  %v365_v4 = vpop.f32.mrb[4].mxu1  ;;  %v403_v7 = vadd.f32 %v395_v60, %v394_v56 }
 0x17a   :  { %v204_v8 = vmul.f32 %v173_v3, %v173_v3  ;;  %v396_v10 = vmul.f32 %v365_v4, %v365_v4  ;;  %v175_v12 = vpop.f32.mrb[5].mxu0  ;;  %v367_v13 = vpop.f32.mrb[5].mxu1 }
 0x17b   :  { %v205_v14 = vmul.f32 %v175_v12, %v175_v12  ;;  %v397_v18 = vmul.f32 %v367_v13, %v367_v13  ;;  %v382_v19 = vadd.f32 %v367_v13, %v365_v4  ;;  %v190_v20 = vadd.f32 %v175_v12, %v173_v3 }
 0x17d   :  { %401 = vadd.xlane.f32.xlu1 %v400_v15  ;;  %212 = vadd.xlane.f32.xlu0 %v211_v2  ;;  %v179_v23 = vpop.f32.mrb[6].mxu0  ;;  %v371_v24 = vpop.f32.mrb[6].mxu1  ;;  %v214_v25 = vadd.f32 %v205_v14, %v204_v8  ;;  %v406_v27 = vadd.f32 %v397_v18, %v396_v10 }
 0x17e   :  { %v206_v28 = vmul.f32 %v179_v23, %v179_v23  ;;  %v181_v29 = vpop.f32.mrb[7].mxu0  ;;  %v398_v30 = vmul.f32 %v371_v24, %v371_v24  ;;  %v373_v31 = vpop.f32.mrb[7].mxu1 }
 0x17f   :  { %v193_v33 = vadd.f32 %v181_v29, %v179_v23  ;;  %v207_v34 = vmul.f32 %v181_v29, %v181_v29  ;;  %v385_v35 = vadd.f32 %v373_v31, %v371_v24  ;;  %v399_v36 = vmul.f32 %v373_v31, %v373_v31 }
 0x181   :  { %404 = vadd.xlane.f32.xlu0 %v403_v7  ;;  %188 = vadd.xlane.f32.xlu1 %v187_v63  ;;  %v217_v37 = vadd.f32 %v207_v34, %v206_v28  ;;  %v409_v38 = vadd.f32 %v399_v36, %v398_v30 }
 0x185   :  { %383 = vadd.xlane.f32.xlu1 %v382_v19  ;;  %191 = vadd.xlane.f32.xlu0 %v190_v20 }
 0x189   :  { %215 = vadd.xlane.f32.xlu1 %v214_v25  ;;  %194 = vadd.xlane.f32.xlu0 %v193_v33 }
 0x18d   :  { %407 = vadd.xlane.f32.xlu1 %v406_v27  ;;  %386 = vadd.xlane.f32.xlu0 %v385_v35 }
 0x191   :  { %218 = vadd.xlane.f32.xlu0 %v217_v37 }
 0x195   :  { %410 = vadd.xlane.f32.xlu0 %v409_v38 }
 0x202   :  { %v186_v39 = vpop.xlane.xlu0 %185  ;;  %v378_v40 = vpop.xlane.xlu1 %377 }
 0x203   :  { %v388_v43 = vadd.f32 %v378_v40, %v186_v39 }
 0x206   :  { %v210_v41 = vpop.xlane.xlu1 %209  ;;  %v381_v42 = vpop.xlane.xlu0 %380 }
 0x20a   :  { %v402_v0 = vpop.xlane.xlu1 %401  ;;  %v213_v5 = vpop.xlane.xlu0 %212 }
 0x20b   :  { %v412_v44 = vadd.f32 %v402_v0, %v210_v41 }
 0x20d   :  { %v417_v45 = vsel %vm416_vm6, %v388_v43, %v412_v44 }
 0x20e   :  { %422 = vst.msk [vmem:[%s739_s2] sm:$0xff] %vm421_vm7, %v417_v45  ;;  %v405_v16 = vpop.xlane.xlu0 %404  ;;  %v189_v17 = vpop.xlane.xlu1 %188 }
 0x20f   :  { %v413_v46 = vadd.f32 %v405_v16, %v213_v5  ;;  %v389_v22 = vadd.f32 %v381_v42, %v189_v17 }
 0x211   :  { %v418_v9 = vsel %vm416_vm6, %v389_v22, %v413_v46 }
 0x212   :  { %423 = vst.msk [vmem:[%s739_s2 + $0x8] sm:$0xff] %vm421_vm7, %v418_v9  ;;  %v384_v1 = vpop.xlane.xlu1 %383  ;;  %v192_v6 = vpop.xlane.xlu0 %191 }
 0x213   :  { %v390_v47 = vadd.f32 %v384_v1, %v192_v6 }
 0x216   :  { %v216_v11 = vpop.xlane.xlu1 %215  ;;  %v195_v21 = vpop.xlane.xlu0 %194 }
 0x21a   :  { %v408_v26 = vpop.xlane.xlu1 %407  ;;  %v387_v32 = vpop.xlane.xlu0 %386 }
 0x21b   :  { %v414_v48 = vadd.f32 %v408_v26, %v216_v11  ;;  %v391_v52 = vadd.f32 %v387_v32, %v195_v21 }
 0x21d   :  { %v419_v49 = vsel %vm416_vm6, %v390_v47, %v414_v48 }
 0x21e   :  { %424 = vst.msk [vmem:[%s739_s2 + $0x10] sm:$0xff] %vm421_vm7, %v419_v49  ;;  %v219_v50 = vpop.xlane.xlu0 %218 }
 0x222   :  { %v411_v51 = vpop.xlane.xlu0 %410 }
 0x223   :  { %v415_v53 = vadd.f32 %v411_v51, %v219_v50 }
 0x225   :  { %v420_v54 = vsel %vm416_vm6, %v391_v52, %v415_v53 }
 0x226   :  { %425 = vst.msk [vmem:[%s739_s2 + $0x18] sm:$0xff] %vm421_vm7, %v420_v54 }

// kernel: _lambda_.8
= control target key start
LH: loop header
LB: loop body
LE: loop exit
PB: predicated region body
PF: predicated region fallthrough
CT: control target
= control target key end

     0   :  { %s621_s25 = smov 112   ;;  %s622_s3 = smov 96   ;;  %v623_v44 = vmov 0.0   ;;  %vm61_vm0 = vcmask 916480   ;;  %vm102_vm1 = vcmask 785408   ;;  %vm424_vm2 = vcmask 7168   ;;  %s779_s0 = inlined_call_operand.vmem [shape: f32[2,32,384], index: 0, kind: input, shape index: {}]   ;;  %s780_s1 = inlined_call_operand.vmem [shape: f32[16,96], index: 1, kind: input, shape index: {}]   ;;  %s781_s2 = inlined_call_operand.vmem [shape: f32[1,16,2], index: 2, kind: output, shape index: {}]  }
   0x1   :  { %v437_v0 = vld [vmem:[%s779_s0 + $0x68] sm:$0xff]  ;;  %v438_v1 = vld [vmem:[%s779_s0 + $0x70] sm:$0xff]  ;;  %v440_v5 = vld [vmem:[%s779_s0 + $0x80] sm:$0xff]  ;;  %189 = vmatprep.mubr.f32.mxu0 %v623_v44  ;;  %391 = vmatprep.mubr.f32.mxu1 %v623_v44  ;;  %vm427_vm3 = vcmask 15360  }
   0x2   :  { %v14_v2 = vld [vmem:[%s779_s0 + $0x8] sm:$0xff]  ;;  %v648_v3 = vpack.i.bf16 %v438_v1, %v437_v0  ;;  %v15_v4 = vld [vmem:[%s779_s0 + $0x10] sm:$0xff]  ;;  %v17_v8 = vld [vmem:[%s779_s0 + $0x20] sm:$0xff]  ;;  %v474_v12 = vpack.c.bf16 %v440_v5, %v437_v0 }
   0x3   :  { %v441_v6 = vld [vmem:[%s779_s0 + $0x88] sm:$0xff]  ;;  %v501_v7 = vpack.i.bf16 %v15_v4, %v14_v2  ;;  %v436_v11 = vld [vmem:[%s779_s0 + $0x60] sm:$0xff]  ;;  %v450_v13 = vpack.c.bf16 %v17_v8, %v14_v2  ;;  %v439_v15 = vld [vmem:[%s779_s0 + $0x78] sm:$0xff] }
   0x4   :  { %v18_v9 = vld [vmem:[%s779_s0 + $0x28] sm:$0xff]  ;;  %512 = vrot.lane.b32.xlu1 %v648_v3, %s621_s25  ;;  %v516_v10 = vpack.i.bf16 %v441_v6, %v440_v5  ;;  %v13_v16 = vld [vmem:[%s779_s0] sm:$0xff]  ;;  %v16_v17 = vld [vmem:[%s779_s0 + $0x18] sm:$0xff]  ;;  %475 = vmatprep.subr.bf16.mxu1 %v474_v12  ;;  %v526_v22 = vpack.i.bf16 %v439_v15, %v436_v11  ;;  %v476_v26 = vpack.c.bf16 %v439_v15, %v436_v11 }
   0x5   :  { %502 = vrot.lane.b32.xlu0 %v501_v7, %s621_s25  ;;  %v506_v14 = vpack.i.bf16 %v18_v9, %v17_v8  ;;  %451 = vmatprep.subr.bf16.mxu0 %v450_v13  ;;  %v452_v18 = vpack.c.bf16 %v16_v17, %v13_v16  ;;  %v23_v19 = vld [vmem:[%s779_s0 + $0x50] sm:$0xff]  ;;  %v24_v20 = vld [vmem:[%s779_s0 + $0x58] sm:$0xff]  ;;  %v521_v27 = vpack.i.bf16 %v16_v17, %v13_v16  ;;  %v445_v28 = vld [vmem:[%s779_s0 + $0xa8] sm:$0xff] }
   0x6   :  { %v20_v21 = vld [vmem:[%s779_s0 + $0x38] sm:$0xff]  ;;  %v446_v23 = vld [vmem:[%s779_s0 + $0xb0] sm:$0xff]  ;;  %v22_v30 = vld [vmem:[%s779_s0 + $0x48] sm:$0xff]  ;;  %477 = vmatpush1.bf16.msra.mxu1 %v476_v26  ;;  %v536_v36 = vpack.i.bf16 %v24_v20, %v23_v19 }
   0x7   :  { %v443_v24 = vld [vmem:[%s779_s0 + $0x98] sm:$0xff]  ;;  %v442_v25 = vld [vmem:[%s779_s0 + $0x90] sm:$0xff]  ;;  %453 = vmatpush1.bf16.msra.mxu0 %v452_v18  ;;  %v21_v31 = vld [vmem:[%s779_s0 + $0x40] sm:$0xff]  ;;  %v454_v33 = vpack.c.bf16 %v23_v19, %v20_v21 }
   0x8   :  { %517 = vrot.lane.b32.xlu1 %v516_v10, %s621_s25  ;;  %v19_v29 = vld [vmem:[%s779_s0 + $0x30] sm:$0xff]  ;;  %v478_v32 = vpack.c.bf16 %v446_v23, %v443_v24  ;;  %v480_v35 = vpack.c.bf16 %v445_v28, %v442_v25  ;;  %v531_v37 = vpack.i.bf16 %v21_v31, %v20_v21  ;;  %v447_v38 = vld [vmem:[%s779_s0 + $0xb8] sm:$0xff]  ;;  %v444_v39 = vld [vmem:[%s779_s0 + $0xa0] sm:$0xff]  ;;  %v556_v42 = vpack.i.bf16 %v445_v28, %v442_v25 }
   0x9   :  { %507 = vrot.lane.b32.xlu0 %v506_v14, %s621_s25  ;;  %v456_v34 = vpack.c.bf16 %v22_v30, %v19_v29  ;;  %455 = vmatprep.subr.bf16.mxu0 %v454_v33  ;;  %v546_v40 = vpack.i.bf16 %v447_v38, %v446_v23  ;;  %v541_v41 = vpack.i.bf16 %v444_v39, %v443_v24 }
   0xa   :  { %479 = vmatprep.subr.bf16.mxu1 %v478_v32  ;;  %v551_v43 = vpack.i.bf16 %v22_v30, %v19_v29 }
   0xb   :  { %457 = vmatpush1.bf16.msra.mxu0 %v456_v34  ;;  %481 = vmatpush1.bf16.msra.mxu1 %v480_v35 }
   0xc   :  { %527 = vrot.lane.b32.xlu1 %v526_v22, %s621_s25 }
   0xd   :  { %522 = vrot.lane.b32.xlu0 %v521_v27, %s621_s25 }
  0x10   :  { %537 = vrot.lane.b32.xlu1 %v536_v36, %s621_s25 }
  0x11   :  { %532 = vrot.lane.b32.xlu0 %v531_v37, %s621_s25 }
  0x14   :  { %547 = vrot.lane.b32.xlu1 %v546_v40, %s621_s25 }
  0x15   :  { %542 = vrot.lane.b32.xlu0 %v541_v41, %s621_s25 }
  0x18   :  { %557 = vrot.lane.b32.xlu1 %v556_v42, %s621_s25 }
  0x19   :  { %552 = vrot.lane.b32.xlu0 %v551_v43, %s621_s25 }
  0x1c   :  { %567 = vrot.lane.b32.xlu1 %v506_v14, %s622_s3 }
  0x1d   :  { %562 = vrot.lane.b32.xlu0 %v501_v7, %s622_s3 }
  0x20   :  { %577 = vrot.lane.b32.xlu1 %v516_v10, %s622_s3 }
  0x21   :  { %572 = vrot.lane.b32.xlu0 %v648_v3, %s622_s3 }
  0x24   :  { %587 = vrot.lane.b32.xlu1 %v526_v22, %s622_s3 }
  0x25   :  { %582 = vrot.lane.b32.xlu0 %v521_v27, %s622_s3 }
  0x28   :  { %597 = vrot.lane.b32.xlu1 %v536_v36, %s622_s3 }
  0x29   :  { %592 = vrot.lane.b32.xlu0 %v531_v37, %s622_s3 }
  0x2c   :  { %607 = vrot.lane.b32.xlu1 %v546_v40, %s622_s3 }
  0x2d   :  { %602 = vrot.lane.b32.xlu0 %v541_v41, %s622_s3 }
  0x30   :  { %617 = vrot.lane.b32.xlu1 %v556_v42, %s622_s3 }
  0x31   :  { %612 = vrot.lane.b32.xlu0 %v551_v43, %s622_s3 }
  0x76   :  { %v513_v45 = vpop.permute.xlu1 %512 }
  0x77   :  { %v515_v46 = vunpack.i.h.bf16 %v513_v45  ;;  %v514_v47 = vunpack.i.l.bf16 %v513_v45  ;;  %v503_v48 = vpop.permute.xlu0 %502 }
  0x78   :  { %v505_v49 = vunpack.i.h.bf16 %v503_v48  ;;  %v504_v50 = vunpack.i.l.bf16 %v503_v48 }
  0x79   :  { %v272_v55 = vsel %vm61_vm0, %v514_v47, %v515_v46 }
  0x7a   :  { %v518_v51 = vpop.permute.xlu1 %517  ;;  %v63_v60 = vsel %vm61_vm0, %v504_v50, %v505_v49 }
  0x7b   :  { %v520_v52 = vunpack.i.h.bf16 %v518_v51  ;;  %v519_v53 = vunpack.i.l.bf16 %v518_v51  ;;  %v508_v54 = vpop.permute.xlu0 %507 }
  0x7c   :  { %v510_v56 = vunpack.i.h.bf16 %v508_v54  ;;  %v509_v57 = vunpack.i.l.bf16 %v508_v54 }
  0x7d   :  { %v274_v58 = vsel %vm61_vm0, %v519_v53, %v520_v52 }
  0x7e   :  { %v528_v59 = vpop.permute.xlu1 %527  ;;  %v65_v61 = vsel %vm61_vm0, %v509_v57, %v510_v56  ;;  %v482_v62 = vpack.c.bf16 %v274_v58, %v272_v55 }
  0x7f   :  { %v530_v63 = vunpack.i.h.bf16 %v528_v59  ;;  %v529_v0 = vunpack.i.l.bf16 %v528_v59  ;;  %v523_v1 = vpop.permute.xlu0 %522  ;;  %v458_v2 = vpack.c.bf16 %v65_v61, %v63_v60 }
  0x80   :  { %v525_v3 = vunpack.i.h.bf16 %v523_v1  ;;  %v524_v4 = vunpack.i.l.bf16 %v523_v1  ;;  %483 = vmatprep.subr.bf16.mxu1 %v482_v62 }
  0x81   :  { %459 = vmatprep.subr.bf16.mxu0 %v458_v2  ;;  %v271_v5 = vsel %vm61_vm0, %v529_v0, %v514_v47  ;;  %v273_v6 = vsel %vm61_vm0, %v530_v63, %v519_v53 }
  0x82   :  { %v538_v7 = vpop.permute.xlu1 %537  ;;  %v62_v8 = vsel %vm61_vm0, %v524_v4, %v504_v50  ;;  %v64_v9 = vsel %vm61_vm0, %v525_v3, %v509_v57  ;;  %v484_v10 = vpack.c.bf16 %v273_v6, %v271_v5 }
  0x83   :  { %v540_v11 = vunpack.i.h.bf16 %v538_v7  ;;  %v539_v12 = vunpack.i.l.bf16 %v538_v7  ;;  %v533_v13 = vpop.permute.xlu0 %532  ;;  %v460_v14 = vpack.c.bf16 %v64_v9, %v62_v8 }
  0x84   :  { %v535_v15 = vunpack.i.h.bf16 %v533_v13  ;;  %v534_v16 = vunpack.i.l.bf16 %v533_v13  ;;  %485 = vmatpush1.bf16.msra.mxu1 %v484_v10 }
  0x85   :  { %461 = vmatpush1.bf16.msra.mxu0 %v460_v14  ;;  %v69_v17 = vsel %vm61_vm0, %v539_v12, %v540_v11 }
  0x86   :  { %v548_v18 = vpop.permute.xlu1 %547  ;;  %v67_v19 = vsel %vm61_vm0, %v534_v16, %v535_v15 }
  0x87   :  { %v550_v20 = vunpack.i.h.bf16 %v548_v18  ;;  %v549_v21 = vunpack.i.l.bf16 %v548_v18  ;;  %v543_v22 = vpop.permute.xlu0 %542  ;;  %v462_v23 = vpack.c.bf16 %v69_v17, %v67_v19 }
  0x88   :  { %v545_v24 = vunpack.i.h.bf16 %v543_v22  ;;  %v544_v25 = vunpack.i.l.bf16 %v543_v22 }
  0x89   :  { %463 = vmatprep.subr.bf16.mxu0 %v462_v23  ;;  %v278_v26 = vsel %vm61_vm0, %v549_v21, %v550_v20 }
  0x8a   :  { %v558_v27 = vpop.permute.xlu1 %557  ;;  %v276_v28 = vsel %vm61_vm0, %v544_v25, %v545_v24 }
  0x8b   :  { %v560_v29 = vunpack.i.h.bf16 %v558_v27  ;;  %v559_v30 = vunpack.i.l.bf16 %v558_v27  ;;  %v553_v31 = vpop.permute.xlu0 %552  ;;  %v486_v32 = vpack.c.bf16 %v278_v26, %v276_v28 }
  0x8c   :  { %v555_v33 = vunpack.i.h.bf16 %v553_v31  ;;  %v554_v34 = vunpack.i.l.bf16 %v553_v31 }
  0x8d   :  { %487 = vmatprep.subr.bf16.mxu1 %v486_v32  ;;  %v275_v35 = vsel %vm61_vm0, %v559_v30, %v544_v25  ;;  %v277_v36 = vsel %vm61_vm0, %v560_v29, %v549_v21 }
  0x8e   :  { %v568_v37 = vpop.permute.xlu1 %567  ;;  %v66_v38 = vsel %vm61_vm0, %v554_v34, %v534_v16  ;;  %v68_v39 = vsel %vm61_vm0, %v555_v33, %v539_v12  ;;  %v488_v40 = vpack.c.bf16 %v277_v36, %v275_v35 }
  0x8f   :  { %v570_v41 = vunpack.i.h.bf16 %v568_v37  ;;  %v569_v42 = vunpack.i.l.bf16 %v568_v37  ;;  %v563_v43 = vpop.permute.xlu0 %562  ;;  %v464_v45 = vpack.c.bf16 %v68_v39, %v66_v38  ;;  %v11_v38 = vld [vmem:[%s780_s1] sm:$0xff]  ;;  %v12_v39 = vld [vmem:[%s780_s1 + $0x8] sm:$0xff] }
  0x90   :  { %v565_v46 = vunpack.i.h.bf16 %v563_v43  ;;  %v564_v47 = vunpack.i.l.bf16 %v563_v43  ;;  %489 = vmatpush1.bf16.msra.mxu1 %v488_v40 }
  0x91   :  { %465 = vmatpush1.bf16.msra.mxu0 %v464_v45  ;;  %v106_v48 = vsel %vm102_vm1, %v569_v42, %v570_v41 }
  0x92   :  { %v578_v49 = vpop.permute.xlu1 %577  ;;  %v104_v50 = vsel %vm102_vm1, %v564_v47, %v565_v46 }
  0x93   :  { %v580_v51 = vunpack.i.h.bf16 %v578_v49  ;;  %v579_v52 = vunpack.i.l.bf16 %v578_v49  ;;  %v573_v53 = vpop.permute.xlu0 %572  ;;  %v466_v54 = vpack.c.bf16 %v106_v48, %v104_v50 }
  0x94   :  { %v575_v55 = vunpack.i.h.bf16 %v573_v53  ;;  %v574_v56 = vunpack.i.l.bf16 %v573_v53 }
  0x95   :  { %467 = vmatprep.subr.bf16.mxu0 %v466_v54  ;;  %v314_v57 = vsel %vm102_vm1, %v579_v52, %v580_v51 }
  0x96   :  { %v588_v58 = vpop.permute.xlu1 %587  ;;  %v312_v59 = vsel %vm102_vm1, %v574_v56, %v575_v55 }
  0x97   :  { %v590_v60 = vunpack.i.h.bf16 %v588_v58  ;;  %v589_v61 = vunpack.i.l.bf16 %v588_v58  ;;  %v583_v62 = vpop.permute.xlu0 %582  ;;  %v490_v63 = vpack.c.bf16 %v314_v57, %v312_v59 }
  0x98   :  { %v585_v0 = vunpack.i.h.bf16 %v583_v62  ;;  %v584_v1 = vunpack.i.l.bf16 %v583_v62 }
  0x99   :  { %491 = vmatprep.subr.bf16.mxu1 %v490_v63  ;;  %v311_v2 = vsel %vm102_vm1, %v589_v61, %v574_v56  ;;  %v313_v3 = vsel %vm102_vm1, %v590_v60, %v579_v52 }
  0x9a   :  { %v598_v4 = vpop.permute.xlu1 %597  ;;  %v103_v5 = vsel %vm102_vm1, %v584_v1, %v564_v47  ;;  %v105_v6 = vsel %vm102_vm1, %v585_v0, %v569_v42  ;;  %v492_v7 = vpack.c.bf16 %v313_v3, %v311_v2 }
  0x9b   :  { %v600_v8 = vunpack.i.h.bf16 %v598_v4  ;;  %v599_v9 = vunpack.i.l.bf16 %v598_v4  ;;  %v593_v10 = vpop.permute.xlu0 %592  ;;  %v468_v11 = vpack.c.bf16 %v105_v6, %v103_v5 }
  0x9c   :  { %v595_v12 = vunpack.i.h.bf16 %v593_v10  ;;  %v594_v13 = vunpack.i.l.bf16 %v593_v10  ;;  %493 = vmatpush1.bf16.msra.mxu1 %v492_v7 }
  0x9d   :  { %469 = vmatpush1.bf16.msra.mxu0 %v468_v11  ;;  %v110_v14 = vsel %vm102_vm1, %v599_v9, %v600_v8 }
  0x9e   :  { %v608_v15 = vpop.permute.xlu1 %607  ;;  %v108_v16 = vsel %vm102_vm1, %v594_v13, %v595_v12 }
  0x9f   :  { %v610_v17 = vunpack.i.h.bf16 %v608_v15  ;;  %v609_v18 = vunpack.i.l.bf16 %v608_v15  ;;  %v603_v19 = vpop.permute.xlu0 %602  ;;  %v470_v20 = vpack.c.bf16 %v110_v14, %v108_v16 }
  0xa0   :  { %v605_v21 = vunpack.i.h.bf16 %v603_v19  ;;  %v604_v22 = vunpack.i.l.bf16 %v603_v19 }
  0xa1   :  { %471 = vmatprep.subr.bf16.mxu0 %v470_v20  ;;  %v318_v23 = vsel %vm102_vm1, %v609_v18, %v610_v17 }
  0xa2   :  { %v618_v24 = vpop.permute.xlu1 %617  ;;  %v316_v25 = vsel %vm102_vm1, %v604_v22, %v605_v21 }
  0xa3   :  { %v620_v26 = vunpack.i.h.bf16 %v618_v24  ;;  %v619_v27 = vunpack.i.l.bf16 %v618_v24  ;;  %v613_v28 = vpop.permute.xlu0 %612  ;;  %v494_v29 = vpack.c.bf16 %v318_v23, %v316_v25 }
  0xa4   :  { %v615_v30 = vunpack.i.h.bf16 %v613_v28  ;;  %v614_v31 = vunpack.i.l.bf16 %v613_v28 }
  0xa5   :  { %495 = vmatprep.subr.bf16.mxu1 %v494_v29  ;;  %v315_v32 = vsel %vm102_vm1, %v619_v27, %v604_v22  ;;  %v317_v33 = vsel %vm102_vm1, %v620_v26, %v609_v18 }
  0xa6   :  { %v107_v34 = vsel %vm102_vm1, %v614_v31, %v594_v13  ;;  %v109_v35 = vsel %vm102_vm1, %v615_v30, %v599_v9  ;;  %v496_v36 = vpack.c.bf16 %v317_v33, %v315_v32 }
  0xa7   :  { %v472_v37 = vpack.c.bf16 %v109_v35, %v107_v34 }
  0xa8   :  { %497 = vmatpush1.bf16.msra.mxu1 %v496_v36 }
  0xa9   :  { %473 = vmatpush1.bf16.msra.mxu0 %v472_v37 }
  0xab   :  { %448 = vmatmul.mubr.msk.f32.vlgmr.msra.gmra.mrb[0].mxu1 %vm102_vm1, %v11_v38 }
  0xac   :  { %434 = vmatmul.mubr.msk.f32.vlgmr.msra.gmra.mrb[0].mxu0 %vm102_vm1, %v11_v38  ;;  %397 = vmatprep.mubr.f32.mxu1 %v623_v44 }
  0xad   :  { %195 = vmatprep.mubr.f32.mxu0 %v623_v44 }
  0xaf   :  { %449 = vmatmul.mubr.msk.f32.gmra.mrb[2].mxu1 %vm102_vm1, %v12_v39 }
  0xb0   :  { %435 = vmatmul.mubr.msk.f32.gmra.mrb[2].mxu0 %vm102_vm1, %v12_v39 }
 0x17e   :  { %v393_v40 = vpop.f32.mrb[0].mxu1 }
 0x17f   :  { %v191_v41 = vpop.f32.mrb[0].mxu0  ;;  %v412_v42 = vmul.f32 %v393_v40, %v393_v40  ;;  %v395_v43 = vpop.f32.mrb[1].mxu1 }
 0x180   :  { %v210_v45 = vmul.f32 %v191_v41, %v191_v41  ;;  %v193_v46 = vpop.f32.mrb[1].mxu0  ;;  %v413_v47 = vmul.f32 %v395_v43, %v395_v43  ;;  %v404_v48 = vadd.f32 %v395_v43, %v393_v40 }
 0x181   :  { %v211_v49 = vmul.f32 %v193_v46, %v193_v46  ;;  %v202_v50 = vadd.f32 %v193_v46, %v191_v41 }
 0x182   :  { %405 = vadd.xlane.f32.xlu1 %v404_v48  ;;  %v399_v44 = vpop.f32.mrb[2].mxu1  ;;  %v416_v51 = vadd.f32 %v413_v47, %v412_v42 }
 0x183   :  { %203 = vadd.xlane.f32.xlu0 %v202_v50  ;;  %v197_v52 = vpop.f32.mrb[2].mxu0  ;;  %v414_v53 = vmul.f32 %v399_v44, %v399_v44  ;;  %v401_v54 = vpop.f32.mrb[3].mxu1  ;;  %v214_v55 = vadd.f32 %v211_v49, %v210_v45 }
 0x184   :  { %v212_v56 = vmul.f32 %v197_v52, %v197_v52  ;;  %v199_v57 = vpop.f32.mrb[3].mxu0  ;;  %v407_v58 = vadd.f32 %v401_v54, %v399_v44  ;;  %v415_v59 = vmul.f32 %v401_v54, %v401_v54 }
 0x185   :  { %v205_v60 = vadd.f32 %v199_v57, %v197_v52  ;;  %v213_v61 = vmul.f32 %v199_v57, %v199_v57 }
 0x186   :  { %v419_v62 = vadd.f32 %v415_v59, %v414_v53 }
 0x187   :  { %215 = vadd.xlane.f32.xlu0 %v214_v55  ;;  %206 = vadd.xlane.f32.xlu1 %v205_v60  ;;  %v217_v63 = vadd.f32 %v213_v61, %v212_v56 }
 0x18b   :  { %408 = vadd.xlane.f32.xlu0 %v407_v58  ;;  %417 = vadd.xlane.f32.xlu1 %v416_v51 }
 0x18f   :  { %218 = vadd.xlane.f32.xlu0 %v217_v63 }
 0x193   :  { %420 = vadd.xlane.f32.xlu0 %v419_v62 }
 0x20f   :  { %v406_v0 = vpop.xlane.xlu1 %405 }
 0x210   :  { %v204_v1 = vpop.xlane.xlu0 %203 }
 0x211   :  { %v410_v6 = vadd.f32 %v406_v0, %v204_v1 }
 0x214   :  { %v216_v2 = vpop.xlane.xlu0 %215  ;;  %v207_v3 = vpop.xlane.xlu1 %206 }
 0x218   :  { %v409_v4 = vpop.xlane.xlu0 %408  ;;  %v418_v5 = vpop.xlane.xlu1 %417 }
 0x219   :  { %v422_v7 = vadd.f32 %v418_v5, %v216_v2  ;;  %v411_v11 = vadd.f32 %v409_v4, %v207_v3 }
 0x21b   :  { %v425_v8 = vsel %vm424_vm2, %v410_v6, %v422_v7 }
 0x21c   :  { %428 = vst.msk [vmem:[%s781_s2] sm:$0xff] %vm427_vm3, %v425_v8  ;;  %v219_v9 = vpop.xlane.xlu0 %218 }
 0x220   :  { %v421_v10 = vpop.xlane.xlu0 %420 }
 0x221   :  { %v423_v12 = vadd.f32 %v421_v10, %v219_v9 }
 0x223   :  { %v426_v13 = vsel %vm424_vm2, %v411_v11, %v423_v12 }
 0x224   :  { %429 = vst.msk [vmem:[%s781_s2 + $0x8] sm:$0xff] %vm427_vm3, %v426_v13 }

// kernel: _lambda_.9
= control target key start
LH: loop header
LB: loop body
LE: loop exit
PB: predicated region body
PF: predicated region fallthrough
CT: control target
= control target key end

     0   :  { %s701_s5 = smov 112   ;;  %s702_s13 = smov 96   ;;  %v703_v44 = vmov 0.0   ;;  %v704_v45 = vmov 0   ;;  %vm71_vm0 = vcmask 916480   ;;  %vm112_vm1 = vcmask 785408   ;;  %s925_s0 = inlined_call_operand.vmem [shape: f32[2,32,384], index: 0, kind: input, shape index: {}]   ;;  %s926_s2 = inlined_call_operand.vmem [shape: f32[16,1], index: 2, kind: input, shape index: {}]   ;;  %s927_s3 = inlined_call_operand.vmem [shape: f32[16,1], index: 3, kind: input, shape index: {}]   ;;  %s928_s1 = inlined_call_operand.vmem [shape: f32[16,96], index: 1, kind: input, shape index: {}]   ;;  %s929_s4 = inlined_call_operand.vmem [shape: f32[2,16,384], index: 4, kind: output, shape index: {}]  }
   0x1   :  { %v507_v0 = vld [vmem:[%s925_s0 + $0x68] sm:$0xff]  ;;  %v508_v1 = vld [vmem:[%s925_s0 + $0x70] sm:$0xff]  ;;  %v510_v5 = vld [vmem:[%s925_s0 + $0x80] sm:$0xff]  ;;  %199 = vmatprep.mubr.f32.mxu0 %v703_v44  ;;  %444 = vmatprep.mubr.f32.mxu1 %v703_v44  ;;  %vm256_vm2 = vcmask 130048  }
   0x2   :  { %v24_v2 = vld [vmem:[%s925_s0 + $0x8] sm:$0xff]  ;;  %v740_v3 = vpack.i.bf16 %v508_v1, %v507_v0  ;;  %v25_v4 = vld [vmem:[%s925_s0 + $0x10] sm:$0xff]  ;;  %v27_v8 = vld [vmem:[%s925_s0 + $0x20] sm:$0xff]  ;;  %v550_v12 = vpack.c.bf16 %v510_v5, %v507_v0  ;;  %700 = vset.pattern.permute.xlu1 %v704_v45  ;;  %699 = vset.pattern.permute.xlu0 %v704_v45 }
   0x3   :  { %v511_v6 = vld [vmem:[%s925_s0 + $0x88] sm:$0xff]  ;;  %v579_v7 = vpack.i.bf16 %v25_v4, %v24_v2  ;;  %v506_v11 = vld [vmem:[%s925_s0 + $0x60] sm:$0xff]  ;;  %v526_v13 = vpack.c.bf16 %v27_v8, %v24_v2  ;;  %v509_v15 = vld [vmem:[%s925_s0 + $0x78] sm:$0xff] }
   0x4   :  { %v28_v9 = vld [vmem:[%s925_s0 + $0x28] sm:$0xff]  ;;  %590 = vrot.lane.b32.xlu1 %v740_v3, %s701_s5  ;;  %v594_v10 = vpack.i.bf16 %v511_v6, %v510_v5  ;;  %v23_v16 = vld [vmem:[%s925_s0] sm:$0xff]  ;;  %v26_v17 = vld [vmem:[%s925_s0 + $0x18] sm:$0xff]  ;;  %551 = vmatprep.subr.bf16.mxu1 %v550_v12  ;;  %v604_v22 = vpack.i.bf16 %v509_v15, %v506_v11  ;;  %v552_v26 = vpack.c.bf16 %v509_v15, %v506_v11 }
   0x5   :  { %580 = vrot.lane.b32.xlu0 %v579_v7, %s701_s5  ;;  %v584_v14 = vpack.i.bf16 %v28_v9, %v27_v8  ;;  %527 = vmatprep.subr.bf16.mxu0 %v526_v13  ;;  %v528_v18 = vpack.c.bf16 %v26_v17, %v23_v16  ;;  %v33_v19 = vld [vmem:[%s925_s0 + $0x50] sm:$0xff]  ;;  %v34_v20 = vld [vmem:[%s925_s0 + $0x58] sm:$0xff]  ;;  %v599_v27 = vpack.i.bf16 %v26_v17, %v23_v16  ;;  %v515_v28 = vld [vmem:[%s925_s0 + $0xa8] sm:$0xff] }
   0x6   :  { %v30_v21 = vld [vmem:[%s925_s0 + $0x38] sm:$0xff]  ;;  %v516_v23 = vld [vmem:[%s925_s0 + $0xb0] sm:$0xff]  ;;  %v32_v30 = vld [vmem:[%s925_s0 + $0x48] sm:$0xff]  ;;  %553 = vmatpush1.bf16.msra.mxu1 %v552_v26  ;;  %v614_v36 = vpack.i.bf16 %v34_v20, %v33_v19 }
   0x7   :  { %v513_v24 = vld [vmem:[%s925_s0 + $0x98] sm:$0xff]  ;;  %v512_v25 = vld [vmem:[%s925_s0 + $0x90] sm:$0xff]  ;;  %529 = vmatpush1.bf16.msra.mxu0 %v528_v18  ;;  %v31_v31 = vld [vmem:[%s925_s0 + $0x40] sm:$0xff]  ;;  %v530_v33 = vpack.c.bf16 %v33_v19, %v30_v21 }
   0x8   :  { %595 = vrot.lane.b32.xlu1 %v594_v10, %s701_s5  ;;  %v29_v29 = vld [vmem:[%s925_s0 + $0x30] sm:$0xff]  ;;  %v554_v32 = vpack.c.bf16 %v516_v23, %v513_v24  ;;  %v556_v35 = vpack.c.bf16 %v515_v28, %v512_v25  ;;  %v609_v37 = vpack.i.bf16 %v31_v31, %v30_v21  ;;  %v517_v38 = vld [vmem:[%s925_s0 + $0xb8] sm:$0xff]  ;;  %v514_v39 = vld [vmem:[%s925_s0 + $0xa0] sm:$0xff]  ;;  %v634_v42 = vpack.i.bf16 %v515_v28, %v512_v25 }
   0x9   :  { %585 = vrot.lane.b32.xlu0 %v584_v14, %s701_s5  ;;  %v532_v34 = vpack.c.bf16 %v32_v30, %v29_v29  ;;  %531 = vmatprep.subr.bf16.mxu0 %v530_v33  ;;  %v624_v40 = vpack.i.bf16 %v517_v38, %v516_v23  ;;  %v619_v41 = vpack.i.bf16 %v514_v39, %v513_v24  ;;  %v20_v46 = vld [vmem:[%s926_s2 + $0x8] sm:$0xff]  ;;  %v19_v47 = vld [vmem:[%s926_s2] sm:$0xff] }
   0xa   :  { %555 = vmatprep.subr.bf16.mxu1 %v554_v32  ;;  %v629_v43 = vpack.i.bf16 %v32_v30, %v29_v29  ;;  %v21_v48 = vld [vmem:[%s927_s3] sm:$0xff]  ;;  %v22_v49 = vld [vmem:[%s927_s3 + $0x8] sm:$0xff] }
   0xb   :  { %533 = vmatpush1.bf16.msra.mxu0 %v532_v34  ;;  %557 = vmatpush1.bf16.msra.mxu1 %v556_v35 }
   0xc   :  { %605 = vrot.lane.b32.xlu1 %v604_v22, %s701_s5 }
   0xd   :  { %600 = vrot.lane.b32.xlu0 %v599_v27, %s701_s5 }
  0x10   :  { %615 = vrot.lane.b32.xlu1 %v614_v36, %s701_s5 }
  0x11   :  { %610 = vrot.lane.b32.xlu0 %v609_v37, %s701_s5 }
  0x14   :  { %625 = vrot.lane.b32.xlu1 %v624_v40, %s701_s5 }
  0x15   :  { %620 = vrot.lane.b32.xlu0 %v619_v41, %s701_s5 }
  0x18   :  { %635 = vrot.lane.b32.xlu1 %v634_v42, %s701_s5 }
  0x19   :  { %630 = vrot.lane.b32.xlu0 %v629_v43, %s701_s5 }
  0x1c   :  { %645 = vrot.lane.b32.xlu1 %v584_v14, %s702_s13 }
  0x1d   :  { %640 = vrot.lane.b32.xlu0 %v579_v7, %s702_s13 }
  0x20   :  { %655 = vrot.lane.b32.xlu1 %v594_v10, %s702_s13 }
  0x21   :  { %650 = vrot.lane.b32.xlu0 %v740_v3, %s702_s13 }
  0x24   :  { %665 = vrot.lane.b32.xlu1 %v604_v22, %s702_s13 }
  0x25   :  { %660 = vrot.lane.b32.xlu0 %v599_v27, %s702_s13 }
  0x28   :  { %675 = vrot.lane.b32.xlu1 %v614_v36, %s702_s13 }
  0x29   :  { %670 = vrot.lane.b32.xlu0 %v609_v37, %s702_s13 }
  0x2c   :  { %685 = vrot.lane.b32.xlu1 %v624_v40, %s702_s13 }
  0x2d   :  { %680 = vrot.lane.b32.xlu0 %v619_v41, %s702_s13 }
  0x30   :  { %695 = vrot.lane.b32.xlu1 %v634_v42, %s702_s13 }
  0x31   :  { %690 = vrot.lane.b32.xlu0 %v629_v43, %s702_s13 }
  0x34   :  { %219 = vperm.xlu1 %700, %v20_v46  }
  0x35   :  { %214 = vperm.xlu0 %699, %v19_v47  }
  0x38   :  { %228 = vperm.xlu1 %700, %v21_v48  }
  0x39   :  { %233 = vperm.xlu0 %699, %v22_v49  }
  0x76   :  { %v591_v50 = vpop.permute.xlu1 %590 }
  0x77   :  { %v593_v51 = vunpack.i.h.bf16 %v591_v50  ;;  %v592_v52 = vunpack.i.l.bf16 %v591_v50  ;;  %v581_v53 = vpop.permute.xlu0 %580 }
  0x78   :  { %v583_v54 = vunpack.i.h.bf16 %v581_v53  ;;  %v582_v55 = vunpack.i.l.bf16 %v581_v53 }
  0x79   :  { %v325_v60 = vsel %vm71_vm0, %v592_v52, %v593_v51 }
  0x7a   :  { %v596_v56 = vpop.permute.xlu1 %595  ;;  %v73_v1 = vsel %vm71_vm0, %v582_v55, %v583_v54 }
  0x7b   :  { %v598_v57 = vunpack.i.h.bf16 %v596_v56  ;;  %v597_v58 = vunpack.i.l.bf16 %v596_v56  ;;  %v586_v59 = vpop.permute.xlu0 %585 }
  0x7c   :  { %v588_v61 = vunpack.i.h.bf16 %v586_v59  ;;  %v587_v62 = vunpack.i.l.bf16 %v586_v59 }
  0x7d   :  { %v327_v63 = vsel %vm71_vm0, %v597_v58, %v598_v57 }
  0x7e   :  { %v606_v0 = vpop.permute.xlu1 %605  ;;  %v75_v2 = vsel %vm71_vm0, %v587_v62, %v588_v61  ;;  %v558_v3 = vpack.c.bf16 %v327_v63, %v325_v60 }
  0x7f   :  { %v608_v4 = vunpack.i.h.bf16 %v606_v0  ;;  %v607_v5 = vunpack.i.l.bf16 %v606_v0  ;;  %v601_v6 = vpop.permute.xlu0 %600  ;;  %v534_v7 = vpack.c.bf16 %v75_v2, %v73_v1 }
  0x80   :  { %v603_v8 = vunpack.i.h.bf16 %v601_v6  ;;  %v602_v9 = vunpack.i.l.bf16 %v601_v6  ;;  %559 = vmatprep.subr.bf16.mxu1 %v558_v3 }
  0x81   :  { %535 = vmatprep.subr.bf16.mxu0 %v534_v7  ;;  %v324_v10 = vsel %vm71_vm0, %v607_v5, %v592_v52  ;;  %v326_v11 = vsel %vm71_vm0, %v608_v4, %v597_v58 }
  0x82   :  { %v616_v12 = vpop.permute.xlu1 %615  ;;  %v72_v13 = vsel %vm71_vm0, %v602_v9, %v582_v55  ;;  %v74_v14 = vsel %vm71_vm0, %v603_v8, %v587_v62  ;;  %v560_v15 = vpack.c.bf16 %v326_v11, %v324_v10 }
  0x83   :  { %v618_v16 = vunpack.i.h.bf16 %v616_v12  ;;  %v617_v17 = vunpack.i.l.bf16 %v616_v12  ;;  %v611_v18 = vpop.permute.xlu0 %610  ;;  %v536_v19 = vpack.c.bf16 %v74_v14, %v72_v13 }
  0x84   :  { %v613_v20 = vunpack.i.h.bf16 %v611_v18  ;;  %v612_v21 = vunpack.i.l.bf16 %v611_v18  ;;  %561 = vmatpush1.bf16.msra.mxu1 %v560_v15 }
  0x85   :  { %537 = vmatpush1.bf16.msra.mxu0 %v536_v19  ;;  %v79_v22 = vsel %vm71_vm0, %v617_v17, %v618_v16 }
  0x86   :  { %v626_v23 = vpop.permute.xlu1 %625  ;;  %v77_v24 = vsel %vm71_vm0, %v612_v21, %v613_v20 }
  0x87   :  { %v628_v25 = vunpack.i.h.bf16 %v626_v23  ;;  %v627_v26 = vunpack.i.l.bf16 %v626_v23  ;;  %v621_v27 = vpop.permute.xlu0 %620  ;;  %v538_v28 = vpack.c.bf16 %v79_v22, %v77_v24 }
  0x88   :  { %v623_v29 = vunpack.i.h.bf16 %v621_v27  ;;  %v622_v30 = vunpack.i.l.bf16 %v621_v27 }
  0x89   :  { %539 = vmatprep.subr.bf16.mxu0 %v538_v28  ;;  %v331_v31 = vsel %vm71_vm0, %v627_v26, %v628_v25 }
  0x8a   :  { %v636_v32 = vpop.permute.xlu1 %635  ;;  %v329_v33 = vsel %vm71_vm0, %v622_v30, %v623_v29 }
  0x8b   :  { %v638_v34 = vunpack.i.h.bf16 %v636_v32  ;;  %v637_v35 = vunpack.i.l.bf16 %v636_v32  ;;  %v631_v36 = vpop.permute.xlu0 %630  ;;  %v562_v37 = vpack.c.bf16 %v331_v31, %v329_v33 }
  0x8c   :  { %v633_v38 = vunpack.i.h.bf16 %v631_v36  ;;  %v632_v39 = vunpack.i.l.bf16 %v631_v36 }
  0x8d   :  { %563 = vmatprep.subr.bf16.mxu1 %v562_v37  ;;  %v328_v40 = vsel %vm71_vm0, %v637_v35, %v622_v30  ;;  %v330_v41 = vsel %vm71_vm0, %v638_v34, %v627_v26 }
  0x8e   :  { %v646_v42 = vpop.permute.xlu1 %645  ;;  %v76_v43 = vsel %vm71_vm0, %v632_v39, %v612_v21  ;;  %v78_v45 = vsel %vm71_vm0, %v633_v38, %v617_v17  ;;  %v564_v46 = vpack.c.bf16 %v330_v41, %v328_v40 }
  0x8f   :  { %v648_v47 = vunpack.i.h.bf16 %v646_v42  ;;  %v647_v48 = vunpack.i.l.bf16 %v646_v42  ;;  %v641_v49 = vpop.permute.xlu0 %640  ;;  %v540_v50 = vpack.c.bf16 %v78_v45, %v76_v43  ;;  %v17_v43 = vld [vmem:[%s928_s1] sm:$0xff]  ;;  %v18_v45 = vld [vmem:[%s928_s1 + $0x8] sm:$0xff]  ;;  %s705_s1 = smov 16  }
  0x90   :  { %v643_v51 = vunpack.i.h.bf16 %v641_v49  ;;  %v642_v52 = vunpack.i.l.bf16 %v641_v49  ;;  %565 = vmatpush1.bf16.msra.mxu1 %v564_v46 }
  0x91   :  { %541 = vmatpush1.bf16.msra.mxu0 %v540_v50  ;;  %v116_v53 = vsel %vm112_vm1, %v647_v48, %v648_v47 }
  0x92   :  { %v656_v54 = vpop.permute.xlu1 %655  ;;  %v114_v55 = vsel %vm112_vm1, %v642_v52, %v643_v51 }
  0x93   :  { %v658_v56 = vunpack.i.h.bf16 %v656_v54  ;;  %v657_v57 = vunpack.i.l.bf16 %v656_v54  ;;  %v651_v58 = vpop.permute.xlu0 %650  ;;  %v542_v59 = vpack.c.bf16 %v116_v53, %v114_v55 }
  0x94   :  { %v653_v60 = vunpack.i.h.bf16 %v651_v58  ;;  %v652_v61 = vunpack.i.l.bf16 %v651_v58 }
  0x95   :  { %543 = vmatprep.subr.bf16.mxu0 %v542_v59  ;;  %v367_v62 = vsel %vm112_vm1, %v657_v57, %v658_v56 }
  0x96   :  { %v666_v63 = vpop.permute.xlu1 %665  ;;  %v365_v0 = vsel %vm112_vm1, %v652_v61, %v653_v60 }
  0x97   :  { %v668_v1 = vunpack.i.h.bf16 %v666_v63  ;;  %v667_v2 = vunpack.i.l.bf16 %v666_v63  ;;  %v661_v3 = vpop.permute.xlu0 %660  ;;  %v566_v4 = vpack.c.bf16 %v367_v62, %v365_v0 }
  0x98   :  { %v663_v5 = vunpack.i.h.bf16 %v661_v3  ;;  %v662_v6 = vunpack.i.l.bf16 %v661_v3 }
  0x99   :  { %567 = vmatprep.subr.bf16.mxu1 %v566_v4  ;;  %v364_v7 = vsel %vm112_vm1, %v667_v2, %v652_v61  ;;  %v366_v8 = vsel %vm112_vm1, %v668_v1, %v657_v57 }
  0x9a   :  { %v676_v9 = vpop.permute.xlu1 %675  ;;  %v113_v10 = vsel %vm112_vm1, %v662_v6, %v642_v52  ;;  %v115_v11 = vsel %vm112_vm1, %v663_v5, %v647_v48  ;;  %v568_v12 = vpack.c.bf16 %v366_v8, %v364_v7 }
  0x9b   :  { %v678_v13 = vunpack.i.h.bf16 %v676_v9  ;;  %v677_v14 = vunpack.i.l.bf16 %v676_v9  ;;  %v671_v15 = vpop.permute.xlu0 %670  ;;  %v544_v16 = vpack.c.bf16 %v115_v11, %v113_v10 }
  0x9c   :  { %v673_v17 = vunpack.i.h.bf16 %v671_v15  ;;  %v672_v18 = vunpack.i.l.bf16 %v671_v15  ;;  %569 = vmatpush1.bf16.msra.mxu1 %v568_v12 }
  0x9d   :  { %545 = vmatpush1.bf16.msra.mxu0 %v544_v16  ;;  %v120_v19 = vsel %vm112_vm1, %v677_v14, %v678_v13 }
  0x9e   :  { %v686_v20 = vpop.permute.xlu1 %685  ;;  %v118_v21 = vsel %vm112_vm1, %v672_v18, %v673_v17 }
  0x9f   :  { %v688_v22 = vunpack.i.h.bf16 %v686_v20  ;;  %v687_v23 = vunpack.i.l.bf16 %v686_v20  ;;  %v681_v24 = vpop.permute.xlu0 %680  ;;  %v546_v25 = vpack.c.bf16 %v120_v19, %v118_v21 }
  0xa0   :  { %v683_v26 = vunpack.i.h.bf16 %v681_v24  ;;  %v682_v27 = vunpack.i.l.bf16 %v681_v24 }
  0xa1   :  { %547 = vmatprep.subr.bf16.mxu0 %v546_v25  ;;  %v371_v28 = vsel %vm112_vm1, %v687_v23, %v688_v22 }
  0xa2   :  { %v696_v29 = vpop.permute.xlu1 %695  ;;  %v369_v30 = vsel %vm112_vm1, %v682_v27, %v683_v26 }
  0xa3   :  { %v698_v31 = vunpack.i.h.bf16 %v696_v29  ;;  %v697_v32 = vunpack.i.l.bf16 %v696_v29  ;;  %v691_v33 = vpop.permute.xlu0 %690  ;;  %v570_v34 = vpack.c.bf16 %v371_v28, %v369_v30 }
  0xa4   :  { %v693_v35 = vunpack.i.h.bf16 %v691_v33  ;;  %v692_v36 = vunpack.i.l.bf16 %v691_v33 }
  0xa5   :  { %571 = vmatprep.subr.bf16.mxu1 %v570_v34  ;;  %v368_v37 = vsel %vm112_vm1, %v697_v32, %v682_v27  ;;  %v370_v38 = vsel %vm112_vm1, %v698_v31, %v687_v23 }
  0xa6   :  { %v117_v39 = vsel %vm112_vm1, %v692_v36, %v672_v18  ;;  %v119_v40 = vsel %vm112_vm1, %v693_v35, %v677_v14  ;;  %v572_v41 = vpack.c.bf16 %v370_v38, %v368_v37 }
  0xa7   :  { %v548_v42 = vpack.c.bf16 %v119_v40, %v117_v39 }
  0xa8   :  { %573 = vmatpush1.bf16.msra.mxu1 %v572_v41 }
  0xa9   :  { %549 = vmatpush1.bf16.msra.mxu0 %v548_v42 }
  0xab   :  { %518 = vmatmul.mubr.msk.f32.vlgmr.msra.gmra.mrb[0].mxu1 %vm112_vm1, %v17_v43 }
  0xac   :  { %504 = vmatmul.mubr.msk.f32.vlgmr.msra.gmra.mrb[0].mxu0 %vm112_vm1, %v17_v43  ;;  %450 = vmatprep.mubr.f32.mxu1 %v703_v44 }
  0xad   :  { %205 = vmatprep.mubr.f32.mxu0 %v703_v44 }
  0xaf   :  { %519 = vmatmul.mubr.msk.f32.gmra.mrb[2].mxu1 %vm112_vm1, %v18_v45 }
  0xb0   :  { %505 = vmatmul.mubr.msk.f32.gmra.mrb[2].mxu0 %vm112_vm1, %v18_v45 }
  0xb3   :  { %v220_v46 = vpop.permute.xlu1 %219 }
  0xb4   :  { %v215_v47 = vpop.permute.xlu0 %214 }
  0xb7   :  { %v229_v54 = vpop.permute.xlu1 %228 }
  0xb8   :  { %v234_v4 = vpop.permute.xlu0 %233 }
 0x17e   :  { %v446_v48 = vpop.f32.mrb[0].mxu1 }
 0x17f   :  { %v201_v49 = vpop.f32.mrb[0].mxu0  ;;  %v448_v50 = vpop.f32.mrb[1].mxu1  ;;  %v457_v52 = vmul.f32 %v446_v48, %v215_v47 }
 0x180   :  { %v222_v51 = vmul.f32 %v215_v47, %v201_v49  ;;  %v203_v53 = vpop.f32.mrb[1].mxu0  ;;  %v458_v56 = vmul.f32 %v448_v50, %v215_v47 }
 0x181   :  { %v223_v55 = vmul.f32 %v215_v47, %v203_v53  ;;  %v461_v62 = vadd.f32 %v457_v52, %v229_v54 }
 0x182   :  { %v236_v57 = vadd.f32 %v229_v54, %v222_v51  ;;  %v452_v58 = vpop.f32.mrb[2].mxu1  ;;  %v462_v2 = vadd.f32 %v458_v56, %v229_v54 }
 0x183   :  { %v237_v59 = vadd.f32 %v229_v54, %v223_v55  ;;  %v207_v60 = vpop.f32.mrb[2].mxu0  ;;  %v454_v44 = vpop.f32.mrb[3].mxu1  ;;  %v465_v5 = vmax.f32 %v461_v62, 0.0  ;;  %v459_v7 = vmul.f32 %v452_v58, %v220_v46 }
 0x184   :  { %v240_v61 = vmax.f32 %v236_v57, 0.0  ;;  %v224_v63 = vmul.f32 %v220_v46, %v207_v60  ;;  %v209_v0 = vpop.f32.mrb[3].mxu0  ;;  %v466_v8 = vmax.f32 %v462_v2, 0.0  ;;  %v460_v10 = vmul.f32 %v454_v44, %v220_v46 }
 0x185   :  { %v241_v1 = vmax.f32 %v237_v59, 0.0  ;;  %v225_v3 = vmul.f32 %v220_v46, %v209_v0  ;;  %v463_v12 = vadd.f32 %v459_v7, %v234_v4 }
 0x186   :  { %248 = vrot.lane.b32.xlu1 %v240_v61, %s705_s1  ;;  %v238_v6 = vadd.f32 %v234_v4, %v224_v63  ;;  %v464_v14 = vadd.f32 %v460_v10, %v234_v4 }
 0x187   :  { %250 = vrot.lane.b32.xlu0 %v241_v1, %s705_s1  ;;  %v239_v9 = vadd.f32 %v234_v4, %v225_v3  ;;  %v467_v15 = vmax.f32 %v463_v12, 0.0 }
 0x188   :  { %v242_v11 = vmax.f32 %v238_v6, 0.0  ;;  %v468_v16 = vmax.f32 %v464_v14, 0.0 }
 0x189   :  { %v243_v13 = vmax.f32 %v239_v9, 0.0 }
 0x18a   :  { %473 = vrot.lane.b32.xlu1 %v465_v5, %s705_s1 }
 0x18b   :  { %475 = vrot.lane.b32.xlu0 %v466_v8, %s705_s1 }
 0x18e   :  { %252 = vrot.lane.b32.xlu1 %v242_v11, %s705_s1 }
 0x18f   :  { %254 = vrot.lane.b32.xlu0 %v243_v13, %s705_s1 }
 0x192   :  { %477 = vrot.lane.b32.xlu1 %v467_v15, %s705_s1 }
 0x193   :  { %479 = vrot.lane.b32.xlu0 %v468_v16, %s705_s1 }
 0x1f8   :  { %v249_v17 = vpop.permute.xlu1 %248 }
 0x1f9   :  { %v265_v18 = vsel %vm256_vm2, 0.0, %v249_v17  ;;  %v251_v19 = vpop.permute.xlu0 %250 }
 0x1fa   :  { %269 = vst [vmem:[%s929_s4] sm:$0xff] %v265_v18  ;;  %v257_v20 = vsel %vm256_vm2, %v249_v17, %v251_v19  ;;  %v267_v21 = vsel %vm256_vm2, %v251_v19, 0.0 }
 0x1fb   :  { %270 = vst [vmem:[%s929_s4 + $0x8] sm:$0xff] %v257_v20  ;;  %271 = vst [vmem:[%s929_s4 + $0x10] sm:$0xff] %v267_v21 }
 0x1fc   :  { %v474_v22 = vpop.permute.xlu1 %473 }
 0x1fd   :  { %v489_v23 = vsel %vm256_vm2, 0.0, %v474_v22  ;;  %v476_v24 = vpop.permute.xlu0 %475 }
 0x1fe   :  { %520 = vst [vmem:[%s929_s4 + $0x30] sm:$0xff] %v489_v23  ;;  %v481_v25 = vsel %vm256_vm2, %v474_v22, %v476_v24  ;;  %v491_v26 = vsel %vm256_vm2, %v476_v24, 0.0 }
 0x1ff   :  { %521 = vst [vmem:[%s929_s4 + $0x38] sm:$0xff] %v481_v25  ;;  %522 = vst [vmem:[%s929_s4 + $0x40] sm:$0xff] %v491_v26 }
 0x200   :  { %v253_v27 = vpop.permute.xlu1 %252 }
 0x201   :  { %v266_v28 = vsel %vm256_vm2, 0.0, %v253_v27  ;;  %v255_v29 = vpop.permute.xlu0 %254 }
 0x202   :  { %272 = vst [vmem:[%s929_s4 + $0x18] sm:$0xff] %v266_v28  ;;  %v258_v30 = vsel %vm256_vm2, %v253_v27, %v255_v29  ;;  %v268_v31 = vsel %vm256_vm2, %v255_v29, 0.0 }
 0x203   :  { %273 = vst [vmem:[%s929_s4 + $0x20] sm:$0xff] %v258_v30  ;;  %274 = vst [vmem:[%s929_s4 + $0x28] sm:$0xff] %v268_v31 }
 0x204   :  { %v478_v32 = vpop.permute.xlu1 %477 }
 0x205   :  { %v490_v33 = vsel %vm256_vm2, 0.0, %v478_v32  ;;  %v480_v34 = vpop.permute.xlu0 %479 }
 0x206   :  { %523 = vst [vmem:[%s929_s4 + $0x48] sm:$0xff] %v490_v33  ;;  %v482_v35 = vsel %vm256_vm2, %v478_v32, %v480_v34  ;;  %v492_v36 = vsel %vm256_vm2, %v480_v34, 0.0 }
 0x207   :  { %524 = vst [vmem:[%s929_s4 + $0x50] sm:$0xff] %v482_v35  ;;  %525 = vst [vmem:[%s929_s4 + $0x58] sm:$0xff] %v492_v36 }

// kernel: _lambda_.10
= control target key start
LH: loop header
LB: loop body
LE: loop exit
PB: predicated region body
PF: predicated region fallthrough
CT: control target
= control target key end

     0   :  { %s388_s25 = smov 112   ;;  %s389_s6 = smov 96   ;;  %v390_v22 = vmov 0.0   ;;  %vm36_vm0 = vcmask 916480   ;;  %vm57_vm1 = vcmask 785408   ;;  %vm66_vm2 = vcmask 392192   ;;  %s464_s0 = inlined_call_operand.vmem [shape: f32[2,16,384], index: 0, kind: input, shape index: {}]   ;;  %s465_s1 = inlined_call_operand.vmem [shape: f32[8,48], index: 1, kind: input, shape index: {}]   ;;  %s466_s2 = inlined_call_operand.vmem [shape: f32[1,8,2], index: 2, kind: output, shape index: {}]  }
   0x1   :  { %v295_v0 = vld [vmem:[%s464_s0 + $0x38] sm:$0xff]  ;;  %v296_v1 = vld [vmem:[%s464_s0 + $0x40] sm:$0xff]  ;;  %v13_v2 = vld [vmem:[%s464_s0 + $0x8] sm:$0xff]  ;;  %134 = vmatprep.mubr.f32.mxu0 %v390_v22  ;;  %268 = vmatprep.mubr.f32.mxu1 %v390_v22  ;;  %vm285_vm3 = vcmask 7168   ;;  %vm287_vm4 = vcmask 15360  }
   0x2   :  { %v338_v3 = vpack.i.bf16 %v296_v1, %v295_v0  ;;  %v14_v4 = vld [vmem:[%s464_s0 + $0x10] sm:$0xff]  ;;  %v299_v6 = vld [vmem:[%s464_s0 + $0x58] sm:$0xff]  ;;  %v16_v8 = vld [vmem:[%s464_s0 + $0x20] sm:$0xff] }
   0x3   :  { %v298_v5 = vld [vmem:[%s464_s0 + $0x50] sm:$0xff]  ;;  %v328_v7 = vpack.i.bf16 %v14_v4, %v13_v2  ;;  %v17_v9 = vld [vmem:[%s464_s0 + $0x28] sm:$0xff]  ;;  %v301_v13 = vpack.c.bf16 %v16_v8, %v13_v2  ;;  %v12_v16 = vld [vmem:[%s464_s0] sm:$0xff] }
   0x4   :  { %339 = vrot.lane.b32.xlu1 %v338_v3, %s388_s25  ;;  %v343_v10 = vpack.i.bf16 %v299_v6, %v298_v5  ;;  %v294_v11 = vld [vmem:[%s464_s0 + $0x30] sm:$0xff]  ;;  %v313_v12 = vpack.c.bf16 %v298_v5, %v295_v0  ;;  %v333_v14 = vpack.i.bf16 %v17_v9, %v16_v8  ;;  %v297_v15 = vld [vmem:[%s464_s0 + $0x48] sm:$0xff]  ;;  %v15_v17 = vld [vmem:[%s464_s0 + $0x18] sm:$0xff] }
   0x5   :  { %329 = vrot.lane.b32.xlu0 %v328_v7, %s388_s25  ;;  %302 = vmatprep.subr.bf16.mxu0 %v301_v13  ;;  %v303_v18 = vpack.c.bf16 %v15_v17, %v12_v16  ;;  %v315_v19 = vpack.c.bf16 %v297_v15, %v294_v11  ;;  %v353_v20 = vpack.i.bf16 %v297_v15, %v294_v11 }
   0x6   :  { %314 = vmatprep.subr.bf16.mxu1 %v313_v12  ;;  %v348_v21 = vpack.i.bf16 %v15_v17, %v12_v16 }
   0x7   :  { %304 = vmatpush1.bf16.msra.mxu0 %v303_v18  ;;  %316 = vmatpush1.bf16.msra.mxu1 %v315_v19  ;;  %v11_v19 = vld [vmem:[%s465_s1] sm:$0xff] }
   0x8   :  { %344 = vrot.lane.b32.xlu1 %v343_v10, %s388_s25 }
   0x9   :  { %334 = vrot.lane.b32.xlu0 %v333_v14, %s388_s25 }
   0xc   :  { %354 = vrot.lane.b32.xlu1 %v353_v20, %s388_s25 }
   0xd   :  { %349 = vrot.lane.b32.xlu0 %v348_v21, %s388_s25 }
  0x10   :  { %364 = vrot.lane.b32.xlu1 %v333_v14, %s389_s6 }
  0x11   :  { %359 = vrot.lane.b32.xlu0 %v328_v7, %s389_s6 }
  0x14   :  { %374 = vrot.lane.b32.xlu1 %v343_v10, %s389_s6 }
  0x15   :  { %369 = vrot.lane.b32.xlu0 %v338_v3, %s389_s6 }
  0x18   :  { %384 = vrot.lane.b32.xlu1 %v353_v20, %s389_s6 }
  0x19   :  { %379 = vrot.lane.b32.xlu0 %v348_v21, %s389_s6 }
  0x76   :  { %v340_v23 = vpop.permute.xlu1 %339 }
  0x77   :  { %v342_v24 = vunpack.i.h.bf16 %v340_v23  ;;  %v341_v25 = vunpack.i.l.bf16 %v340_v23  ;;  %v330_v26 = vpop.permute.xlu0 %329 }
  0x78   :  { %v332_v27 = vunpack.i.h.bf16 %v330_v26  ;;  %v331_v28 = vunpack.i.l.bf16 %v330_v26 }
  0x79   :  { %v177_v33 = vsel %vm36_vm0, %v341_v25, %v342_v24 }
  0x7a   :  { %v345_v29 = vpop.permute.xlu1 %344  ;;  %v38_v38 = vsel %vm36_vm0, %v331_v28, %v332_v27 }
  0x7b   :  { %v347_v30 = vunpack.i.h.bf16 %v345_v29  ;;  %v346_v31 = vunpack.i.l.bf16 %v345_v29  ;;  %v335_v32 = vpop.permute.xlu0 %334 }
  0x7c   :  { %v337_v34 = vunpack.i.h.bf16 %v335_v32  ;;  %v336_v35 = vunpack.i.l.bf16 %v335_v32 }
  0x7d   :  { %v179_v36 = vsel %vm36_vm0, %v346_v31, %v347_v30 }
  0x7e   :  { %v355_v37 = vpop.permute.xlu1 %354  ;;  %v40_v39 = vsel %vm36_vm0, %v336_v35, %v337_v34  ;;  %v317_v40 = vpack.c.bf16 %v179_v36, %v177_v33 }
  0x7f   :  { %v357_v41 = vunpack.i.h.bf16 %v355_v37  ;;  %v356_v42 = vunpack.i.l.bf16 %v355_v37  ;;  %v350_v43 = vpop.permute.xlu0 %349  ;;  %v305_v44 = vpack.c.bf16 %v40_v39, %v38_v38 }
  0x80   :  { %v352_v45 = vunpack.i.h.bf16 %v350_v43  ;;  %v351_v46 = vunpack.i.l.bf16 %v350_v43  ;;  %318 = vmatprep.subr.bf16.mxu1 %v317_v40 }
  0x81   :  { %306 = vmatprep.subr.bf16.mxu0 %v305_v44  ;;  %v176_v47 = vsel %vm36_vm0, %v356_v42, %v341_v25  ;;  %v178_v48 = vsel %vm36_vm0, %v357_v41, %v346_v31 }
  0x82   :  { %v365_v49 = vpop.permute.xlu1 %364  ;;  %v37_v50 = vsel %vm36_vm0, %v351_v46, %v331_v28  ;;  %v39_v51 = vsel %vm36_vm0, %v352_v45, %v336_v35  ;;  %v319_v52 = vpack.c.bf16 %v178_v48, %v176_v47 }
  0x83   :  { %v367_v53 = vunpack.i.h.bf16 %v365_v49  ;;  %v366_v54 = vunpack.i.l.bf16 %v365_v49  ;;  %v360_v55 = vpop.permute.xlu0 %359  ;;  %v307_v56 = vpack.c.bf16 %v39_v51, %v37_v50 }
  0x84   :  { %v362_v57 = vunpack.i.h.bf16 %v360_v55  ;;  %v361_v58 = vunpack.i.l.bf16 %v360_v55  ;;  %320 = vmatpush1.bf16.msra.mxu1 %v319_v52 }
  0x85   :  { %308 = vmatpush1.bf16.msra.mxu0 %v307_v56  ;;  %v61_v59 = vsel %vm57_vm1, %v366_v54, %v367_v53 }
  0x86   :  { %v375_v60 = vpop.permute.xlu1 %374  ;;  %v59_v61 = vsel %vm57_vm1, %v361_v58, %v362_v57 }
  0x87   :  { %v377_v62 = vunpack.i.h.bf16 %v375_v60  ;;  %v376_v63 = vunpack.i.l.bf16 %v375_v60  ;;  %v370_v0 = vpop.permute.xlu0 %369  ;;  %v309_v1 = vpack.c.bf16 %v61_v59, %v59_v61 }
  0x88   :  { %v372_v2 = vunpack.i.h.bf16 %v370_v0  ;;  %v371_v3 = vunpack.i.l.bf16 %v370_v0 }
  0x89   :  { %310 = vmatprep.subr.bf16.mxu0 %v309_v1  ;;  %v199_v4 = vsel %vm57_vm1, %v376_v63, %v377_v62 }
  0x8a   :  { %v385_v5 = vpop.permute.xlu1 %384  ;;  %v197_v6 = vsel %vm57_vm1, %v371_v3, %v372_v2 }
  0x8b   :  { %v387_v7 = vunpack.i.h.bf16 %v385_v5  ;;  %v386_v8 = vunpack.i.l.bf16 %v385_v5  ;;  %v380_v9 = vpop.permute.xlu0 %379  ;;  %v321_v10 = vpack.c.bf16 %v199_v4, %v197_v6 }
  0x8c   :  { %v382_v11 = vunpack.i.h.bf16 %v380_v9  ;;  %v381_v12 = vunpack.i.l.bf16 %v380_v9 }
  0x8d   :  { %322 = vmatprep.subr.bf16.mxu1 %v321_v10  ;;  %v196_v13 = vsel %vm57_vm1, %v386_v8, %v371_v3  ;;  %v198_v14 = vsel %vm57_vm1, %v387_v7, %v376_v63 }
  0x8e   :  { %v58_v15 = vsel %vm57_vm1, %v381_v12, %v361_v58  ;;  %v60_v16 = vsel %vm57_vm1, %v382_v11, %v366_v54  ;;  %v323_v17 = vpack.c.bf16 %v198_v14, %v196_v13 }
  0x8f   :  { %v311_v18 = vpack.c.bf16 %v60_v16, %v58_v15 }
  0x90   :  { %324 = vmatpush1.bf16.msra.mxu1 %v323_v17 }
  0x91   :  { %312 = vmatpush1.bf16.msra.mxu0 %v311_v18 }
  0x93   :  { %300 = vmatmul.mubr.msk.f32.vlgmr.msra.gmra.mrb[0].mxu1 %vm66_vm2, %v11_v19 }
  0x94   :  { %293 = vmatmul.mubr.msk.f32.vlgmr.msra.gmra.mrb[0].mxu0 %vm66_vm2, %v11_v19 }
 0x166   :  { %v270_v20 = vpop.f32.mrb[0].mxu1 }
 0x167   :  { %v136_v21 = vpop.f32.mrb[0].mxu0  ;;  %v279_v22 = vmul.f32 %v270_v20, %v270_v20  ;;  %v272_v23 = vpop.f32.mrb[1].mxu1 }
 0x168   :  { %v145_v24 = vmul.f32 %v136_v21, %v136_v21  ;;  %v138_v25 = vpop.f32.mrb[1].mxu0  ;;  %v275_v26 = vadd.f32 %v272_v23, %v270_v20  ;;  %v280_v27 = vmul.f32 %v272_v23, %v272_v23 }
 0x169   :  { %v141_v28 = vadd.f32 %v138_v25, %v136_v21  ;;  %v146_v29 = vmul.f32 %v138_v25, %v138_v25 }
 0x16a   :  { %v281_v30 = vadd.f32 %v280_v27, %v279_v22 }
 0x16b   :  { %142 = vadd.xlane.f32.xlu0 %v141_v28  ;;  %v147_v31 = vadd.f32 %v146_v29, %v145_v24 }
 0x16d   :  { %148 = vadd.xlane.f32.xlu1 %v147_v31 }
 0x16f   :  { %276 = vadd.xlane.f32.xlu0 %v275_v26 }
 0x173   :  { %282 = vadd.xlane.f32.xlu0 %v281_v30 }
 0x1f8   :  { %v143_v32 = vpop.xlane.xlu0 %142 }
 0x1fa   :  { %v149_v34 = vpop.xlane.xlu1 %148 }
 0x1fc   :  { %v277_v33 = vpop.xlane.xlu0 %276 }
 0x1fd   :  { %v278_v36 = vadd.f32 %v277_v33, %v143_v32 }
 0x200   :  { %v283_v35 = vpop.xlane.xlu0 %282 }
 0x201   :  { %v284_v37 = vadd.f32 %v283_v35, %v149_v34 }
 0x203   :  { %v286_v38 = vsel %vm285_vm3, %v278_v36, %v284_v37 }
 0x204   :  { %288 = vst.msk [vmem:[%s466_s2] sm:$0xff] %vm287_vm4, %v286_v38 }

// kernel: _lambda_.11
= control target key start
LH: loop header
LB: loop body
LE: loop exit
PB: predicated region body
PF: predicated region fallthrough
CT: control target
= control target key end

     0   :  { %s404_s5 = smov 112   ;;  %s405_s14 = smov 96   ;;  %v406_v22 = vmov 0.0   ;;  %v407_v23 = vmov 0   ;;  %vm44_vm0 = vcmask 916480   ;;  %vm65_vm1 = vcmask 785408   ;;  %s506_s0 = inlined_call_operand.vmem [shape: f32[2,16,384], index: 0, kind: input, shape index: {}]   ;;  %s507_s3 = inlined_call_operand.vmem [shape: f32[8,1], index: 3, kind: input, shape index: {}]   ;;  %s508_s2 = inlined_call_operand.vmem [shape: f32[8,1], index: 2, kind: input, shape index: {}]   ;;  %s509_s1 = inlined_call_operand.vmem [shape: f32[8,48], index: 1, kind: input, shape index: {}]   ;;  %s510_s4 = inlined_call_operand.vmem [shape: f32[2,8,256], index: 4, kind: output, shape index: {}]  }
   0x1   :  { %v306_v0 = vld [vmem:[%s506_s0 + $0x38] sm:$0xff]  ;;  %v307_v1 = vld [vmem:[%s506_s0 + $0x40] sm:$0xff]  ;;  %v21_v2 = vld [vmem:[%s506_s0 + $0x8] sm:$0xff]  ;;  %142 = vmatprep.mubr.f32.mxu0 %v406_v22  ;;  %284 = vmatprep.mubr.f32.mxu1 %v406_v22  ;;  %vm74_vm2 = vcmask 392192  }
   0x2   :  { %v352_v3 = vpack.i.bf16 %v307_v1, %v306_v0  ;;  %v22_v4 = vld [vmem:[%s506_s0 + $0x10] sm:$0xff]  ;;  %v310_v6 = vld [vmem:[%s506_s0 + $0x58] sm:$0xff]  ;;  %v24_v8 = vld [vmem:[%s506_s0 + $0x20] sm:$0xff]  ;;  %403 = vset.pattern.permute.xlu1 %v407_v23  ;;  %402 = vset.pattern.permute.xlu0 %v407_v23 }
   0x3   :  { %v309_v5 = vld [vmem:[%s506_s0 + $0x50] sm:$0xff]  ;;  %v342_v7 = vpack.i.bf16 %v22_v4, %v21_v2  ;;  %v25_v9 = vld [vmem:[%s506_s0 + $0x28] sm:$0xff]  ;;  %v314_v13 = vpack.c.bf16 %v24_v8, %v21_v2  ;;  %v20_v16 = vld [vmem:[%s506_s0] sm:$0xff] }
   0x4   :  { %353 = vrot.lane.b32.xlu1 %v352_v3, %s404_s5  ;;  %v357_v10 = vpack.i.bf16 %v310_v6, %v309_v5  ;;  %v305_v11 = vld [vmem:[%s506_s0 + $0x30] sm:$0xff]  ;;  %v326_v12 = vpack.c.bf16 %v309_v5, %v306_v0  ;;  %v347_v14 = vpack.i.bf16 %v25_v9, %v24_v8  ;;  %v308_v15 = vld [vmem:[%s506_s0 + $0x48] sm:$0xff]  ;;  %v23_v17 = vld [vmem:[%s506_s0 + $0x18] sm:$0xff] }
   0x5   :  { %343 = vrot.lane.b32.xlu0 %v342_v7, %s404_s5  ;;  %315 = vmatprep.subr.bf16.mxu0 %v314_v13  ;;  %v316_v18 = vpack.c.bf16 %v23_v17, %v20_v16  ;;  %v328_v19 = vpack.c.bf16 %v308_v15, %v305_v11  ;;  %v367_v20 = vpack.i.bf16 %v308_v15, %v305_v11  ;;  %v19_v24 = vld [vmem:[%s507_s3] sm:$0xff] }
   0x6   :  { %327 = vmatprep.subr.bf16.mxu1 %v326_v12  ;;  %v362_v21 = vpack.i.bf16 %v23_v17, %v20_v16  ;;  %v18_v25 = vld [vmem:[%s508_s2] sm:$0xff] }
   0x7   :  { %317 = vmatpush1.bf16.msra.mxu0 %v316_v18  ;;  %329 = vmatpush1.bf16.msra.mxu1 %v328_v19  ;;  %v17_v22 = vld [vmem:[%s509_s1] sm:$0xff] }
   0x8   :  { %358 = vrot.lane.b32.xlu1 %v357_v10, %s404_s5 }
   0x9   :  { %348 = vrot.lane.b32.xlu0 %v347_v14, %s404_s5 }
   0xc   :  { %368 = vrot.lane.b32.xlu1 %v367_v20, %s404_s5 }
   0xd   :  { %363 = vrot.lane.b32.xlu0 %v362_v21, %s404_s5 }
  0x10   :  { %378 = vrot.lane.b32.xlu1 %v347_v14, %s405_s14 }
  0x11   :  { %373 = vrot.lane.b32.xlu0 %v342_v7, %s405_s14 }
  0x14   :  { %388 = vrot.lane.b32.xlu1 %v357_v10, %s405_s14 }
  0x15   :  { %383 = vrot.lane.b32.xlu0 %v352_v3, %s405_s14 }
  0x18   :  { %398 = vrot.lane.b32.xlu1 %v367_v20, %s405_s14 }
  0x19   :  { %393 = vrot.lane.b32.xlu0 %v362_v21, %s405_s14 }
  0x1c   :  { %158 = vperm.xlu1 %403, %v19_v24  }
  0x1d   :  { %151 = vperm.xlu0 %402, %v18_v25  }
  0x76   :  { %v354_v26 = vpop.permute.xlu1 %353 }
  0x77   :  { %v344_v27 = vpop.permute.xlu0 %343  ;;  %v356_v28 = vunpack.i.h.bf16 %v354_v26  ;;  %v355_v29 = vunpack.i.l.bf16 %v354_v26 }
  0x78   :  { %v346_v30 = vunpack.i.h.bf16 %v344_v27  ;;  %v345_v31 = vunpack.i.l.bf16 %v344_v27 }
  0x79   :  { %v193_v38 = vsel %vm44_vm0, %v355_v29, %v356_v28 }
  0x7a   :  { %v359_v32 = vpop.permute.xlu1 %358  ;;  %v46_v41 = vsel %vm44_vm0, %v345_v31, %v346_v30 }
  0x7b   :  { %v361_v33 = vunpack.i.h.bf16 %v359_v32  ;;  %v360_v34 = vunpack.i.l.bf16 %v359_v32  ;;  %v349_v35 = vpop.permute.xlu0 %348 }
  0x7c   :  { %v351_v36 = vunpack.i.h.bf16 %v349_v35  ;;  %v350_v37 = vunpack.i.l.bf16 %v349_v35 }
  0x7d   :  { %v195_v39 = vsel %vm44_vm0, %v360_v34, %v361_v33 }
  0x7e   :  { %v369_v40 = vpop.permute.xlu1 %368  ;;  %v48_v42 = vsel %vm44_vm0, %v350_v37, %v351_v36  ;;  %v330_v43 = vpack.c.bf16 %v195_v39, %v193_v38 }
  0x7f   :  { %v371_v44 = vunpack.i.h.bf16 %v369_v40  ;;  %v370_v45 = vunpack.i.l.bf16 %v369_v40  ;;  %v364_v46 = vpop.permute.xlu0 %363  ;;  %v318_v47 = vpack.c.bf16 %v48_v42, %v46_v41 }
  0x80   :  { %v366_v48 = vunpack.i.h.bf16 %v364_v46  ;;  %v365_v49 = vunpack.i.l.bf16 %v364_v46  ;;  %331 = vmatprep.subr.bf16.mxu1 %v330_v43 }
  0x81   :  { %319 = vmatprep.subr.bf16.mxu0 %v318_v47  ;;  %v192_v50 = vsel %vm44_vm0, %v370_v45, %v355_v29  ;;  %v194_v51 = vsel %vm44_vm0, %v371_v44, %v360_v34 }
  0x82   :  { %v379_v52 = vpop.permute.xlu1 %378  ;;  %v45_v53 = vsel %vm44_vm0, %v365_v49, %v345_v31  ;;  %v47_v54 = vsel %vm44_vm0, %v366_v48, %v350_v37  ;;  %v332_v55 = vpack.c.bf16 %v194_v51, %v192_v50 }
  0x83   :  { %v381_v56 = vunpack.i.h.bf16 %v379_v52  ;;  %v380_v57 = vunpack.i.l.bf16 %v379_v52  ;;  %v374_v58 = vpop.permute.xlu0 %373  ;;  %v320_v59 = vpack.c.bf16 %v47_v54, %v45_v53 }
  0x84   :  { %v376_v60 = vunpack.i.h.bf16 %v374_v58  ;;  %v375_v61 = vunpack.i.l.bf16 %v374_v58  ;;  %333 = vmatpush1.bf16.msra.mxu1 %v332_v55 }
  0x85   :  { %321 = vmatpush1.bf16.msra.mxu0 %v320_v59  ;;  %v69_v62 = vsel %vm65_vm1, %v380_v57, %v381_v56 }
  0x86   :  { %v389_v63 = vpop.permute.xlu1 %388  ;;  %v67_v0 = vsel %vm65_vm1, %v375_v61, %v376_v60 }
  0x87   :  { %v391_v1 = vunpack.i.h.bf16 %v389_v63  ;;  %v390_v2 = vunpack.i.l.bf16 %v389_v63  ;;  %v384_v3 = vpop.permute.xlu0 %383  ;;  %v322_v4 = vpack.c.bf16 %v69_v62, %v67_v0 }
  0x88   :  { %v386_v5 = vunpack.i.h.bf16 %v384_v3  ;;  %v385_v6 = vunpack.i.l.bf16 %v384_v3 }
  0x89   :  { %323 = vmatprep.subr.bf16.mxu0 %v322_v4  ;;  %v215_v7 = vsel %vm65_vm1, %v390_v2, %v391_v1 }
  0x8a   :  { %v399_v8 = vpop.permute.xlu1 %398  ;;  %v213_v9 = vsel %vm65_vm1, %v385_v6, %v386_v5 }
  0x8b   :  { %v401_v10 = vunpack.i.h.bf16 %v399_v8  ;;  %v400_v11 = vunpack.i.l.bf16 %v399_v8  ;;  %v394_v12 = vpop.permute.xlu0 %393  ;;  %v334_v13 = vpack.c.bf16 %v215_v7, %v213_v9 }
  0x8c   :  { %v396_v14 = vunpack.i.h.bf16 %v394_v12  ;;  %v395_v15 = vunpack.i.l.bf16 %v394_v12 }
  0x8d   :  { %335 = vmatprep.subr.bf16.mxu1 %v334_v13  ;;  %v212_v16 = vsel %vm65_vm1, %v400_v11, %v385_v6  ;;  %v214_v17 = vsel %vm65_vm1, %v401_v10, %v390_v2 }
  0x8e   :  { %v66_v18 = vsel %vm65_vm1, %v395_v15, %v375_v61  ;;  %v68_v19 = vsel %vm65_vm1, %v396_v14, %v380_v57  ;;  %v336_v20 = vpack.c.bf16 %v214_v17, %v212_v16 }
  0x8f   :  { %v324_v21 = vpack.c.bf16 %v68_v19, %v66_v18 }
  0x90   :  { %337 = vmatpush1.bf16.msra.mxu1 %v336_v20 }
  0x91   :  { %325 = vmatpush1.bf16.msra.mxu0 %v324_v21 }
  0x93   :  { %311 = vmatmul.mubr.msk.f32.vlgmr.msra.gmra.mrb[0].mxu1 %vm74_vm2, %v17_v22 }
  0x94   :  { %304 = vmatmul.mubr.msk.f32.vlgmr.msra.gmra.mrb[0].mxu0 %vm74_vm2, %v17_v22 }
  0x9b   :  { %v159_v25 = vpop.permute.xlu1 %158 }
  0x9c   :  { %v152_v23 = vpop.permute.xlu0 %151 }
 0x166   :  { %v286_v24 = vpop.f32.mrb[0].mxu1 }
 0x167   :  { %v144_v26 = vpop.f32.mrb[0].mxu0  ;;  %v291_v27 = vmul.f32 %v286_v24, %v152_v23  ;;  %v288_v28 = vpop.f32.mrb[1].mxu1 }
 0x168   :  { %v154_v29 = vmul.f32 %v152_v23, %v144_v26  ;;  %v146_v30 = vpop.f32.mrb[1].mxu0  ;;  %v292_v31 = vmul.f32 %v288_v28, %v152_v23 }
 0x169   :  { %v155_v32 = vmul.f32 %v152_v23, %v146_v30  ;;  %v293_v33 = vadd.f32 %v291_v27, %v159_v25 }
 0x16a   :  { %v161_v34 = vadd.f32 %v159_v25, %v154_v29  ;;  %v294_v35 = vadd.f32 %v292_v31, %v159_v25 }
 0x16b   :  { %v162_v36 = vadd.f32 %v159_v25, %v155_v32  ;;  %v295_v37 = vmax.f32 %v293_v33, 0.0 }
 0x16c   :  { %v163_v38 = vmax.f32 %v161_v34, 0.0  ;;  %v296_v39 = vmax.f32 %v294_v35, 0.0 }
 0x16d   :  { %v164_v40 = vmax.f32 %v162_v36, 0.0  ;;  %312 = vst [vmem:[%s510_s4 + $0x10] sm:$0xff] %v295_v37 }
 0x16e   :  { %165 = vst [vmem:[%s510_s4] sm:$0xff] %v163_v38  ;;  %313 = vst [vmem:[%s510_s4 + $0x18] sm:$0xff] %v296_v39 }
 0x16f   :  { %166 = vst [vmem:[%s510_s4 + $0x8] sm:$0xff] %v164_v40 }

</bundles_post_ra>
